<compile_context>
chip_gen: v7x
topology: tpu7x:2x2x1
jax: 0.10.0
libtpu: 0.0.40
codegen_flags: <defaults>
</compile_context>

<pallas_src>
import math
import functools

import jax
import jax.numpy as jnp
from jax.experimental import pallas as pl
from jax.experimental.pallas import tpu as pltpu


GMM_PAD = 128  # lane-dense width for the GMM-head output (sliced back to 7)


# ----------------------------------------------------------------------------
# Fused forward kernel (single grid step, everything VMEM resident)
# ----------------------------------------------------------------------------
def _mpa_fused_kernel(
        # activations (2-D row slabs; query rows padded to a multiple of 8)
        tgt_ref, qpos_ref, qsine_ref, mem_ref,
        # additive attention masks (block-diagonal / padding), 0 or -1e30
        sa_bias_ref, ca_bias_ref,
        # fused self-attention projection  [q | k | v]
        w_sa_t_ref, w_sa_p_ref, b_sa_ref,
        w_sa_o_ref, b_sa_o_ref, g1_ref, b1n_ref,
        # fused cross-attention query projection (per-head [content | sine])
        w_cq_t_ref, w_cq_p_ref, w_cq_s_ref, b_cq_ref,
        # fused cross-attention memory projection ([k_cat interleaved | v])
        w_cm_ref, b_cm_ref,
        w_ca_o_ref, b_ca_o_ref, g2_ref, b2n_ref,
        # FFN
        w_ff1_ref, b_ff1_ref, w_ff2_ref, b_ff2_ref, g3_ref, b3n_ref,
        # GMM head (lane padded)
        w_g_ref, b_g_ref,
        # outputs
        qf_ref, gmm_ref,
        *, nhead, head_dim, is_first):
    H, hd = nhead, head_dim
    C = H * hd
    f32 = jnp.float32

    def mm(x, w):
        return jnp.dot(x, w, preferred_element_type=f32)

    def ln(x, g, b):  # LayerNorm(x), eps = 1e-5 (PyTorch default)
        mu = jnp.mean(x, axis=-1, keepdims=True)
        xc = x - mu
        var = jnp.mean(xc * xc, axis=-1, keepdims=True)
        return xc * jax.lax.rsqrt(var + 1e-5) * g + b

    def mha(src_q, src_k, src_v, qoff, koff, voff, dq, dv, scale, bias, w_o, b_o):
        # per-head slices are static lane slices of the fused projection outputs;
        # the output projection is fused in per head (sum of per-head contribs).
        acc = None
        for h in range(H):
            qh = src_q[:, qoff + h * dq: qoff + (h + 1) * dq] * scale
            kh = src_k[:, koff + h * dq: koff + (h + 1) * dq]
            vh = src_v[:, voff + h * dv: voff + (h + 1) * dv]
            s = jax.lax.dot_general(qh, kh, (((1,), (1,)), ((), ())),
                                    preferred_element_type=f32) + bias
            m = jnp.max(s, axis=-1, keepdims=True)
            p = jnp.exp(s - m)
            p = p * pl.reciprocal(jnp.sum(p, axis=-1, keepdims=True), approx=True)
            oh = mm(p, vh)                                   # (Nq, dv)
            ch = mm(oh, w_o[h * dv:(h + 1) * dv, :])         # (Nq, C)
            acc = ch if acc is None else acc + ch
        return acc + b_o

    tgt = tgt_ref[...]          # (Nq, C)
    qpos = qpos_ref[...]        # (Nq, C)
    qsine = qsine_ref[...]      # (Nq, C)
    mem = mem_ref[...]          # (Nk, C)
    sa_bias = sa_bias_ref[...]  # (Nq, Nq)
    ca_bias = ca_bias_ref[...]  # (Nq, Nk)

    # ---------------- self-attention ----------------
    sa = mm(tgt, w_sa_t_ref[...]) + mm(qpos, w_sa_p_ref[...]) + b_sa_ref[...]
    sa_o = mha(sa, sa, sa, 0, C, 2 * C, hd, hd, float(hd) ** -0.5,
               sa_bias, w_sa_o_ref[...], b_sa_o_ref[...])
    tgt = ln(tgt + sa_o, g1_ref[...], b1n_ref[...])

    # ---------------- cross-attention ----------------
    qcat = mm(tgt, w_cq_t_ref[...]) + mm(qsine, w_cq_s_ref[...]) + b_cq_ref[...]
    if is_first:  # keep_query_pos=False, layer_idx == 0
        qcat = qcat + mm(qpos, w_cq_p_ref[...])
    kv = mm(mem, w_cm_ref[...]) + b_cm_ref[...]   # [k_cat (2C) | v (C)]
    ca_o = mha(qcat, kv, kv, 0, 0, 2 * C, 2 * hd, hd, float(2 * hd) ** -0.5,
               ca_bias, w_ca_o_ref[...], b_ca_o_ref[...])
    tgt = ln(tgt + ca_o, g2_ref[...], b2n_ref[...])

    # ---------------- FFN ----------------
    hmid = jnp.maximum(mm(tgt, w_ff1_ref[...]) + b_ff1_ref[...], 0.0)
    tgt = ln(tgt + mm(hmid, w_ff2_ref[...]) + b_ff2_ref[...],
             g3_ref[...], b3n_ref[...])

    qf_ref[...] = tgt
    # ---------------- GMM head (lane-dense, padded output) ----------------
    gmm_ref[...] = mm(tgt, w_g_ref[...]) + b_g_ref[...]


# ----------------------------------------------------------------------------
# glue (plain JAX): sine embedding (constant fold), weight fusion, wrapper
# ----------------------------------------------------------------------------
def gen_sineembed_for_position(pos_tensor, hidden_dim):
    """pos_tensor: (n_query, bs, 2) -> (n_query, bs, hidden_dim)"""
    scale = 2 * math.pi
    dim_t = jnp.arange(hidden_dim // 2, dtype=jnp.float32)
    dim_t = 10000.0 ** (2 * (dim_t // 2) / (hidden_dim // 2))
    n, b = pos_tensor.shape[0], pos_tensor.shape[1]
    x_embed = pos_tensor[:, :, 0] * scale
    y_embed = pos_tensor[:, :, 1] * scale
    pos_x = x_embed[:, :, None] / dim_t
    pos_y = y_embed[:, :, None] / dim_t
    pos_x = jnp.stack((jnp.sin(pos_x[:, :, 0::2]), jnp.cos(pos_x[:, :, 1::2])),
                      axis=3).reshape(n, b, -1)
    pos_y = jnp.stack((jnp.sin(pos_y[:, :, 0::2]), jnp.cos(pos_y[:, :, 1::2])),
                      axis=3).reshape(n, b, -1)
    return jnp.concatenate((pos_y, pos_x), axis=2)


def init_params(key, d_model, dff):
    keys = iter(jax.random.split(key, 64))

    def lin(din, dout, s=0.05):
        w = jax.random.normal(next(keys), (din, dout), jnp.float32) * s
        b = jax.random.normal(next(keys), (1, dout), jnp.float32) * s
        return w, b

    p = {}
    for name in ['sa_qcontent', 'sa_qpos', 'sa_kcontent', 'sa_kpos', 'sa_v',
                 'sa_out', 'ca_qcontent', 'ca_qpos', 'ca_kcontent', 'ca_kpos',
                 'ca_v', 'ca_qpos_sine', 'ca_out']:
        p[name] = lin(d_model, d_model)
    p['linear1'] = lin(d_model, dff)
    p['linear2'] = lin(dff, d_model)
    for name in ['norm1', 'norm2', 'norm3']:
        p[name] = (jnp.ones((1, d_model), jnp.float32),
                   jnp.zeros((1, d_model), jnp.float32))
    # GMMHead: prob(1) | output_model(5) | yaw(1)  -> fused into one (d,7) matmul
    wp, bp = lin(d_model, 1)
    wo, bo = lin(d_model, 5)
    wy, by = lin(d_model, 1)
    p['gmm'] = (jnp.concatenate([wp, wo, wy], axis=1),
                jnp.concatenate([bp, bo, by], axis=1))
    return p


def prepare_fused_params(params, d_model, nhead, layer_idx):
    """Fold / fuse the PyTorch-style per-layer params into the wide,
    per-head-interleaved weights consumed by the fused Pallas kernel."""
    C, H = d_model, nhead
    hd = C // H
    is_first = (layer_idx == 0)
    f32 = jnp.float32
    zcc = jnp.zeros((C, C), f32)

    def w(n): return params[n][0]
    def b(n): return params[n][1]

    # self-attention projections fused into [q | k | v]
    w_sa_t = jnp.concatenate([w('sa_qcontent'), w('sa_kcontent'), w('sa_v')], axis=1)
    w_sa_p = jnp.concatenate([w('sa_qpos'), w('sa_kpos'), zcc], axis=1)
    b_sa = jnp.concatenate([b('sa_qcontent') + b('sa_qpos'),
                            b('sa_kcontent') + b('sa_kpos'),
                            b('sa_v')], axis=1)

    # kv_pos is identically zero in MPA_blocks -> ca_kpos(sine(0)) is a single
    # constant row; fold it into the fused biases (no sine embed at run time).
    sine0 = gen_sineembed_for_position(jnp.zeros((1, 1, 2), f32), C).reshape(1, C)
    kpos_row = sine0 @ w('ca_kpos') + b('ca_kpos')            # (1, C)

    def ileave_w(wc, ws):   # per-head [content | sine/pos] column interleave
        return jnp.concatenate([wc.reshape(C, H, 1, hd),
                                ws.reshape(C, H, 1, hd)], axis=2).reshape(C, 2 * C)

    def ileave_b(bc, bs):
        return jnp.concatenate([bc.reshape(1, H, 1, hd),
                                bs.reshape(1, H, 1, hd)], axis=2).reshape(1, 2 * C)

    # cross-attention query projection: per head [q_content(+q_pos) | q_sine]
    w_cq_t = ileave_w(w('ca_qcontent'), zcc)
    w_cq_p = ileave_w(w('ca_qpos'), zcc)          # only used when layer_idx == 0
    w_cq_s = ileave_w(zcc, w('ca_qpos_sine'))
    b_cq = ileave_b(b('ca_qcontent') + (b('ca_qpos') if is_first else 0.0),
                    b('ca_qpos_sine'))

    # cross-attention memory projection: [ per head [k_content(+k_pos) | k_pos] | v ]
    b_kc = b('ca_kcontent') + (kpos_row if is_first else 0.0)
    w_cm = jnp.concatenate([ileave_w(w('ca_kcontent'), zcc), w('ca_v')], axis=1)
    b_cm = jnp.concatenate([ileave_b(b_kc, kpos_row), b('ca_v')], axis=1)

    # GMM head, padded to a full 128-lane output tile (sliced back to 7 outside)
    gw, gb = params['gmm']
    pad = GMM_PAD - gw.shape[1]
    w_g = jnp.concatenate([gw, jnp.zeros((C, pad), f32)], axis=1)
    b_g = jnp.concatenate([gb, jnp.zeros((1, pad), f32)], axis=1)

    return dict(
        w_sa_t=w_sa_t, w_sa_p=w_sa_p, b_sa=b_sa,
        w_sa_o=params['sa_out'][0], b_sa_o=params['sa_out'][1],
        g1=params['norm1'][0], b1n=params['norm1'][1],
        w_cq_t=w_cq_t, w_cq_p=w_cq_p, w_cq_s=w_cq_s, b_cq=b_cq,
        w_cm=w_cm, b_cm=b_cm,
        w_ca_o=params['ca_out'][0], b_ca_o=params['ca_out'][1],
        g2=params['norm2'][0], b2n=params['norm2'][1],
        w_ff1=params['linear1'][0], b_ff1=params['linear1'][1],
        w_ff2=params['linear2'][0], b_ff2=params['linear2'][1],
        g3=params['norm3'][0], b3n=params['norm3'][1],
        w_g=w_g, b_g=b_g)


def _round_up(x, m):
    return ((x + m - 1) // m) * m


def _full_spec(shape):
    nd = len(shape)
    return pl.BlockSpec(shape, lambda i, _nd=nd: (0,) * _nd)


@functools.partial(jax.jit, static_argnames=("nhead", "layer_idx"))
def mpa_blocks_forward(fused, latent, q_content, q_emb, action_embedding,
                       nhead, layer_idx):
    B, T, M, C = latent.shape
    Bt = B * T
    Mq = q_content.shape[0]
    H = nhead
    hd = C // H

    # Pad token counts to sublane multiples (8) so every row slab is
    # (8,128)-tiling friendly; padded rows are masked out of the attentions
    # and dropped again after the kernel.
    Lq = _round_up(Mq, 8)
    Lk = _round_up(M, 8)
    Nq = Bt * Lq
    Nk = Bt * Lk

    def pad_rows(x, L):                       # (Bt, n, C) -> (Bt*L, C)
        n = x.shape[1]
        if L != n:
            x = jnp.pad(x, ((0, 0), (0, L - n), (0, 0)))
        return x.reshape(Bt * L, C)

    tgt2d = pad_rows(jnp.transpose(q_content, (1, 0, 2)), Lq)
    qpos2d = pad_rows(jnp.transpose(q_emb, (1, 0, 2)), Lq)
    qsine2d = pad_rows(action_embedding, Lq)          # already (Bt, Mq, C)
    mem2d = pad_rows(latent.reshape(Bt, M, C), Lk)

    def block_bias(Lkeys, n_real):
        # additive bias: 0 on (same batch, real key) entries, -1e30 elsewhere
        qb = jnp.arange(Nq, dtype=jnp.int32) // Lq
        kc = jnp.arange(Bt * Lkeys, dtype=jnp.int32)
        ok = (qb[:, None] == (kc[None, :] // Lkeys)) & ((kc[None, :] % Lkeys) < n_real)
        return jnp.where(ok, 0.0, -1e30).astype(jnp.float32)

    sa_bias = block_bias(Lq, Mq)              # (Nq, Nq)
    ca_bias = block_bias(Lk, M)               # (Nq, Nk)   (kv_mask is all-True)

    kern = functools.partial(_mpa_fused_kernel, nhead=H, head_dim=hd,
                             is_first=(layer_idx == 0))

    inputs = (tgt2d, qpos2d, qsine2d, mem2d, sa_bias, ca_bias,
              fused['w_sa_t'], fused['w_sa_p'], fused['b_sa'],
              fused['w_sa_o'], fused['b_sa_o'], fused['g1'], fused['b1n'],
              fused['w_cq_t'], fused['w_cq_p'], fused['w_cq_s'], fused['b_cq'],
              fused['w_cm'], fused['b_cm'],
              fused['w_ca_o'], fused['b_ca_o'], fused['g2'], fused['b2n'],
              fused['w_ff1'], fused['b_ff1'], fused['w_ff2'], fused['b_ff2'],
              fused['g3'], fused['b3n'],
              fused['w_g'], fused['b_g'])

    out_shape = (jax.ShapeDtypeStruct((Nq, C), jnp.float32),
                 jax.ShapeDtypeStruct((Nq, GMM_PAD), jnp.float32))

    qf2d, gmm2d = pl.pallas_call(
        kern,
        grid=(1,),
        out_shape=out_shape,
        in_specs=[_full_spec(x.shape) for x in inputs],
        out_specs=(_full_spec((Nq, C)), _full_spec((Nq, GMM_PAD))),
        compiler_params=pltpu.CompilerParams(
            dimension_semantics=("arbitrary",)),
    )(*inputs)

    qf = qf2d.reshape(Bt, Lq, C)[:, :Mq, :]               # drop padded queries
    query_feature = jnp.transpose(qf, (1, 0, 2))          # (Mq, Bt, C)
    action_dis = gmm2d.reshape(Bt, Lq, GMM_PAD)[:, :Mq, :7]   # (Bt, Mq, 7)
    return action_dis, query_feature


# ----------------------------------------------------------------------------
if __name__ == "__main__":
    hidden_size = 32
    nhead = 4
    B, T, M, Mq = 2, 2, 8, 6
    Bt = B * T

    key = jax.random.PRNGKey(0)
    k1, k2, k3, k4, kp = jax.random.split(key, 5)
    latent = jax.random.normal(k1, (B, T, M, hidden_size), jnp.float32)
    q_content = jax.random.normal(k2, (Mq, Bt, hidden_size), jnp.float32)
    q_emb = jax.random.normal(k3, (Mq, Bt, hidden_size), jnp.float32)
    action_embedding = jax.random.normal(k4, (Bt, Mq, hidden_size), jnp.float32)

    params = init_params(kp, hidden_size, hidden_size * 4)
    fused = prepare_fused_params(params, hidden_size, nhead, layer_idx=0)

    action_dis, query_feature = mpa_blocks_forward(
        fused, latent, q_content, q_emb, action_embedding,
        nhead=nhead, layer_idx=0)
    jax.block_until_ready((action_dis, query_feature))

    assert action_dis.shape == (Bt, Mq, 7)
    assert query_feature.shape == (Mq, Bt, hidden_size)
    assert bool(jnp.all(jnp.isfinite(action_dis)))
    assert bool(jnp.all(jnp.isfinite(query_feature)))
    print("KERNEL_OK")
</pallas_src>

<mosaic_0001>
module attributes {stable_mosaic.version = 11 : i64} {
  func.func @_mpa_fused_kernel(%arg0: i32, %arg1: memref<32x32xf32, #tpu.memory_space<vmem>>, %arg2: memref<32x32xf32, #tpu.memory_space<vmem>>, %arg3: memref<32x32xf32, #tpu.memory_space<vmem>>, %arg4: memref<32x32xf32, #tpu.memory_space<vmem>>, %arg5: memref<32x32xf32, #tpu.memory_space<vmem>>, %arg6: memref<32x32xf32, #tpu.memory_space<vmem>>, %arg7: memref<32x96xf32, #tpu.memory_space<vmem>>, %arg8: memref<32x96xf32, #tpu.memory_space<vmem>>, %arg9: memref<1x96xf32, #tpu.memory_space<vmem>>, %arg10: memref<32x32xf32, #tpu.memory_space<vmem>>, %arg11: memref<1x32xf32, #tpu.memory_space<vmem>>, %arg12: memref<1x32xf32, #tpu.memory_space<vmem>>, %arg13: memref<1x32xf32, #tpu.memory_space<vmem>>, %arg14: memref<32x64xf32, #tpu.memory_space<vmem>>, %arg15: memref<32x64xf32, #tpu.memory_space<vmem>>, %arg16: memref<32x64xf32, #tpu.memory_space<vmem>>, %arg17: memref<1x64xf32, #tpu.memory_space<vmem>>, %arg18: memref<32x96xf32, #tpu.memory_space<vmem>>, %arg19: memref<1x96xf32, #tpu.memory_space<vmem>>, %arg20: memref<32x32xf32, #tpu.memory_space<vmem>>, %arg21: memref<1x32xf32, #tpu.memory_space<vmem>>, %arg22: memref<1x32xf32, #tpu.memory_space<vmem>>, %arg23: memref<1x32xf32, #tpu.memory_space<vmem>>, %arg24: memref<32x128xf32, #tpu.memory_space<vmem>>, %arg25: memref<1x128xf32, #tpu.memory_space<vmem>>, %arg26: memref<128x32xf32, #tpu.memory_space<vmem>>, %arg27: memref<1x32xf32, #tpu.memory_space<vmem>>, %arg28: memref<1x32xf32, #tpu.memory_space<vmem>>, %arg29: memref<1x32xf32, #tpu.memory_space<vmem>>, %arg30: memref<32x128xf32, #tpu.memory_space<vmem>>, %arg31: memref<1x128xf32, #tpu.memory_space<vmem>>, %arg32: memref<32x32xf32, #tpu.memory_space<vmem>>, %arg33: memref<32x128xf32, #tpu.memory_space<vmem>>) attributes {dimension_semantics = [#tpu.dimension_semantics<arbitrary>], iteration_bounds = array<i64: 1>, scalar_prefetch = 0 : i64, scratch_operands = 0 : i64, tpu.core_type = #tpu.core_type<tc>, window_params = [{pipeline_mode = #tpu.pipeline_mode<synchronous>, transform_indices = @transform_0, window_bounds = array<i64: 32, 32>}, {pipeline_mode = #tpu.pipeline_mode<synchronous>, transform_indices = @transform_1, window_bounds = array<i64: 32, 32>}, {pipeline_mode = #tpu.pipeline_mode<synchronous>, transform_indices = @transform_2, window_bounds = array<i64: 32, 32>}, {pipeline_mode = #tpu.pipeline_mode<synchronous>, transform_indices = @transform_3, window_bounds = array<i64: 32, 32>}, {pipeline_mode = #tpu.pipeline_mode<synchronous>, transform_indices = @transform_4, window_bounds = array<i64: 32, 32>}, {pipeline_mode = #tpu.pipeline_mode<synchronous>, transform_indices = @transform_5, window_bounds = array<i64: 32, 32>}, {pipeline_mode = #tpu.pipeline_mode<synchronous>, transform_indices = @transform_6, window_bounds = array<i64: 32, 96>}, {pipeline_mode = #tpu.pipeline_mode<synchronous>, transform_indices = @transform_7, window_bounds = array<i64: 32, 96>}, {pipeline_mode = #tpu.pipeline_mode<synchronous>, transform_indices = @transform_8, window_bounds = array<i64: 1, 96>}, {pipeline_mode = #tpu.pipeline_mode<synchronous>, transform_indices = @transform_9, window_bounds = array<i64: 32, 32>}, {pipeline_mode = #tpu.pipeline_mode<synchronous>, transform_indices = @transform_10, window_bounds = array<i64: 1, 32>}, {pipeline_mode = #tpu.pipeline_mode<synchronous>, transform_indices = @transform_11, window_bounds = array<i64: 1, 32>}, {pipeline_mode = #tpu.pipeline_mode<synchronous>, transform_indices = @transform_12, window_bounds = array<i64: 1, 32>}, {pipeline_mode = #tpu.pipeline_mode<synchronous>, transform_indices = @transform_13, window_bounds = array<i64: 32, 64>}, {pipeline_mode = #tpu.pipeline_mode<synchronous>, transform_indices = @transform_14, window_bounds = array<i64: 32, 64>}, {pipeline_mode = #tpu.pipeline_mode<synchronous>, transform_indices = @transform_15, window_bounds = array<i64: 32, 64>}, {pipeline_mode = #tpu.pipeline_mode<synchronous>, transform_indices = @transform_16, window_bounds = array<i64: 1, 64>}, {pipeline_mode = #tpu.pipeline_mode<synchronous>, transform_indices = @transform_17, window_bounds = array<i64: 32, 96>}, {pipeline_mode = #tpu.pipeline_mode<synchronous>, transform_indices = @transform_18, window_bounds = array<i64: 1, 96>}, {pipeline_mode = #tpu.pipeline_mode<synchronous>, transform_indices = @transform_19, window_bounds = array<i64: 32, 32>}, {pipeline_mode = #tpu.pipeline_mode<synchronous>, transform_indices = @transform_20, window_bounds = array<i64: 1, 32>}, {pipeline_mode = #tpu.pipeline_mode<synchronous>, transform_indices = @transform_21, window_bounds = array<i64: 1, 32>}, {pipeline_mode = #tpu.pipeline_mode<synchronous>, transform_indices = @transform_22, window_bounds = array<i64: 1, 32>}, {pipeline_mode = #tpu.pipeline_mode<synchronous>, transform_indices = @transform_23, window_bounds = array<i64: 32, 128>}, {pipeline_mode = #tpu.pipeline_mode<synchronous>, transform_indices = @transform_24, window_bounds = array<i64: 1, 128>}, {pipeline_mode = #tpu.pipeline_mode<synchronous>, transform_indices = @transform_25, window_bounds = array<i64: 128, 32>}, {pipeline_mode = #tpu.pipeline_mode<synchronous>, transform_indices = @transform_26, window_bounds = array<i64: 1, 32>}, {pipeline_mode = #tpu.pipeline_mode<synchronous>, transform_indices = @transform_27, window_bounds = array<i64: 1, 32>}, {pipeline_mode = #tpu.pipeline_mode<synchronous>, transform_indices = @transform_28, window_bounds = array<i64: 1, 32>}, {pipeline_mode = #tpu.pipeline_mode<synchronous>, transform_indices = @transform_29, window_bounds = array<i64: 32, 128>}, {pipeline_mode = #tpu.pipeline_mode<synchronous>, transform_indices = @transform_30, window_bounds = array<i64: 1, 128>}, {pipeline_mode = #tpu.pipeline_mode<synchronous>, transform_indices = @transform_31, window_bounds = array<i64: 32, 32>}, {pipeline_mode = #tpu.pipeline_mode<synchronous>, transform_indices = @transform_32, window_bounds = array<i64: 32, 128>}]} {
    %c0 = arith.constant 0 : index
    %c0_0 = arith.constant 0 : index
    %0 = vector.load %arg1[%c0, %c0_0] : memref<32x32xf32, #tpu.memory_space<vmem>>, vector<32x32xf32>
    %c0_1 = arith.constant 0 : index
    %c0_2 = arith.constant 0 : index
    %1 = vector.load %arg2[%c0_1, %c0_2] : memref<32x32xf32, #tpu.memory_space<vmem>>, vector<32x32xf32>
    %c0_3 = arith.constant 0 : index
    %c0_4 = arith.constant 0 : index
    %2 = vector.load %arg3[%c0_3, %c0_4] : memref<32x32xf32, #tpu.memory_space<vmem>>, vector<32x32xf32>
    %c0_5 = arith.constant 0 : index
    %c0_6 = arith.constant 0 : index
    %3 = vector.load %arg4[%c0_5, %c0_6] : memref<32x32xf32, #tpu.memory_space<vmem>>, vector<32x32xf32>
    %c0_7 = arith.constant 0 : index
    %c0_8 = arith.constant 0 : index
    %4 = vector.load %arg5[%c0_7, %c0_8] : memref<32x32xf32, #tpu.memory_space<vmem>>, vector<32x32xf32>
    %c0_9 = arith.constant 0 : index
    %c0_10 = arith.constant 0 : index
    %5 = vector.load %arg6[%c0_9, %c0_10] : memref<32x32xf32, #tpu.memory_space<vmem>>, vector<32x32xf32>
    %c0_11 = arith.constant 0 : index
    %c0_12 = arith.constant 0 : index
    %6 = vector.load %arg7[%c0_11, %c0_12] : memref<32x96xf32, #tpu.memory_space<vmem>>, vector<32x96xf32>
    %cst = arith.constant dense<0.000000e+00> : vector<32x96xf32>
    %7 = tpu.matmul %0, %6, %cst {dimension_numbers = #tpu.dot_dimension_numbers<[1], [0], [0], [1], [0, 0, 1, 1], [], []>} : vector<32x32xf32>, vector<32x96xf32>, vector<32x96xf32> -> vector<32x96xf32>
    %c0_13 = arith.constant 0 : index
    %c0_14 = arith.constant 0 : index
    %8 = vector.load %arg8[%c0_13, %c0_14] : memref<32x96xf32, #tpu.memory_space<vmem>>, vector<32x96xf32>
    %cst_15 = arith.constant dense<0.000000e+00> : vector<32x96xf32>
    %9 = tpu.matmul %1, %8, %cst_15 {dimension_numbers = #tpu.dot_dimension_numbers<[1], [0], [0], [1], [0, 0, 1, 1], [], []>} : vector<32x32xf32>, vector<32x96xf32>, vector<32x96xf32> -> vector<32x96xf32>
    %10 = arith.addf %7, %9 : vector<32x96xf32>
    %c0_16 = arith.constant 0 : index
    %c0_17 = arith.constant 0 : index
    %11 = vector.load %arg9[%c0_16, %c0_17] : memref<1x96xf32, #tpu.memory_space<vmem>>, vector<1x96xf32>
    %12 = vector.broadcast %11 : vector<1x96xf32> to vector<32x96xf32>
    %13 = arith.addf %10, %12 : vector<32x96xf32>
    %c0_18 = arith.constant 0 : index
    %c0_19 = arith.constant 0 : index
    %14 = vector.load %arg10[%c0_18, %c0_19] : memref<32x32xf32, #tpu.memory_space<vmem>>, vector<32x32xf32>
    %c0_20 = arith.constant 0 : index
    %c0_21 = arith.constant 0 : index
    %15 = vector.load %arg11[%c0_20, %c0_21] : memref<1x32xf32, #tpu.memory_space<vmem>>, vector<1x32xf32>
    %16 = vector.extract_strided_slice %13 {offsets = [0, 0], sizes = [32, 8], strides = [1, 1]} : vector<32x96xf32> to vector<32x8xf32>
    %cst_22 = arith.constant 0.353553385 : f32
    %17 = vector.broadcast %cst_22 : f32 to vector<32x8xf32>
    %18 = arith.mulf %16, %17 : vector<32x8xf32>
    %19 = vector.extract_strided_slice %13 {offsets = [0, 32], sizes = [32, 8], strides = [1, 1]} : vector<32x96xf32> to vector<32x8xf32>
    %20 = vector.extract_strided_slice %13 {offsets = [0, 64], sizes = [32, 8], strides = [1, 1]} : vector<32x96xf32> to vector<32x8xf32>
    %cst_23 = arith.constant dense<0.000000e+00> : vector<32x32xf32>
    %21 = tpu.matmul %18, %19, %cst_23 {dimension_numbers = #tpu.dot_dimension_numbers<[1], [1], [0], [0], [0, 0, 1, 0], [], []>} : vector<32x8xf32>, vector<32x8xf32>, vector<32x32xf32> -> vector<32x32xf32>
    %22 = arith.addf %21, %4 : vector<32x32xf32>
    %cst_24 = arith.constant dense<0xFF800000> : vector<32xf32>
    %23 = vector.multi_reduction <maximumf>, %22, %cst_24 [1] : vector<32x32xf32> to vector<32xf32>
    %24 = vector.shape_cast %23 : vector<32xf32> to vector<32x1xf32>
    %25 = vector.broadcast %24 : vector<32x1xf32> to vector<32x32xf32>
    %26 = arith.subf %22, %25 : vector<32x32xf32>
    %27 = math.exp %26 : vector<32x32xf32>
    %cst_25 = arith.constant dense<0.000000e+00> : vector<32xf32>
    %28 = vector.multi_reduction <add>, %27, %cst_25 [1] : vector<32x32xf32> to vector<32xf32>
    %29 = vector.shape_cast %28 : vector<32xf32> to vector<32x1xf32>
    %30 = tpu.reciprocal %29 {approx = true} : vector<32x1xf32> -> vector<32x1xf32>
    %31 = vector.broadcast %30 : vector<32x1xf32> to vector<32x32xf32>
    %32 = arith.mulf %27, %31 : vector<32x32xf32>
    %cst_26 = arith.constant dense<0.000000e+00> : vector<32x8xf32>
    %33 = tpu.matmul %32, %20, %cst_26 {dimension_numbers = #tpu.dot_dimension_numbers<[1], [0], [0], [1], [0, 0, 1, 1], [], []>} : vector<32x32xf32>, vector<32x8xf32>, vector<32x8xf32> -> vector<32x8xf32>
    %34 = vector.extract_strided_slice %14 {offsets = [0, 0], sizes = [8, 32], strides = [1, 1]} : vector<32x32xf32> to vector<8x32xf32>
    %cst_27 = arith.constant dense<0.000000e+00> : vector<32x32xf32>
    %35 = tpu.matmul %33, %34, %cst_27 {dimension_numbers = #tpu.dot_dimension_numbers<[1], [0], [0], [1], [0, 0, 1, 1], [], []>} : vector<32x8xf32>, vector<8x32xf32>, vector<32x32xf32> -> vector<32x32xf32>
    %36 = vector.extract_strided_slice %13 {offsets = [0, 8], sizes = [32, 8], strides = [1, 1]} : vector<32x96xf32> to vector<32x8xf32>
    %cst_28 = arith.constant 0.353553385 : f32
    %37 = vector.broadcast %cst_28 : f32 to vector<32x8xf32>
    %38 = arith.mulf %36, %37 : vector<32x8xf32>
    %39 = vector.extract_strided_slice %13 {offsets = [0, 40], sizes = [32, 8], strides = [1, 1]} : vector<32x96xf32> to vector<32x8xf32>
    %40 = vector.extract_strided_slice %13 {offsets = [0, 72], sizes = [32, 8], strides = [1, 1]} : vector<32x96xf32> to vector<32x8xf32>
    %cst_29 = arith.constant dense<0.000000e+00> : vector<32x32xf32>
    %41 = tpu.matmul %38, %39, %cst_29 {dimension_numbers = #tpu.dot_dimension_numbers<[1], [1], [0], [0], [0, 0, 1, 0], [], []>} : vector<32x8xf32>, vector<32x8xf32>, vector<32x32xf32> -> vector<32x32xf32>
    %42 = arith.addf %41, %4 : vector<32x32xf32>
    %cst_30 = arith.constant dense<0xFF800000> : vector<32xf32>
    %43 = vector.multi_reduction <maximumf>, %42, %cst_30 [1] : vector<32x32xf32> to vector<32xf32>
    %44 = vector.shape_cast %43 : vector<32xf32> to vector<32x1xf32>
    %45 = vector.broadcast %44 : vector<32x1xf32> to vector<32x32xf32>
    %46 = arith.subf %42, %45 : vector<32x32xf32>
    %47 = math.exp %46 : vector<32x32xf32>
    %cst_31 = arith.constant dense<0.000000e+00> : vector<32xf32>
    %48 = vector.multi_reduction <add>, %47, %cst_31 [1] : vector<32x32xf32> to vector<32xf32>
    %49 = vector.shape_cast %48 : vector<32xf32> to vector<32x1xf32>
    %50 = tpu.reciprocal %49 {approx = true} : vector<32x1xf32> -> vector<32x1xf32>
    %51 = vector.broadcast %50 : vector<32x1xf32> to vector<32x32xf32>
    %52 = arith.mulf %47, %51 : vector<32x32xf32>
    %cst_32 = arith.constant dense<0.000000e+00> : vector<32x8xf32>
    %53 = tpu.matmul %52, %40, %cst_32 {dimension_numbers = #tpu.dot_dimension_numbers<[1], [0], [0], [1], [0, 0, 1, 1], [], []>} : vector<32x32xf32>, vector<32x8xf32>, vector<32x8xf32> -> vector<32x8xf32>
    %54 = vector.extract_strided_slice %14 {offsets = [8, 0], sizes = [8, 32], strides = [1, 1]} : vector<32x32xf32> to vector<8x32xf32>
    %cst_33 = arith.constant dense<0.000000e+00> : vector<32x32xf32>
    %55 = tpu.matmul %53, %54, %cst_33 {dimension_numbers = #tpu.dot_dimension_numbers<[1], [0], [0], [1], [0, 0, 1, 1], [], []>} : vector<32x8xf32>, vector<8x32xf32>, vector<32x32xf32> -> vector<32x32xf32>
    %56 = arith.addf %35, %55 : vector<32x32xf32>
    %57 = vector.extract_strided_slice %13 {offsets = [0, 16], sizes = [32, 8], strides = [1, 1]} : vector<32x96xf32> to vector<32x8xf32>
    %cst_34 = arith.constant 0.353553385 : f32
    %58 = vector.broadcast %cst_34 : f32 to vector<32x8xf32>
    %59 = arith.mulf %57, %58 : vector<32x8xf32>
    %60 = vector.extract_strided_slice %13 {offsets = [0, 48], sizes = [32, 8], strides = [1, 1]} : vector<32x96xf32> to vector<32x8xf32>
    %61 = vector.extract_strided_slice %13 {offsets = [0, 80], sizes = [32, 8], strides = [1, 1]} : vector<32x96xf32> to vector<32x8xf32>
    %cst_35 = arith.constant dense<0.000000e+00> : vector<32x32xf32>
    %62 = tpu.matmul %59, %60, %cst_35 {dimension_numbers = #tpu.dot_dimension_numbers<[1], [1], [0], [0], [0, 0, 1, 0], [], []>} : vector<32x8xf32>, vector<32x8xf32>, vector<32x32xf32> -> vector<32x32xf32>
    %63 = arith.addf %62, %4 : vector<32x32xf32>
    %cst_36 = arith.constant dense<0xFF800000> : vector<32xf32>
    %64 = vector.multi_reduction <maximumf>, %63, %cst_36 [1] : vector<32x32xf32> to vector<32xf32>
    %65 = vector.shape_cast %64 : vector<32xf32> to vector<32x1xf32>
    %66 = vector.broadcast %65 : vector<32x1xf32> to vector<32x32xf32>
    %67 = arith.subf %63, %66 : vector<32x32xf32>
    %68 = math.exp %67 : vector<32x32xf32>
    %cst_37 = arith.constant dense<0.000000e+00> : vector<32xf32>
    %69 = vector.multi_reduction <add>, %68, %cst_37 [1] : vector<32x32xf32> to vector<32xf32>
    %70 = vector.shape_cast %69 : vector<32xf32> to vector<32x1xf32>
    %71 = tpu.reciprocal %70 {approx = true} : vector<32x1xf32> -> vector<32x1xf32>
    %72 = vector.broadcast %71 : vector<32x1xf32> to vector<32x32xf32>
    %73 = arith.mulf %68, %72 : vector<32x32xf32>
    %cst_38 = arith.constant dense<0.000000e+00> : vector<32x8xf32>
    %74 = tpu.matmul %73, %61, %cst_38 {dimension_numbers = #tpu.dot_dimension_numbers<[1], [0], [0], [1], [0, 0, 1, 1], [], []>} : vector<32x32xf32>, vector<32x8xf32>, vector<32x8xf32> -> vector<32x8xf32>
    %75 = vector.extract_strided_slice %14 {offsets = [16, 0], sizes = [8, 32], strides = [1, 1]} : vector<32x32xf32> to vector<8x32xf32>
    %cst_39 = arith.constant dense<0.000000e+00> : vector<32x32xf32>
    %76 = tpu.matmul %74, %75, %cst_39 {dimension_numbers = #tpu.dot_dimension_numbers<[1], [0], [0], [1], [0, 0, 1, 1], [], []>} : vector<32x8xf32>, vector<8x32xf32>, vector<32x32xf32> -> vector<32x32xf32>
    %77 = arith.addf %56, %76 : vector<32x32xf32>
    %78 = vector.extract_strided_slice %13 {offsets = [0, 24], sizes = [32, 8], strides = [1, 1]} : vector<32x96xf32> to vector<32x8xf32>
    %cst_40 = arith.constant 0.353553385 : f32
    %79 = vector.broadcast %cst_40 : f32 to vector<32x8xf32>
    %80 = arith.mulf %78, %79 : vector<32x8xf32>
    %81 = vector.extract_strided_slice %13 {offsets = [0, 56], sizes = [32, 8], strides = [1, 1]} : vector<32x96xf32> to vector<32x8xf32>
    %82 = vector.extract_strided_slice %13 {offsets = [0, 88], sizes = [32, 8], strides = [1, 1]} : vector<32x96xf32> to vector<32x8xf32>
    %cst_41 = arith.constant dense<0.000000e+00> : vector<32x32xf32>
    %83 = tpu.matmul %80, %81, %cst_41 {dimension_numbers = #tpu.dot_dimension_numbers<[1], [1], [0], [0], [0, 0, 1, 0], [], []>} : vector<32x8xf32>, vector<32x8xf32>, vector<32x32xf32> -> vector<32x32xf32>
    %84 = arith.addf %83, %4 : vector<32x32xf32>
    %cst_42 = arith.constant dense<0xFF800000> : vector<32xf32>
    %85 = vector.multi_reduction <maximumf>, %84, %cst_42 [1] : vector<32x32xf32> to vector<32xf32>
    %86 = vector.shape_cast %85 : vector<32xf32> to vector<32x1xf32>
    %87 = vector.broadcast %86 : vector<32x1xf32> to vector<32x32xf32>
    %88 = arith.subf %84, %87 : vector<32x32xf32>
    %89 = math.exp %88 : vector<32x32xf32>
    %cst_43 = arith.constant dense<0.000000e+00> : vector<32xf32>
    %90 = vector.multi_reduction <add>, %89, %cst_43 [1] : vector<32x32xf32> to vector<32xf32>
    %91 = vector.shape_cast %90 : vector<32xf32> to vector<32x1xf32>
    %92 = tpu.reciprocal %91 {approx = true} : vector<32x1xf32> -> vector<32x1xf32>
    %93 = vector.broadcast %92 : vector<32x1xf32> to vector<32x32xf32>
    %94 = arith.mulf %89, %93 : vector<32x32xf32>
    %cst_44 = arith.constant dense<0.000000e+00> : vector<32x8xf32>
    %95 = tpu.matmul %94, %82, %cst_44 {dimension_numbers = #tpu.dot_dimension_numbers<[1], [0], [0], [1], [0, 0, 1, 1], [], []>} : vector<32x32xf32>, vector<32x8xf32>, vector<32x8xf32> -> vector<32x8xf32>
    %96 = vector.extract_strided_slice %14 {offsets = [24, 0], sizes = [8, 32], strides = [1, 1]} : vector<32x32xf32> to vector<8x32xf32>
    %cst_45 = arith.constant dense<0.000000e+00> : vector<32x32xf32>
    %97 = tpu.matmul %95, %96, %cst_45 {dimension_numbers = #tpu.dot_dimension_numbers<[1], [0], [0], [1], [0, 0, 1, 1], [], []>} : vector<32x8xf32>, vector<8x32xf32>, vector<32x32xf32> -> vector<32x32xf32>
    %98 = arith.addf %77, %97 : vector<32x32xf32>
    %99 = vector.broadcast %15 : vector<1x32xf32> to vector<32x32xf32>
    %100 = arith.addf %98, %99 : vector<32x32xf32>
    %101 = arith.addf %0, %100 : vector<32x32xf32>
    %c0_46 = arith.constant 0 : index
    %c0_47 = arith.constant 0 : index
    %102 = vector.load %arg12[%c0_46, %c0_47] : memref<1x32xf32, #tpu.memory_space<vmem>>, vector<1x32xf32>
    %c0_48 = arith.constant 0 : index
    %c0_49 = arith.constant 0 : index
    %103 = vector.load %arg13[%c0_48, %c0_49] : memref<1x32xf32, #tpu.memory_space<vmem>>, vector<1x32xf32>
    %cst_50 = arith.constant dense<0.000000e+00> : vector<32xf32>
    %104 = vector.multi_reduction <add>, %101, %cst_50 [1] : vector<32x32xf32> to vector<32xf32>
    %105 = vector.shape_cast %104 : vector<32xf32> to vector<32x1xf32>
    %cst_51 = arith.constant 3.200000e+01 : f32
    %106 = vector.broadcast %cst_51 : f32 to vector<32x1xf32>
    %107 = arith.divf %105, %106 : vector<32x1xf32>
    %108 = vector.broadcast %107 : vector<32x1xf32> to vector<32x32xf32>
    %109 = arith.subf %101, %108 : vector<32x32xf32>
    %110 = arith.mulf %109, %109 : vector<32x32xf32>
    %cst_52 = arith.constant dense<0.000000e+00> : vector<32xf32>
    %111 = vector.multi_reduction <add>, %110, %cst_52 [1] : vector<32x32xf32> to vector<32xf32>
    %112 = vector.shape_cast %111 : vector<32xf32> to vector<32x1xf32>
    %cst_53 = arith.constant 3.200000e+01 : f32
    %113 = vector.broadcast %cst_53 : f32 to vector<32x1xf32>
    %114 = arith.divf %112, %113 : vector<32x1xf32>
    %cst_54 = arith.constant 9.99999974E-6 : f32
    %115 = vector.broadcast %cst_54 : f32 to vector<32x1xf32>
    %116 = arith.addf %114, %115 : vector<32x1xf32>
    %117 = math.rsqrt %116 : vector<32x1xf32>
    %118 = vector.broadcast %117 : vector<32x1xf32> to vector<32x32xf32>
    %119 = arith.mulf %109, %118 : vector<32x32xf32>
    %120 = vector.broadcast %102 : vector<1x32xf32> to vector<32x32xf32>
    %121 = arith.mulf %119, %120 : vector<32x32xf32>
    %122 = vector.broadcast %103 : vector<1x32xf32> to vector<32x32xf32>
    %123 = arith.addf %121, %122 : vector<32x32xf32>
    %c0_55 = arith.constant 0 : index
    %c0_56 = arith.constant 0 : index
    %124 = vector.load %arg14[%c0_55, %c0_56] : memref<32x64xf32, #tpu.memory_space<vmem>>, vector<32x64xf32>
    %cst_57 = arith.constant dense<0.000000e+00> : vector<32x64xf32>
    %125 = tpu.matmul %123, %124, %cst_57 {dimension_numbers = #tpu.dot_dimension_numbers<[1], [0], [0], [1], [0, 0, 1, 1], [], []>} : vector<32x32xf32>, vector<32x64xf32>, vector<32x64xf32> -> vector<32x64xf32>
    %c0_58 = arith.constant 0 : index
    %c0_59 = arith.constant 0 : index
    %126 = vector.load %arg16[%c0_58, %c0_59] : memref<32x64xf32, #tpu.memory_space<vmem>>, vector<32x64xf32>
    %cst_60 = arith.constant dense<0.000000e+00> : vector<32x64xf32>
    %127 = tpu.matmul %2, %126, %cst_60 {dimension_numbers = #tpu.dot_dimension_numbers<[1], [0], [0], [1], [0, 0, 1, 1], [], []>} : vector<32x32xf32>, vector<32x64xf32>, vector<32x64xf32> -> vector<32x64xf32>
    %128 = arith.addf %125, %127 : vector<32x64xf32>
    %c0_61 = arith.constant 0 : index
    %c0_62 = arith.constant 0 : index
    %129 = vector.load %arg17[%c0_61, %c0_62] : memref<1x64xf32, #tpu.memory_space<vmem>>, vector<1x64xf32>
    %130 = vector.broadcast %129 : vector<1x64xf32> to vector<32x64xf32>
    %131 = arith.addf %128, %130 : vector<32x64xf32>
    %c0_63 = arith.constant 0 : index
    %c0_64 = arith.constant 0 : index
    %132 = vector.load %arg15[%c0_63, %c0_64] : memref<32x64xf32, #tpu.memory_space<vmem>>, vector<32x64xf32>
    %cst_65 = arith.constant dense<0.000000e+00> : vector<32x64xf32>
    %133 = tpu.matmul %1, %132, %cst_65 {dimension_numbers = #tpu.dot_dimension_numbers<[1], [0], [0], [1], [0, 0, 1, 1], [], []>} : vector<32x32xf32>, vector<32x64xf32>, vector<32x64xf32> -> vector<32x64xf32>
    %134 = arith.addf %131, %133 : vector<32x64xf32>
    %c0_66 = arith.constant 0 : index
    %c0_67 = arith.constant 0 : index
    %135 = vector.load %arg18[%c0_66, %c0_67] : memref<32x96xf32, #tpu.memory_space<vmem>>, vector<32x96xf32>
    %cst_68 = arith.constant dense<0.000000e+00> : vector<32x96xf32>
    %136 = tpu.matmul %3, %135, %cst_68 {dimension_numbers = #tpu.dot_dimension_numbers<[1], [0], [0], [1], [0, 0, 1, 1], [], []>} : vector<32x32xf32>, vector<32x96xf32>, vector<32x96xf32> -> vector<32x96xf32>
    %c0_69 = arith.constant 0 : index
    %c0_70 = arith.constant 0 : index
    %137 = vector.load %arg19[%c0_69, %c0_70] : memref<1x96xf32, #tpu.memory_space<vmem>>, vector<1x96xf32>
    %138 = vector.broadcast %137 : vector<1x96xf32> to vector<32x96xf32>
    %139 = arith.addf %136, %138 : vector<32x96xf32>
    %c0_71 = arith.constant 0 : index
    %c0_72 = arith.constant 0 : index
    %140 = vector.load %arg20[%c0_71, %c0_72] : memref<32x32xf32, #tpu.memory_space<vmem>>, vector<32x32xf32>
    %c0_73 = arith.constant 0 : index
    %c0_74 = arith.constant 0 : index
    %141 = vector.load %arg21[%c0_73, %c0_74] : memref<1x32xf32, #tpu.memory_space<vmem>>, vector<1x32xf32>
    %142 = vector.extract_strided_slice %134 {offsets = [0, 0], sizes = [32, 16], strides = [1, 1]} : vector<32x64xf32> to vector<32x16xf32>
    %cst_75 = arith.constant 2.500000e-01 : f32
    %143 = vector.broadcast %cst_75 : f32 to vector<32x16xf32>
    %144 = arith.mulf %142, %143 : vector<32x16xf32>
    %145 = vector.extract_strided_slice %139 {offsets = [0, 0], sizes = [32, 16], strides = [1, 1]} : vector<32x96xf32> to vector<32x16xf32>
    %146 = vector.extract_strided_slice %139 {offsets = [0, 64], sizes = [32, 8], strides = [1, 1]} : vector<32x96xf32> to vector<32x8xf32>
    %cst_76 = arith.constant dense<0.000000e+00> : vector<32x32xf32>
    %147 = tpu.matmul %144, %145, %cst_76 {dimension_numbers = #tpu.dot_dimension_numbers<[1], [1], [0], [0], [0, 0, 1, 0], [], []>} : vector<32x16xf32>, vector<32x16xf32>, vector<32x32xf32> -> vector<32x32xf32>
    %148 = arith.addf %147, %5 : vector<32x32xf32>
    %cst_77 = arith.constant dense<0xFF800000> : vector<32xf32>
    %149 = vector.multi_reduction <maximumf>, %148, %cst_77 [1] : vector<32x32xf32> to vector<32xf32>
    %150 = vector.shape_cast %149 : vector<32xf32> to vector<32x1xf32>
    %151 = vector.broadcast %150 : vector<32x1xf32> to vector<32x32xf32>
    %152 = arith.subf %148, %151 : vector<32x32xf32>
    %153 = math.exp %152 : vector<32x32xf32>
    %cst_78 = arith.constant dense<0.000000e+00> : vector<32xf32>
    %154 = vector.multi_reduction <add>, %153, %cst_78 [1] : vector<32x32xf32> to vector<32xf32>
    %155 = vector.shape_cast %154 : vector<32xf32> to vector<32x1xf32>
    %156 = tpu.reciprocal %155 {approx = true} : vector<32x1xf32> -> vector<32x1xf32>
    %157 = vector.broadcast %156 : vector<32x1xf32> to vector<32x32xf32>
    %158 = arith.mulf %153, %157 : vector<32x32xf32>
    %cst_79 = arith.constant dense<0.000000e+00> : vector<32x8xf32>
    %159 = tpu.matmul %158, %146, %cst_79 {dimension_numbers = #tpu.dot_dimension_numbers<[1], [0], [0], [1], [0, 0, 1, 1], [], []>} : vector<32x32xf32>, vector<32x8xf32>, vector<32x8xf32> -> vector<32x8xf32>
    %160 = vector.extract_strided_slice %140 {offsets = [0, 0], sizes = [8, 32], strides = [1, 1]} : vector<32x32xf32> to vector<8x32xf32>
    %cst_80 = arith.constant dense<0.000000e+00> : vector<32x32xf32>
    %161 = tpu.matmul %159, %160, %cst_80 {dimension_numbers = #tpu.dot_dimension_numbers<[1], [0], [0], [1], [0, 0, 1, 1], [], []>} : vector<32x8xf32>, vector<8x32xf32>, vector<32x32xf32> -> vector<32x32xf32>
    %162 = vector.extract_strided_slice %134 {offsets = [0, 16], sizes = [32, 16], strides = [1, 1]} : vector<32x64xf32> to vector<32x16xf32>
    %cst_81 = arith.constant 2.500000e-01 : f32
    %163 = vector.broadcast %cst_81 : f32 to vector<32x16xf32>
    %164 = arith.mulf %162, %163 : vector<32x16xf32>
    %165 = vector.extract_strided_slice %139 {offsets = [0, 16], sizes = [32, 16], strides = [1, 1]} : vector<32x96xf32> to vector<32x16xf32>
    %166 = vector.extract_strided_slice %139 {offsets = [0, 72], sizes = [32, 8], strides = [1, 1]} : vector<32x96xf32> to vector<32x8xf32>
    %cst_82 = arith.constant dense<0.000000e+00> : vector<32x32xf32>
    %167 = tpu.matmul %164, %165, %cst_82 {dimension_numbers = #tpu.dot_dimension_numbers<[1], [1], [0], [0], [0, 0, 1, 0], [], []>} : vector<32x16xf32>, vector<32x16xf32>, vector<32x32xf32> -> vector<32x32xf32>
    %168 = arith.addf %167, %5 : vector<32x32xf32>
    %cst_83 = arith.constant dense<0xFF800000> : vector<32xf32>
    %169 = vector.multi_reduction <maximumf>, %168, %cst_83 [1] : vector<32x32xf32> to vector<32xf32>
    %170 = vector.shape_cast %169 : vector<32xf32> to vector<32x1xf32>
    %171 = vector.broadcast %170 : vector<32x1xf32> to vector<32x32xf32>
    %172 = arith.subf %168, %171 : vector<32x32xf32>
    %173 = math.exp %172 : vector<32x32xf32>
    %cst_84 = arith.constant dense<0.000000e+00> : vector<32xf32>
    %174 = vector.multi_reduction <add>, %173, %cst_84 [1] : vector<32x32xf32> to vector<32xf32>
    %175 = vector.shape_cast %174 : vector<32xf32> to vector<32x1xf32>
    %176 = tpu.reciprocal %175 {approx = true} : vector<32x1xf32> -> vector<32x1xf32>
    %177 = vector.broadcast %176 : vector<32x1xf32> to vector<32x32xf32>
    %178 = arith.mulf %173, %177 : vector<32x32xf32>
    %cst_85 = arith.constant dense<0.000000e+00> : vector<32x8xf32>
    %179 = tpu.matmul %178, %166, %cst_85 {dimension_numbers = #tpu.dot_dimension_numbers<[1], [0], [0], [1], [0, 0, 1, 1], [], []>} : vector<32x32xf32>, vector<32x8xf32>, vector<32x8xf32> -> vector<32x8xf32>
    %180 = vector.extract_strided_slice %140 {offsets = [8, 0], sizes = [8, 32], strides = [1, 1]} : vector<32x32xf32> to vector<8x32xf32>
    %cst_86 = arith.constant dense<0.000000e+00> : vector<32x32xf32>
    %181 = tpu.matmul %179, %180, %cst_86 {dimension_numbers = #tpu.dot_dimension_numbers<[1], [0], [0], [1], [0, 0, 1, 1], [], []>} : vector<32x8xf32>, vector<8x32xf32>, vector<32x32xf32> -> vector<32x32xf32>
    %182 = arith.addf %161, %181 : vector<32x32xf32>
    %183 = vector.extract_strided_slice %134 {offsets = [0, 32], sizes = [32, 16], strides = [1, 1]} : vector<32x64xf32> to vector<32x16xf32>
    %cst_87 = arith.constant 2.500000e-01 : f32
    %184 = vector.broadcast %cst_87 : f32 to vector<32x16xf32>
    %185 = arith.mulf %183, %184 : vector<32x16xf32>
    %186 = vector.extract_strided_slice %139 {offsets = [0, 32], sizes = [32, 16], strides = [1, 1]} : vector<32x96xf32> to vector<32x16xf32>
    %187 = vector.extract_strided_slice %139 {offsets = [0, 80], sizes = [32, 8], strides = [1, 1]} : vector<32x96xf32> to vector<32x8xf32>
    %cst_88 = arith.constant dense<0.000000e+00> : vector<32x32xf32>
    %188 = tpu.matmul %185, %186, %cst_88 {dimension_numbers = #tpu.dot_dimension_numbers<[1], [1], [0], [0], [0, 0, 1, 0], [], []>} : vector<32x16xf32>, vector<32x16xf32>, vector<32x32xf32> -> vector<32x32xf32>
    %189 = arith.addf %188, %5 : vector<32x32xf32>
    %cst_89 = arith.constant dense<0xFF800000> : vector<32xf32>
    %190 = vector.multi_reduction <maximumf>, %189, %cst_89 [1] : vector<32x32xf32> to vector<32xf32>
    %191 = vector.shape_cast %190 : vector<32xf32> to vector<32x1xf32>
    %192 = vector.broadcast %191 : vector<32x1xf32> to vector<32x32xf32>
    %193 = arith.subf %189, %192 : vector<32x32xf32>
    %194 = math.exp %193 : vector<32x32xf32>
    %cst_90 = arith.constant dense<0.000000e+00> : vector<32xf32>
    %195 = vector.multi_reduction <add>, %194, %cst_90 [1] : vector<32x32xf32> to vector<32xf32>
    %196 = vector.shape_cast %195 : vector<32xf32> to vector<32x1xf32>
    %197 = tpu.reciprocal %196 {approx = true} : vector<32x1xf32> -> vector<32x1xf32>
    %198 = vector.broadcast %197 : vector<32x1xf32> to vector<32x32xf32>
    %199 = arith.mulf %194, %198 : vector<32x32xf32>
    %cst_91 = arith.constant dense<0.000000e+00> : vector<32x8xf32>
    %200 = tpu.matmul %199, %187, %cst_91 {dimension_numbers = #tpu.dot_dimension_numbers<[1], [0], [0], [1], [0, 0, 1, 1], [], []>} : vector<32x32xf32>, vector<32x8xf32>, vector<32x8xf32> -> vector<32x8xf32>
    %201 = vector.extract_strided_slice %140 {offsets = [16, 0], sizes = [8, 32], strides = [1, 1]} : vector<32x32xf32> to vector<8x32xf32>
    %cst_92 = arith.constant dense<0.000000e+00> : vector<32x32xf32>
    %202 = tpu.matmul %200, %201, %cst_92 {dimension_numbers = #tpu.dot_dimension_numbers<[1], [0], [0], [1], [0, 0, 1, 1], [], []>} : vector<32x8xf32>, vector<8x32xf32>, vector<32x32xf32> -> vector<32x32xf32>
    %203 = arith.addf %182, %202 : vector<32x32xf32>
    %204 = vector.extract_strided_slice %134 {offsets = [0, 48], sizes = [32, 16], strides = [1, 1]} : vector<32x64xf32> to vector<32x16xf32>
    %cst_93 = arith.constant 2.500000e-01 : f32
    %205 = vector.broadcast %cst_93 : f32 to vector<32x16xf32>
    %206 = arith.mulf %204, %205 : vector<32x16xf32>
    %207 = vector.extract_strided_slice %139 {offsets = [0, 48], sizes = [32, 16], strides = [1, 1]} : vector<32x96xf32> to vector<32x16xf32>
    %208 = vector.extract_strided_slice %139 {offsets = [0, 88], sizes = [32, 8], strides = [1, 1]} : vector<32x96xf32> to vector<32x8xf32>
    %cst_94 = arith.constant dense<0.000000e+00> : vector<32x32xf32>
    %209 = tpu.matmul %206, %207, %cst_94 {dimension_numbers = #tpu.dot_dimension_numbers<[1], [1], [0], [0], [0, 0, 1, 0], [], []>} : vector<32x16xf32>, vector<32x16xf32>, vector<32x32xf32> -> vector<32x32xf32>
    %210 = arith.addf %209, %5 : vector<32x32xf32>
    %cst_95 = arith.constant dense<0xFF800000> : vector<32xf32>
    %211 = vector.multi_reduction <maximumf>, %210, %cst_95 [1] : vector<32x32xf32> to vector<32xf32>
    %212 = vector.shape_cast %211 : vector<32xf32> to vector<32x1xf32>
    %213 = vector.broadcast %212 : vector<32x1xf32> to vector<32x32xf32>
    %214 = arith.subf %210, %213 : vector<32x32xf32>
    %215 = math.exp %214 : vector<32x32xf32>
    %cst_96 = arith.constant dense<0.000000e+00> : vector<32xf32>
    %216 = vector.multi_reduction <add>, %215, %cst_96 [1] : vector<32x32xf32> to vector<32xf32>
    %217 = vector.shape_cast %216 : vector<32xf32> to vector<32x1xf32>
    %218 = tpu.reciprocal %217 {approx = true} : vector<32x1xf32> -> vector<32x1xf32>
    %219 = vector.broadcast %218 : vector<32x1xf32> to vector<32x32xf32>
    %220 = arith.mulf %215, %219 : vector<32x32xf32>
    %cst_97 = arith.constant dense<0.000000e+00> : vector<32x8xf32>
    %221 = tpu.matmul %220, %208, %cst_97 {dimension_numbers = #tpu.dot_dimension_numbers<[1], [0], [0], [1], [0, 0, 1, 1], [], []>} : vector<32x32xf32>, vector<32x8xf32>, vector<32x8xf32> -> vector<32x8xf32>
    %222 = vector.extract_strided_slice %140 {offsets = [24, 0], sizes = [8, 32], strides = [1, 1]} : vector<32x32xf32> to vector<8x32xf32>
    %cst_98 = arith.constant dense<0.000000e+00> : vector<32x32xf32>
    %223 = tpu.matmul %221, %222, %cst_98 {dimension_numbers = #tpu.dot_dimension_numbers<[1], [0], [0], [1], [0, 0, 1, 1], [], []>} : vector<32x8xf32>, vector<8x32xf32>, vector<32x32xf32> -> vector<32x32xf32>
    %224 = arith.addf %203, %223 : vector<32x32xf32>
    %225 = vector.broadcast %141 : vector<1x32xf32> to vector<32x32xf32>
    %226 = arith.addf %224, %225 : vector<32x32xf32>
    %227 = arith.addf %123, %226 : vector<32x32xf32>
    %c0_99 = arith.constant 0 : index
    %c0_100 = arith.constant 0 : index
    %228 = vector.load %arg22[%c0_99, %c0_100] : memref<1x32xf32, #tpu.memory_space<vmem>>, vector<1x32xf32>
    %c0_101 = arith.constant 0 : index
    %c0_102 = arith.constant 0 : index
    %229 = vector.load %arg23[%c0_101, %c0_102] : memref<1x32xf32, #tpu.memory_space<vmem>>, vector<1x32xf32>
    %cst_103 = arith.constant dense<0.000000e+00> : vector<32xf32>
    %230 = vector.multi_reduction <add>, %227, %cst_103 [1] : vector<32x32xf32> to vector<32xf32>
    %231 = vector.shape_cast %230 : vector<32xf32> to vector<32x1xf32>
    %cst_104 = arith.constant 3.200000e+01 : f32
    %232 = vector.broadcast %cst_104 : f32 to vector<32x1xf32>
    %233 = arith.divf %231, %232 : vector<32x1xf32>
    %234 = vector.broadcast %233 : vector<32x1xf32> to vector<32x32xf32>
    %235 = arith.subf %227, %234 : vector<32x32xf32>
    %236 = arith.mulf %235, %235 : vector<32x32xf32>
    %cst_105 = arith.constant dense<0.000000e+00> : vector<32xf32>
    %237 = vector.multi_reduction <add>, %236, %cst_105 [1] : vector<32x32xf32> to vector<32xf32>
    %238 = vector.shape_cast %237 : vector<32xf32> to vector<32x1xf32>
    %cst_106 = arith.constant 3.200000e+01 : f32
    %239 = vector.broadcast %cst_106 : f32 to vector<32x1xf32>
    %240 = arith.divf %238, %239 : vector<32x1xf32>
    %cst_107 = arith.constant 9.99999974E-6 : f32
    %241 = vector.broadcast %cst_107 : f32 to vector<32x1xf32>
    %242 = arith.addf %240, %241 : vector<32x1xf32>
    %243 = math.rsqrt %242 : vector<32x1xf32>
    %244 = vector.broadcast %243 : vector<32x1xf32> to vector<32x32xf32>
    %245 = arith.mulf %235, %244 : vector<32x32xf32>
    %246 = vector.broadcast %228 : vector<1x32xf32> to vector<32x32xf32>
    %247 = arith.mulf %245, %246 : vector<32x32xf32>
    %248 = vector.broadcast %229 : vector<1x32xf32> to vector<32x32xf32>
    %249 = arith.addf %247, %248 : vector<32x32xf32>
    %c0_108 = arith.constant 0 : index
    %c0_109 = arith.constant 0 : index
    %250 = vector.load %arg24[%c0_108, %c0_109] : memref<32x128xf32, #tpu.memory_space<vmem>>, vector<32x128xf32>
    %cst_110 = arith.constant dense<0.000000e+00> : vector<32x128xf32>
    %251 = tpu.matmul %249, %250, %cst_110 {dimension_numbers = #tpu.dot_dimension_numbers<[1], [0], [0], [1], [0, 0, 1, 1], [], []>} : vector<32x32xf32>, vector<32x128xf32>, vector<32x128xf32> -> vector<32x128xf32>
    %c0_111 = arith.constant 0 : index
    %c0_112 = arith.constant 0 : index
    %252 = vector.load %arg25[%c0_111, %c0_112] : memref<1x128xf32, #tpu.memory_space<vmem>>, vector<1x128xf32>
    %253 = vector.broadcast %252 : vector<1x128xf32> to vector<32x128xf32>
    %254 = arith.addf %251, %253 : vector<32x128xf32>
    %cst_113 = arith.constant 0.000000e+00 : f32
    %255 = vector.broadcast %cst_113 : f32 to vector<32x128xf32>
    %256 = arith.maximumf %254, %255 : vector<32x128xf32>
    %c0_114 = arith.constant 0 : index
    %c0_115 = arith.constant 0 : index
    %257 = vector.load %arg26[%c0_114, %c0_115] : memref<128x32xf32, #tpu.memory_space<vmem>>, vector<128x32xf32>
    %cst_116 = arith.constant dense<0.000000e+00> : vector<32x32xf32>
    %258 = tpu.matmul %256, %257, %cst_116 {dimension_numbers = #tpu.dot_dimension_numbers<[1], [0], [0], [1], [0, 0, 1, 1], [], []>} : vector<32x128xf32>, vector<128x32xf32>, vector<32x32xf32> -> vector<32x32xf32>
    %259 = arith.addf %249, %258 : vector<32x32xf32>
    %c0_117 = arith.constant 0 : index
    %c0_118 = arith.constant 0 : index
    %260 = vector.load %arg27[%c0_117, %c0_118] : memref<1x32xf32, #tpu.memory_space<vmem>>, vector<1x32xf32>
    %261 = vector.broadcast %260 : vector<1x32xf32> to vector<32x32xf32>
    %262 = arith.addf %259, %261 : vector<32x32xf32>
    %c0_119 = arith.constant 0 : index
    %c0_120 = arith.constant 0 : index
    %263 = vector.load %arg28[%c0_119, %c0_120] : memref<1x32xf32, #tpu.memory_space<vmem>>, vector<1x32xf32>
    %c0_121 = arith.constant 0 : index
    %c0_122 = arith.constant 0 : index
    %264 = vector.load %arg29[%c0_121, %c0_122] : memref<1x32xf32, #tpu.memory_space<vmem>>, vector<1x32xf32>
    %cst_123 = arith.constant dense<0.000000e+00> : vector<32xf32>
    %265 = vector.multi_reduction <add>, %262, %cst_123 [1] : vector<32x32xf32> to vector<32xf32>
    %266 = vector.shape_cast %265 : vector<32xf32> to vector<32x1xf32>
    %cst_124 = arith.constant 3.200000e+01 : f32
    %267 = vector.broadcast %cst_124 : f32 to vector<32x1xf32>
    %268 = arith.divf %266, %267 : vector<32x1xf32>
    %269 = vector.broadcast %268 : vector<32x1xf32> to vector<32x32xf32>
    %270 = arith.subf %262, %269 : vector<32x32xf32>
    %271 = arith.mulf %270, %270 : vector<32x32xf32>
    %cst_125 = arith.constant dense<0.000000e+00> : vector<32xf32>
    %272 = vector.multi_reduction <add>, %271, %cst_125 [1] : vector<32x32xf32> to vector<32xf32>
    %273 = vector.shape_cast %272 : vector<32xf32> to vector<32x1xf32>
    %cst_126 = arith.constant 3.200000e+01 : f32
    %274 = vector.broadcast %cst_126 : f32 to vector<32x1xf32>
    %275 = arith.divf %273, %274 : vector<32x1xf32>
    %cst_127 = arith.constant 9.99999974E-6 : f32
    %276 = vector.broadcast %cst_127 : f32 to vector<32x1xf32>
    %277 = arith.addf %275, %276 : vector<32x1xf32>
    %278 = math.rsqrt %277 : vector<32x1xf32>
    %279 = vector.broadcast %278 : vector<32x1xf32> to vector<32x32xf32>
    %280 = arith.mulf %270, %279 : vector<32x32xf32>
    %281 = vector.broadcast %263 : vector<1x32xf32> to vector<32x32xf32>
    %282 = arith.mulf %280, %281 : vector<32x32xf32>
    %283 = vector.broadcast %264 : vector<1x32xf32> to vector<32x32xf32>
    %284 = arith.addf %282, %283 : vector<32x32xf32>
    %c0_128 = arith.constant 0 : index
    %c0_129 = arith.constant 0 : index
    %285 = vector.load %arg32[%c0_128, %c0_129] : memref<32x32xf32, #tpu.memory_space<vmem>>, vector<32x32xf32>
    tpu.vector_store %arg32[%c0_128, %c0_129], %284 {strides = array<i32>} : memref<32x32xf32, #tpu.memory_space<vmem>>, vector<32x32xf32>,
    %c0_130 = arith.constant 0 : index
    %c0_131 = arith.constant 0 : index
    %286 = vector.load %arg30[%c0_130, %c0_131] : memref<32x128xf32, #tpu.memory_space<vmem>>, vector<32x128xf32>
    %cst_132 = arith.constant dense<0.000000e+00> : vector<32x128xf32>
    %287 = tpu.matmul %284, %286, %cst_132 {dimension_numbers = #tpu.dot_dimension_numbers<[1], [0], [0], [1], [0, 0, 1, 1], [], []>} : vector<32x32xf32>, vector<32x128xf32>, vector<32x128xf32> -> vector<32x128xf32>
    %c0_133 = arith.constant 0 : index
    %c0_134 = arith.constant 0 : index
    %288 = vector.load %arg31[%c0_133, %c0_134] : memref<1x128xf32, #tpu.memory_space<vmem>>, vector<1x128xf32>
    %289 = vector.broadcast %288 : vector<1x128xf32> to vector<32x128xf32>
    %290 = arith.addf %287, %289 : vector<32x128xf32>
    %c0_135 = arith.constant 0 : index
    %c0_136 = arith.constant 0 : index
    %291 = vector.load %arg33[%c0_135, %c0_136] : memref<32x128xf32, #tpu.memory_space<vmem>>, vector<32x128xf32>
    tpu.vector_store %arg33[%c0_135, %c0_136], %290 {strides = array<i32>} : memref<32x128xf32, #tpu.memory_space<vmem>>, vector<32x128xf32>,
    return
  }
  func.func @transform_0(%arg0: i32) -> (i32, i32) {
    %c0_i32 = arith.constant 0 : i32
    %c0_i32_0 = arith.constant 0 : i32
    %c0_i32_1 = arith.constant 0 : i32
    return %c0_i32, %c0_i32_0 : i32, i32
  }
  func.func @transform_1(%arg0: i32) -> (i32, i32) {
    %c0_i32 = arith.constant 0 : i32
    %c0_i32_0 = arith.constant 0 : i32
    %c0_i32_1 = arith.constant 0 : i32
    return %c0_i32, %c0_i32_0 : i32, i32
  }
  func.func @transform_2(%arg0: i32) -> (i32, i32) {
    %c0_i32 = arith.constant 0 : i32
    %c0_i32_0 = arith.constant 0 : i32
    %c0_i32_1 = arith.constant 0 : i32
    return %c0_i32, %c0_i32_0 : i32, i32
  }
  func.func @transform_3(%arg0: i32) -> (i32, i32) {
    %c0_i32 = arith.constant 0 : i32
    %c0_i32_0 = arith.constant 0 : i32
    %c0_i32_1 = arith.constant 0 : i32
    return %c0_i32, %c0_i32_0 : i32, i32
  }
  func.func @transform_4(%arg0: i32) -> (i32, i32) {
    %c0_i32 = arith.constant 0 : i32
    %c0_i32_0 = arith.constant 0 : i32
    %c0_i32_1 = arith.constant 0 : i32
    return %c0_i32, %c0_i32_0 : i32, i32
  }
  func.func @transform_5(%arg0: i32) -> (i32, i32) {
    %c0_i32 = arith.constant 0 : i32
    %c0_i32_0 = arith.constant 0 : i32
    %c0_i32_1 = arith.constant 0 : i32
    return %c0_i32, %c0_i32_0 : i32, i32
  }
  func.func @transform_6(%arg0: i32) -> (i32, i32) {
    %c0_i32 = arith.constant 0 : i32
    %c0_i32_0 = arith.constant 0 : i32
    %c0_i32_1 = arith.constant 0 : i32
    return %c0_i32, %c0_i32_0 : i32, i32
  }
  func.func @transform_7(%arg0: i32) -> (i32, i32) {
    %c0_i32 = arith.constant 0 : i32
    %c0_i32_0 = arith.constant 0 : i32
    %c0_i32_1 = arith.constant 0 : i32
    return %c0_i32, %c0_i32_0 : i32, i32
  }
  func.func @transform_8(%arg0: i32) -> (i32, i32) {
    %c0_i32 = arith.constant 0 : i32
    %c0_i32_0 = arith.constant 0 : i32
    %c0_i32_1 = arith.constant 0 : i32
    return %c0_i32, %c0_i32_0 : i32, i32
  }
  func.func @transform_9(%arg0: i32) -> (i32, i32) {
    %c0_i32 = arith.constant 0 : i32
    %c0_i32_0 = arith.constant 0 : i32
    %c0_i32_1 = arith.constant 0 : i32
    return %c0_i32, %c0_i32_0 : i32, i32
  }
  func.func @transform_10(%arg0: i32) -> (i32, i32) {
    %c0_i32 = arith.constant 0 : i32
    %c0_i32_0 = arith.constant 0 : i32
    %c0_i32_1 = arith.constant 0 : i32
    return %c0_i32, %c0_i32_0 : i32, i32
  }
  func.func @transform_11(%arg0: i32) -> (i32, i32) {
    %c0_i32 = arith.constant 0 : i32
    %c0_i32_0 = arith.constant 0 : i32
    %c0_i32_1 = arith.constant 0 : i32
    return %c0_i32, %c0_i32_0 : i32, i32
  }
  func.func @transform_12(%arg0: i32) -> (i32, i32) {
    %c0_i32 = arith.constant 0 : i32
    %c0_i32_0 = arith.constant 0 : i32
    %c0_i32_1 = arith.constant 0 : i32
    return %c0_i32, %c0_i32_0 : i32, i32
  }
  func.func @transform_13(%arg0: i32) -> (i32, i32) {
    %c0_i32 = arith.constant 0 : i32
    %c0_i32_0 = arith.constant 0 : i32
    %c0_i32_1 = arith.constant 0 : i32
    return %c0_i32, %c0_i32_0 : i32, i32
  }
  func.func @transform_14(%arg0: i32) -> (i32, i32) {
    %c0_i32 = arith.constant 0 : i32
    %c0_i32_0 = arith.constant 0 : i32
    %c0_i32_1 = arith.constant 0 : i32
    return %c0_i32, %c0_i32_0 : i32, i32
  }
  func.func @transform_15(%arg0: i32) -> (i32, i32) {
    %c0_i32 = arith.constant 0 : i32
    %c0_i32_0 = arith.constant 0 : i32
    %c0_i32_1 = arith.constant 0 : i32
    return %c0_i32, %c0_i32_0 : i32, i32
  }
  func.func @transform_16(%arg0: i32) -> (i32, i32) {
    %c0_i32 = arith.constant 0 : i32
    %c0_i32_0 = arith.constant 0 : i32
    %c0_i32_1 = arith.constant 0 : i32
    return %c0_i32, %c0_i32_0 : i32, i32
  }
  func.func @transform_17(%arg0: i32) -> (i32, i32) {
    %c0_i32 = arith.constant 0 : i32
    %c0_i32_0 = arith.constant 0 : i32
    %c0_i32_1 = arith.constant 0 : i32
    return %c0_i32, %c0_i32_0 : i32, i32
  }
  func.func @transform_18(%arg0: i32) -> (i32, i32) {
    %c0_i32 = arith.constant 0 : i32
    %c0_i32_0 = arith.constant 0 : i32
    %c0_i32_1 = arith.constant 0 : i32
    return %c0_i32, %c0_i32_0 : i32, i32
  }
  func.func @transform_19(%arg0: i32) -> (i32, i32) {
    %c0_i32 = arith.constant 0 : i32
    %c0_i32_0 = arith.constant 0 : i32
    %c0_i32_1 = arith.constant 0 : i32
    return %c0_i32, %c0_i32_0 : i32, i32
  }
  func.func @transform_20(%arg0: i32) -> (i32, i32) {
    %c0_i32 = arith.constant 0 : i32
    %c0_i32_0 = arith.constant 0 : i32
    %c0_i32_1 = arith.constant 0 : i32
    return %c0_i32, %c0_i32_0 : i32, i32
  }
  func.func @transform_21(%arg0: i32) -> (i32, i32) {
    %c0_i32 = arith.constant 0 : i32
    %c0_i32_0 = arith.constant 0 : i32
    %c0_i32_1 = arith.constant 0 : i32
    return %c0_i32, %c0_i32_0 : i32, i32
  }
  func.func @transform_22(%arg0: i32) -> (i32, i32) {
    %c0_i32 = arith.constant 0 : i32
    %c0_i32_0 = arith.constant 0 : i32
    %c0_i32_1 = arith.constant 0 : i32
    return %c0_i32, %c0_i32_0 : i32, i32
  }
  func.func @transform_23(%arg0: i32) -> (i32, i32) {
    %c0_i32 = arith.constant 0 : i32
    %c0_i32_0 = arith.constant 0 : i32
    %c0_i32_1 = arith.constant 0 : i32
    return %c0_i32, %c0_i32_0 : i32, i32
  }
  func.func @transform_24(%arg0: i32) -> (i32, i32) {
    %c0_i32 = arith.constant 0 : i32
    %c0_i32_0 = arith.constant 0 : i32
    %c0_i32_1 = arith.constant 0 : i32
    return %c0_i32, %c0_i32_0 : i32, i32
  }
  func.func @transform_25(%arg0: i32) -> (i32, i32) {
    %c0_i32 = arith.constant 0 : i32
    %c0_i32_0 = arith.constant 0 : i32
    %c0_i32_1 = arith.constant 0 : i32
    return %c0_i32, %c0_i32_0 : i32, i32
  }
  func.func @transform_26(%arg0: i32) -> (i32, i32) {
    %c0_i32 = arith.constant 0 : i32
    %c0_i32_0 = arith.constant 0 : i32
    %c0_i32_1 = arith.constant 0 : i32
    return %c0_i32, %c0_i32_0 : i32, i32
  }
  func.func @transform_27(%arg0: i32) -> (i32, i32) {
    %c0_i32 = arith.constant 0 : i32
    %c0_i32_0 = arith.constant 0 : i32
    %c0_i32_1 = arith.constant 0 : i32
    return %c0_i32, %c0_i32_0 : i32, i32
  }
  func.func @transform_28(%arg0: i32) -> (i32, i32) {
    %c0_i32 = arith.constant 0 : i32
    %c0_i32_0 = arith.constant 0 : i32
    %c0_i32_1 = arith.constant 0 : i32
    return %c0_i32, %c0_i32_0 : i32, i32
  }
  func.func @transform_29(%arg0: i32) -> (i32, i32) {
    %c0_i32 = arith.constant 0 : i32
    %c0_i32_0 = arith.constant 0 : i32
    %c0_i32_1 = arith.constant 0 : i32
    return %c0_i32, %c0_i32_0 : i32, i32
  }
  func.func @transform_30(%arg0: i32) -> (i32, i32) {
    %c0_i32 = arith.constant 0 : i32
    %c0_i32_0 = arith.constant 0 : i32
    %c0_i32_1 = arith.constant 0 : i32
    return %c0_i32, %c0_i32_0 : i32, i32
  }
  func.func @transform_31(%arg0: i32) -> (i32, i32) {
    %c0_i32 = arith.constant 0 : i32
    %c0_i32_0 = arith.constant 0 : i32
    %c0_i32_1 = arith.constant 0 : i32
    return %c0_i32, %c0_i32_0 : i32, i32
  }
  func.func @transform_32(%arg0: i32) -> (i32, i32) {
    %c0_i32 = arith.constant 0 : i32
    %c0_i32_0 = arith.constant 0 : i32
    %c0_i32_1 = arith.constant 0 : i32
    return %c0_i32, %c0_i32_0 : i32, i32
  }
}

</mosaic_0001>

<bundles_post_ra>
// kernel: mpa_blocks_forward.1
= control target key start
LH: loop header
LB: loop body
LE: loop exit
PB: predicated region body
PF: predicated region fallthrough
CT: control target
= control target key end

     0   :  { %s5897_s3 = smov 7   ;;  %s5898_s7 = smov 1   ;;  %vm165_vm0 = vcmask 261120   ;;  %vm392_vm1 = vcmask 64512   ;;  %vm2369_vm3 = vcmask 130048   ;;  %s6760_s0 = inlined_call_operand.smem [shape: u32[33], index: -1, kind: input, shape index: {}] }
   0x1   :  { %s4358_s6 = sld [smem:[%s6760_s0 + %s5897_s3]]   ;;  %s5899_s11 = smov 6   ;;  %vm6018_vm2 = vmpackc.low %vm392_vm1, %vm392_vm1 }
   0x2   :  { %s5951_s10 = sld [smem:[%s6760_s0 + %s5898_s7]]   ;;  %s5900_s18 = smov 8   ;;  %vm6388_vm4 = vmpackc.low %vm2369_vm3, %vm2369_vm3 }
   0x3   :  { %s4357_s14 = sld [smem:[%s6760_s0 + %s5899_s11]]   ;;  %s5901_s22 = smov 88  }
   0x4   :  { %s5961_s17 = sld [smem:[%s6760_s0]]   ;;  %s5902_s23 = smov 96  }
   0x5   :  { %s4359_s21 = sld [smem:[%s6760_s0 + %s5900_s18]]   ;;  %s5903_s24 = smov 120  }
   0x6   :  { %s5904_s25 = smov 80   ;;  %s5905_s26 = smov 112  }
   0x7   :  { %v161_v0 = vld [vmem:[%s4358_s6] sm:$0xff]  ;;  %v162_v1 = vld [vmem:[%s4358_s6 + $0x8] sm:$0xff]  ;;  %v163_v2 = vld [vmem:[%s4358_s6 + $0x10] sm:$0xff]  ;;  %s5906_s27 = smov 4   ;;  %s5907_s1 = smov 64  }
   0x8   :  { %v5248_v3 = vpack.c.bf16 %v162_v1, %v161_v0  ;;  %v164_v4 = vld [vmem:[%s4358_s6 + $0x18] sm:$0xff]  ;;  %v137_v5 = vld [vmem:[%s5951_s10] sm:$0xff]  ;;  %v138_v12 = vld [vmem:[%s5951_s10 + $0x8] sm:$0xff]  ;;  %s4355_s30 = sld [smem:[%s6760_s0 + %s5906_s27]]   ;;  %s5908_s2 = smov 56  }
   0x9   :  { %v5252_v6 = vpack.c.bf16 %v164_v4, %v163_v2  ;;  %4818 = vmatprep.mubr.msk.f32.mxu0 %vm165_vm0, %v137_v5  ;;  %v157_v7 = vld [vmem:[%s4357_s14] sm:$0xff]  ;;  %v158_v8 = vld [vmem:[%s4357_s14 + $0x8] sm:$0xff]  ;;  %v159_v10 = vld [vmem:[%s4357_s14 + $0x10] sm:$0xff]  ;;  %s5909_s3 = smov 72   ;;  %s5910_s4 = smov 104  }
   0xa   :  { %5249 = vmatprep.subr.bf16.mxu0 %v5248_v3  ;;  %v5256_v9 = vpack.c.bf16 %v158_v8, %v157_v7  ;;  %v160_v11 = vld [vmem:[%s4357_s14 + $0x18] sm:$0xff]  ;;  %v139_v13 = vld [vmem:[%s5951_s10 + $0x10] sm:$0xff]  ;;  %v133_v16 = vld [vmem:[%s5961_s17] sm:$0xff]  ;;  %s5911_s5 = smov 48   ;;  %s5912_s6 = smov 9  }
   0xb   :  { %5251 = vmatpush3.bf16.msra.mxu0 %v5248_v3  ;;  %v5260_v14 = vpack.c.bf16 %v160_v11, %v159_v10  ;;  %v140_v15 = vld [vmem:[%s5951_s10 + $0x18] sm:$0xff]  ;;  %v134_v17 = vld [vmem:[%s5961_s17 + $0x8] sm:$0xff]  ;;  %v135_v18 = vld [vmem:[%s5961_s17 + $0x10] sm:$0xff]  ;;  %s6222_s9 = sld [smem:[%s6760_s0 + %s5912_s6]]   ;;  %s5913_s11 = smov 40  }
   0xc   :  { %5253 = vmatprep.subr.bf16.mxu0 %v5252_v6  ;;  %v136_v19 = vld [vmem:[%s5961_s17 + $0x18] sm:$0xff]  ;;  %v4392_v20 = vld [vmem:[%s4359_s21] ss:$0 sm:$0xff]  ;;  %s5914_s12 = smov 10   ;;  %s5915_s16 = smov 15  }
   0xd   :  { %s4361_s15 = sld [smem:[%s6760_s0 + %s5914_s12]]   ;;  %s5917_s27 = smov 2  }
   0xe   :  { %v6063_v4 = vld [vmem:[%s4355_s30 + $0x8] sm:$0xff]  ;;  %v6065_v5 = vld [vmem:[%s4355_s30] sm:$0xff]  ;;  %v6070_v11 = vld [vmem:[%s4355_s30 + $0x10] sm:$0xff]  ;;  %s6288_s20 = sld [smem:[%s6760_s0 + %s5915_s16]]   ;;  %s5919_s8 = smov 13  }
   0xf   :  { %5255 = vmatpush3.bf16.msra.mxu0 %v5252_v6  ;;  %s4364_s13 = sld [smem:[%s6760_s0 + %s5919_s8]]   ;;  %s5920_s14 = smov 14  }
  0x10   :  { %5257 = vmatprep.subr.bf16.mxu0 %v5256_v9  ;;  %s6340_s18 = sld [smem:[%s6760_s0 + %s5920_s14]]   ;;  %s5921_s19 = smov 11  }
  0x11   :  { %s4362_s21 = sld [smem:[%s6760_s0 + %s5921_s19]]   ;;  %s5923_s29 = smov 18  }
  0x12   :  { %4819 = vmatmul.mubr.msk.f32.vlgmr.msra.gmra.mrb[0].mxu0 %vm165_vm0, %v138_v12  ;;  %s5928_s16 = smov 23   ;;  %s5936_s19 = smov 28  }
  0x13   :  { %5259 = vmatpush3.bf16.msra.mxu0 %v5256_v9  ;;  %4821 = vmatprep.mubr.msk.f32.mxu0 %vm165_vm0, %v139_v13 }
  0x14   :  { %5261 = vmatprep.subr.bf16.mxu0 %v5260_v14 }
  0x16   :  { %4822 = vmatmul.mubr.msk.f32.gmra.mrb[2].mxu0 %vm165_vm0, %v140_v15 }
  0x17   :  { %5263 = vmatpush3.bf16.msra.mxu0 %v5260_v14  ;;  %4832 = vmatprep.mubr.msk.f32.mxu0 %vm165_vm0, %v133_v16  ;;  %v6073_v14 = vld [vmem:[%s4355_s30 + $0x18] sm:$0xff]  ;;  %s4353_s30 = sld [smem:[%s6760_s0 + %s5917_s27]]   ;;  %s5930_s27 = smov 21  }
  0x1a   :  { %4833 = vmatmul.mubr.msk.f32.vlgmr.msra.gmra.mrb[0].mxu0 %vm165_vm0, %v134_v17 }
  0x1b   :  { %4835 = vmatprep.mubr.msk.f32.mxu0 %vm165_vm0, %v135_v18 }
  0x1e   :  { %4836 = vmatmul.mubr.msk.f32.gmra.mrb[2].mxu0 %vm165_vm0, %v136_v19 }
  0xed   :  { %v4834_v21 = vpop.f32.mrb[0].mxu0 }
  0xee   :  { %v368_v22 = vadd.f32 %v4834_v21, %v4392_v20  ;;  %v341_v23 = vpop.f32.mrb[1].mxu0 }
  0xef   :  { %v367_v24 = vadd.f32 %v4392_v20, %v341_v23 }
  0xf0   :  { %v5994_v32 = vmul.f32 0.35355338, %v368_v22 }
  0xf1   :  { %v4837_v25 = vpop.f32.mrb[2].mxu0  ;;  %v5980_v26 = vpack.i.bf16 %v368_v22, %v367_v24  ;;  %v5982_v27 = vmul.f32 0.35355338, %v367_v24 }
  0xf2   :  { %v370_v28 = vadd.f32 %v4837_v25, %v4392_v20  ;;  %v351_v29 = vpop.f32.mrb[3].mxu0 }
  0xf3   :  { %v369_v30 = vadd.f32 %v4392_v20, %v351_v29  ;;  %5598 = vrot.lane.b32.xlu1 %v5980_v26, %s5901_s22  ;;  %5588 = vrot.lane.b32.xlu0 %v5980_v26, %s5902_s23 }
  0xf4   :  { %4846 = vmatprep.mubr.msk.f32.mxu1 %vm392_vm1, %v5982_v27  ;;  %v5998_v33 = vmul.f32 0.35355338, %v370_v28 }
  0xf5   :  { %v5989_v31 = vpack.i.bf16 %v370_v28, %v369_v30  ;;  %v6000_v34 = vmul.f32 0.35355338, %v369_v30 }
  0xf7   :  { %5603 = vrot.lane.b32.xlu1 %v5989_v31, %s5901_s22  ;;  %5593 = vrot.lane.b32.xlu0 %v5989_v31, %s5902_s23  ;;  %s5922_s22 = smov 12  }
  0xf8   :  { %s4363_s28 = sld [smem:[%s6760_s0 + %s5922_s22]]   ;;  %s5937_s22 = smov 31  }
  0xfb   :  { %653 = vrot.lane.b32.xlu1 %v5994_v32, %s5903_s24  ;;  %651 = vrot.lane.b32.xlu0 %v5982_v27, %s5903_s24 }
  0xff   :  { %657 = vrot.lane.b32.xlu1 %v5998_v33, %s5903_s24  ;;  %655 = vrot.lane.b32.xlu0 %v6000_v34, %s5903_s24 }
 0x103   :  { %5613 = vrot.lane.b32.xlu1 %v5989_v31, %s5904_s25  ;;  %5608 = vrot.lane.b32.xlu0 %v5980_v26, %s5904_s25 }
 0x107   :  { %1117 = vrot.lane.b32.xlu1 %v5994_v32, %s5905_s26  ;;  %1115 = vrot.lane.b32.xlu0 %v5982_v27, %s5905_s26 }
 0x10b   :  { %1121 = vrot.lane.b32.xlu1 %v5998_v33, %s5905_s26  ;;  %1119 = vrot.lane.b32.xlu0 %v6000_v34, %s5905_s26 }
 0x165   :  { %v5589_v35 = vpop.permute.xlu0 %5588  ;;  %v5599_v43 = vpop.permute.xlu1 %5598 }
 0x166   :  { %v5591_v36 = vunpack.i.h.bf16 %v5589_v35  ;;  %v5590_v37 = vunpack.i.l.bf16 %v5589_v35  ;;  %v5601_v45 = vunpack.i.h.bf16 %v5599_v43  ;;  %v5600_v46 = vunpack.i.l.bf16 %v5599_v43 }
 0x168   :  { %v5264_v39 = vpack.c.bf16 %v5591_v36, %v5590_v37  ;;  %v5284_v49 = vpack.c.bf16 %v5601_v45, %v5600_v46 }
 0x169   :  { %v5594_v40 = vpop.permute.xlu0 %5593  ;;  %v5604_v48 = vpop.permute.xlu1 %5603 }
 0x16a   :  { %v5596_v41 = vunpack.i.h.bf16 %v5594_v40  ;;  %v5595_v42 = vunpack.i.l.bf16 %v5594_v40  ;;  %5266 = vmatprep.subr.msk.bf16.mxu1 %vm6018_vm2, %v5264_v39  ;;  %v5606_v51 = vunpack.i.h.bf16 %v5604_v48  ;;  %v5605_v52 = vunpack.i.l.bf16 %v5604_v48 }
 0x16b   :  { %5269 = vmatpush3.bf16.xpose.msk.msra.mxu1 %vm6018_vm2, %v5264_v39 }
 0x16c   :  { %v5270_v44 = vpack.c.bf16 %v5596_v41, %v5595_v42  ;;  %v5290_v54 = vpack.c.bf16 %v5606_v51, %v5605_v52 }
 0x16d   :  { %v652_v47 = vpop.permute.xlu0 %651  ;;  %v654_v53 = vpop.permute.xlu1 %653 }
 0x16e   :  { %5272 = vmatprep.subr.msk.bf16.mxu1 %vm6018_vm2, %v5270_v44 }
 0x171   :  { %v656_v50 = vpop.permute.xlu0 %655  ;;  %v658_v56 = vpop.permute.xlu1 %657 }
 0x173   :  { %5275 = vmatpush3.bf16.xpose.msk.msra.mxu1 %vm6018_vm2, %v5270_v44 }
 0x174   :  { %5286 = vmatprep.subr.msk.bf16.mxu1 %vm6018_vm2, %v5284_v49 }
 0x175   :  { %v5609_v55 = vpop.permute.xlu0 %5608  ;;  %v5614_v60 = vpop.permute.xlu1 %5613 }
 0x176   :  { %v5611_v57 = vunpack.i.h.bf16 %v5609_v55  ;;  %v5610_v58 = vunpack.i.l.bf16 %v5609_v55  ;;  %v5616_v61 = vunpack.i.h.bf16 %v5614_v60  ;;  %v5615_v62 = vunpack.i.l.bf16 %v5614_v60 }
 0x178   :  { %v5304_v59 = vpack.c.bf16 %v5611_v57, %v5610_v58  ;;  %v5310_v63 = vpack.c.bf16 %v5616_v61, %v5615_v62 }
 0x179   :  { %v1116_v0 = vpop.permute.xlu0 %1115  ;;  %v1118_v1 = vpop.permute.xlu1 %1117 }
 0x17a   :  { %4847 = vmatmul.mubr.msk.f32.vlgmr.msra.gmra.mrb[0].mxu1 %vm392_vm1, %v5994_v32 }
 0x17b   :  { %4849 = vmatprep.mubr.msk.f32.mxu1 %vm392_vm1, %v6000_v34  ;;  %5289 = vmatpush3.bf16.xpose.msk.msra.mxu1 %vm6018_vm2, %v5284_v49 }
 0x17c   :  { %5292 = vmatprep.subr.msk.bf16.mxu1 %vm6018_vm2, %v5290_v54 }
 0x17d   :  { %v1120_v2 = vpop.permute.xlu0 %1119  ;;  %v1122_v3 = vpop.permute.xlu1 %1121 }
 0x17e   :  { %4850 = vmatmul.mubr.msk.f32.gmra.mrb[2].mxu1 %vm392_vm1, %v5998_v33 }
 0x17f   :  { %4874 = vmatprep.mubr.msk.f32.mxu1 %vm392_vm1, %v652_v47 }
 0x183   :  { %5295 = vmatpush3.bf16.xpose.msk.msra.mxu1 %vm6018_vm2, %v5290_v54 }
 0x184   :  { %5306 = vmatprep.subr.msk.bf16.mxu1 %vm6018_vm2, %v5304_v59 }
 0x18a   :  { %4875 = vmatmul.mubr.msk.f32.vlgmr.msra.gmra.mrb[4].mxu1 %vm392_vm1, %v654_v53 }
 0x18b   :  { %4877 = vmatprep.mubr.msk.f32.mxu1 %vm392_vm1, %v656_v50  ;;  %5309 = vmatpush3.bf16.xpose.msk.msra.mxu1 %vm6018_vm2, %v5304_v59 }
 0x18c   :  { %5312 = vmatprep.subr.msk.bf16.mxu1 %vm6018_vm2, %v5310_v63 }
 0x18e   :  { %4878 = vmatmul.mubr.msk.f32.gmra.mrb[6].mxu1 %vm392_vm1, %v658_v56 }
 0x18f   :  { %4918 = vmatprep.mubr.msk.f32.mxu1 %vm392_vm1, %v1116_v0 }
 0x193   :  { %5315 = vmatpush3.bf16.xpose.msk.msra.mxu1 %vm6018_vm2, %v5310_v63 }
 0x19a   :  { %4919 = vmatmul.mubr.msk.f32.vlgmr.msra.gmra.mrb[8].mxu1 %vm392_vm1, %v1118_v1 }
 0x19b   :  { %4921 = vmatprep.mubr.msk.f32.mxu1 %vm392_vm1, %v1120_v2 }
 0x19e   :  { %4922 = vmatmul.mubr.msk.f32.gmra.mrb[10].mxu1 %vm392_vm1, %v1122_v3 }
 0x24d   :  { %v4848_v6 = vpop.f32.mrb[0].mxu1 }
 0x24e   :  { %v485_v7 = vadd.f32 %v4848_v6, %v6063_v4  ;;  %v479_v8 = vpop.f32.mrb[1].mxu1 }
 0x24f   :  { %v480_v9 = vadd.f32 %v479_v8, %v6065_v5 }
 0x250   :  { %v501_v10 = vsel %vm165_vm0, %v485_v7, -inf }
 0x251   :  { %502 = vmax.xlane.f32.xlu1 %v501_v10  ;;  %v4851_v12 = vpop.f32.mrb[2].mxu1  ;;  %v498_v13 = vsel %vm165_vm0, %v480_v9, -inf }
 0x252   :  { %499 = vmax.xlane.f32.xlu0 %v498_v13  ;;  %v489_v15 = vpop.f32.mrb[3].mxu1  ;;  %v495_v17 = vadd.f32 %v4851_v12, %v6073_v14 }
 0x253   :  { %v490_v16 = vadd.f32 %v489_v15, %v6070_v11 }
 0x254   :  { %v507_v19 = vsel %vm165_vm0, %v495_v17, -inf }
 0x255   :  { %v504_v18 = vsel %vm165_vm0, %v490_v16, -inf }
 0x256   :  { %505 = vmax.xlane.f32.xlu0 %v504_v18 }
 0x25a   :  { %508 = vmax.xlane.f32.xlu0 %v507_v19 }
 0x25d   :  { %v4876_v20 = vpop.f32.mrb[4].mxu1 }
 0x25e   :  { %v755_v21 = vadd.f32 %v4876_v20, %v6063_v4  ;;  %v749_v22 = vpop.f32.mrb[5].mxu1 }
 0x25f   :  { %v750_v23 = vadd.f32 %v749_v22, %v6065_v5 }
 0x260   :  { %v771_v24 = vsel %vm165_vm0, %v755_v21, -inf }
 0x261   :  { %v4879_v25 = vpop.f32.mrb[6].mxu1  ;;  %772 = vmax.xlane.f32.xlu0 %v771_v24  ;;  %v768_v28 = vsel %vm165_vm0, %v750_v23, -inf }
 0x262   :  { %v765_v29 = vadd.f32 %v4879_v25, %v6073_v14  ;;  %v759_v30 = vpop.f32.mrb[7].mxu1  ;;  %769 = vmax.xlane.f32.xlu1 %v768_v28 }
 0x263   :  { %v6085_v35 = vadd.f32 %v759_v30, %v6070_v11 }
 0x264   :  { %v777_v36 = vsel %vm165_vm0, %v765_v29, -inf }
 0x265   :  { %778 = vmax.xlane.f32.xlu0 %v777_v36  ;;  %v774_v37 = vsel %vm165_vm0, %v6085_v35, -inf }
 0x266   :  { %775 = vmax.xlane.f32.xlu1 %v774_v37 }
 0x26d   :  { %v6090_v39 = vpop.f32.mrb[8].mxu1 }
 0x26e   :  { %v6092_v40 = vpop.f32.mrb[9].mxu1  ;;  %v6165_v37 = vadd.f32 %v6090_v39, %v6063_v4 }
 0x271   :  { %v6094_v41 = vpop.f32.mrb[10].mxu1 }
 0x272   :  { %v6096_v42 = vpop.f32.mrb[11].mxu1 }
 0x273   :  { %v6146_v30 = vadd.f32 %v6096_v42, %v6070_v11 }
 0x277   :  { %5618 = vrot.lane.b32.xlu1 %v5980_v26, %s5907_s1 }
 0x2de   :  { %v503_v43 = vpop.xlane.xlu1 %502 }
 0x2df   :  { %v511_v44 = vsub.f32 %v485_v7, %v503_v43  ;;  %v500_v45 = vpop.xlane.xlu0 %499 }
 0x2e0   :  { %v510_v46 = vsub.f32 %v480_v9, %v500_v45 }
 0x2e1   :  { %v516_v47 = vmul.f32 1.442695, %v511_v44 }
 0x2e2   :  { %v514_v48 = vmul.f32 1.442695, %v510_v46 }
 0x2e3   :  { %5737 = vpow2.f32 %v516_v47  ;;  %v506_v49 = vpop.xlane.xlu0 %505 }
 0x2e4   :  { %5739 = vpow2.f32 %v514_v48  ;;  %v512_v50 = vsub.f32 %v490_v16, %v506_v49 }
 0x2e6   :  { %v518_v51 = vmul.f32 1.442695, %v512_v50 }
 0x2e7   :  { %v509_v52 = vpop.xlane.xlu0 %508 }
 0x2e8   :  { %5741 = vpow2.f32 %v518_v51  ;;  %v513_v53 = vsub.f32 %v495_v17, %v509_v52 }
 0x2ea   :  { %v520_v54 = vmul.f32 1.442695, %v513_v53 }
 0x2ec   :  { %5743 = vpow2.f32 %v520_v54 }
 0x2ed   :  { %v6100_v55 = vpop.eup %5737 }
 0x2ee   :  { %v6102_v56 = vpop.eup %5739  ;;  %v773_v57 = vpop.xlane.xlu0 %772  ;;  %v525_v58 = vsel %vm165_vm0, %v6100_v55, 0.0 }
 0x2ef   :  { %v781_v59 = vsub.f32 %v755_v21, %v773_v57  ;;  %v770_v60 = vpop.xlane.xlu1 %769  ;;  %526 = vadd.xlane.f32.xlu0 %v525_v58  ;;  %v522_v61 = vsel %vm165_vm0, %v6102_v56, 0.0 }
 0x2f0   :  { %v780_v62 = vsub.f32 %v750_v23, %v770_v60  ;;  %523 = vadd.xlane.f32.xlu1 %v522_v61 }
 0x2f1   :  { %v786_v63 = vmul.f32 1.442695, %v781_v59 }
 0x2f2   :  { %v6108_v0 = vpop.eup %5741  ;;  %v784_v1 = vmul.f32 1.442695, %v780_v62  ;;  %v779_v2 = vpop.xlane.xlu0 %778 }
 0x2f3   :  { %5745 = vpow2.f32 %v786_v63  ;;  %v783_v3 = vsub.f32 %v765_v29, %v779_v2  ;;  %v776_v6 = vpop.xlane.xlu1 %775  ;;  %v528_v7 = vsel %vm165_vm0, %v6108_v0, 0.0  ;;  %v6142_v29 = vadd.f32 %v6092_v40, %v6065_v5 }
 0x2f4   :  { %5747 = vpow2.f32 %v784_v1  ;;  %529 = vadd.xlane.f32.xlu1 %v528_v7  ;;  %v782_v23 = vsub.f32 %v6085_v35, %v776_v6  ;;  %v1238_v35 = vsel %vm165_vm0, %v6146_v30, -inf  ;;  %v1235_v40 = vsel %vm165_vm0, %v6165_v37, -inf }
 0x2f5   :  { %v790_v8 = vmul.f32 1.442695, %v783_v3 }
 0x2f6   :  { %v6112_v9 = vpop.eup %5743  ;;  %v788_v24 = vmul.f32 1.442695, %v782_v23 }
 0x2f7   :  { %5749 = vpow2.f32 %v790_v8  ;;  %v5619_v10 = vpop.permute.xlu1 %5618  ;;  %v531_v12 = vsel %vm165_vm0, %v6112_v9, 0.0 }
 0x2f8   :  { %v5621_v13 = vunpack.i.h.bf16 %v5619_v10  ;;  %v5620_v15 = vunpack.i.l.bf16 %v5619_v10  ;;  %532 = vadd.xlane.f32.xlu0 %v531_v12  ;;  %5751 = vpow2.f32 %v788_v24 }
 0x2fa   :  { %v5276_v16 = vpack.c.bf16 %v5621_v13, %v5620_v15 }
 0x2fc   :  { %5277 = vmatprep.subr.bf16.mxu0 %v5276_v16 }
 0x2fd   :  { %v6116_v17 = vpop.eup %5745  ;;  %5279 = vmatpush3.bf16.msra.mxu0 %v5276_v16 }
 0x2fe   :  { %v6118_v18 = vpop.eup %5747  ;;  %v795_v19 = vsel %vm165_vm0, %v6116_v17, 0.0 }
 0x2ff   :  { %796 = vadd.xlane.f32.xlu0 %v795_v19  ;;  %v792_v20 = vsel %vm165_vm0, %v6118_v18, 0.0 }
 0x300   :  { %793 = vadd.xlane.f32.xlu1 %v792_v20 }
 0x301   :  { %v6124_v21 = vpop.eup %5749 }
 0x302   :  { %v801_v22 = vsel %vm165_vm0, %v6124_v21, 0.0  ;;  %v6136_v25 = vpop.eup %5751 }
 0x303   :  { %802 = vadd.xlane.f32.xlu0 %v801_v22  ;;  %v798_v28 = vsel %vm165_vm0, %v6136_v25, 0.0 }
 0x311   :  { %5628 = vrot.lane.b32.xlu1 %v5980_v26, %s5908_s2 }
 0x319   :  { %5623 = vrot.lane.b32.xlu0 %v5989_v31, %s5907_s1 }
 0x31d   :  { %5638 = vrot.lane.b32.xlu0 %v5980_v26, %s5909_s3 }
 0x321   :  { %1486 = vrot.lane.b32.xlu0 %v5982_v27, %s5910_s4  ;;  %v1232_v27 = vsel %vm165_vm0, %v6142_v29, -inf }
 0x325   :  { %1490 = vrot.lane.b32.xlu0 %v6000_v34, %s5910_s4  ;;  %v6154_v34 = vadd.f32 %v6094_v41, %v6073_v14 }
 0x327   :  { %v1241_v36 = vsel %vm165_vm0, %v6154_v34, -inf }
 0x335   :  { %799 = vadd.xlane.f32.xlu1 %v798_v28 }
 0x344   :  { %1233 = vmax.xlane.f32.xlu0 %v1232_v27 }
 0x346   :  { %5633 = vrot.lane.b32.xlu1 %v5989_v31, %s5908_s2 }
 0x348   :  { %1239 = vmax.xlane.f32.xlu0 %v1238_v35 }
 0x34a   :  { %5643 = vrot.lane.b32.xlu1 %v5989_v31, %s5909_s3  ;;  %s5918_s3 = smov 3  }
 0x34b   :  { %s6325_s7 = sld [smem:[%s6760_s0 + %s5918_s3]]   ;;  %s5931_s3 = smov 22  }
 0x34c   :  { %1242 = vmax.xlane.f32.xlu0 %v1241_v36  ;;  %s4373_s6 = sld [smem:[%s6760_s0 + %s5931_s3]]  }
 0x34e   :  { %1488 = vrot.lane.b32.xlu1 %v5994_v32, %s5910_s4 }
 0x352   :  { %1492 = vrot.lane.b32.xlu1 %v5998_v33, %s5910_s4  ;;  %s4369_s4 = sld [smem:[%s6760_s0 + %s5923_s29]]   ;;  %s5938_s29 = smov 30  }
 0x376   :  { %1236 = vmax.xlane.f32.xlu1 %v1235_v40 }
 0x37c   :  { %v527_v42 = vpop.xlane.xlu0 %526 }
 0x37d   :  { %v524_v41 = vpop.xlane.xlu1 %523 }
 0x37e   :  { %5753 = vrcp.f32 %v524_v41 }
 0x37f   :  { %5755 = vrcp.f32 %v527_v42 }
 0x381   :  { %v530_v45 = vpop.xlane.xlu1 %529 }
 0x382   :  { %5757 = vrcp.f32 %v530_v45 }
 0x385   :  { %v533_v44 = vpop.xlane.xlu0 %532 }
 0x386   :  { %5759 = vrcp.f32 %v533_v44 }
 0x388   :  { %v5754_v43 = vpop.eup %5753 }
 0x389   :  { %v538_v46 = vmul.f32 %v5754_v43, %v6102_v56  ;;  %v5756_v54 = vpop.eup %5755 }
 0x38a   :  { %v539_v61 = vmul.f32 %v5756_v54, %v6100_v55 }
 0x38b   :  { %4860 = vmatprep.mubr.msk.f32.mxu0 %vm165_vm0, %v538_v46 }
 0x38c   :  { %v797_v32 = vpop.xlane.xlu0 %796  ;;  %v5758_v58 = vpop.eup %5757 }
 0x38d   :  { %v794_v33 = vpop.xlane.xlu1 %793  ;;  %v540_v2 = vmul.f32 %v5758_v58, %v6108_v0 }
 0x38e   :  { %5761 = vrcp.f32 %v794_v33 }
 0x38f   :  { %5763 = vrcp.f32 %v797_v32 }
 0x390   :  { %v803_v39 = vpop.xlane.xlu0 %802  ;;  %v5760_v63 = vpop.eup %5759 }
 0x391   :  { %v5629_v47 = vpop.permute.xlu1 %5628  ;;  %v541_v55 = vmul.f32 %v5760_v63, %v6112_v9 }
 0x392   :  { %v5631_v49 = vunpack.i.h.bf16 %v5629_v47  ;;  %v5630_v50 = vunpack.i.l.bf16 %v5629_v47 }
 0x394   :  { %v5624_v48 = vpop.permute.xlu0 %5623  ;;  %v5296_v60 = vpack.c.bf16 %v5631_v49, %v5630_v50 }
 0x395   :  { %v5626_v51 = vunpack.i.h.bf16 %v5624_v48  ;;  %v5625_v52 = vunpack.i.l.bf16 %v5624_v48 }
 0x397   :  { %v5280_v53 = vpack.c.bf16 %v5626_v51, %v5625_v52 }
 0x398   :  { %v5639_v57 = vpop.permute.xlu0 %5638  ;;  %v5762_v3 = vpop.eup %5761 }
 0x399   :  { %v5641_v56 = vunpack.i.h.bf16 %v5639_v57  ;;  %v5640_v59 = vunpack.i.l.bf16 %v5639_v57  ;;  %5281 = vmatprep.subr.bf16.mxu0 %v5280_v53  ;;  %v808_v6 = vmul.f32 %v5762_v3, %v6118_v18  ;;  %v5764_v13 = vpop.eup %5763 }
 0x39a   :  { %5283 = vmatpush3.bf16.msra.mxu0 %v5280_v53  ;;  %v809_v18 = vmul.f32 %v5764_v13, %v6116_v17 }
 0x39b   :  { %v5324_v62 = vpack.c.bf16 %v5641_v56, %v5640_v59  ;;  %5297 = vmatprep.subr.bf16.mxu0 %v5296_v60 }
 0x39c   :  { %v1487_v1 = vpop.permute.xlu0 %1486 }
 0x39d   :  { %4861 = vmatmul.mubr.msk.f32.vlgmr.msra.gmra.mrb[4].mxu0 %vm165_vm0, %v539_v61  ;;  %5326 = vmatprep.subr.msk.bf16.mxu1 %vm6018_vm2, %v5324_v62 }
 0x39e   :  { %4954 = vmatprep.mubr.msk.f32.mxu1 %vm392_vm1, %v1487_v1  ;;  %4863 = vmatprep.mubr.msk.f32.mxu0 %vm165_vm0, %v540_v2 }
 0x39f   :  { %5299 = vmatpush3.bf16.msra.mxu0 %v5296_v60  ;;  %5329 = vmatpush3.bf16.xpose.msk.msra.mxu1 %vm6018_vm2, %v5324_v62 }
 0x3a0   :  { %v1491_v20 = vpop.permute.xlu0 %1490 }
 0x3a1   :  { %4864 = vmatmul.mubr.msk.f32.gmra.mrb[6].mxu0 %vm165_vm0, %v541_v55 }
 0x3a2   :  { %4888 = vmatprep.mubr.msk.f32.mxu0 %vm165_vm0, %v808_v6 }
 0x3c2   :  { %v800_v0 = vpop.xlane.xlu1 %799 }
 0x3c3   :  { %5765 = vrcp.f32 %v800_v0 }
 0x3c4   :  { %5767 = vrcp.f32 %v803_v39 }
 0x3c6   :  { %v5634_v7 = vpop.permute.xlu1 %5633 }
 0x3c7   :  { %v5636_v8 = vunpack.i.h.bf16 %v5634_v7  ;;  %v5635_v10 = vunpack.i.l.bf16 %v5634_v7 }
 0x3c9   :  { %v5300_v12 = vpack.c.bf16 %v5636_v8, %v5635_v10 }
 0x3ca   :  { %v5644_v15 = vpop.permute.xlu1 %5643 }
 0x3cb   :  { %v5646_v16 = vunpack.i.h.bf16 %v5644_v15  ;;  %v5645_v19 = vunpack.i.l.bf16 %v5644_v15  ;;  %5301 = vmatprep.subr.bf16.mxu0 %v5300_v12 }
 0x3cc   :  { %5303 = vmatpush3.bf16.msra.mxu0 %v5300_v12 }
 0x3cd   :  { %v5766_v9 = vpop.eup %5765  ;;  %v5330_v22 = vpack.c.bf16 %v5646_v16, %v5645_v19 }
 0x3ce   :  { %v5768_v23 = vpop.eup %5767  ;;  %v810_v24 = vmul.f32 %v5766_v9, %v6136_v25  ;;  %v1489_v35 = vpop.permute.xlu1 %1488 }
 0x3cf   :  { %4889 = vmatmul.mubr.msk.f32.vlgmr.msra.gmra.mrb[8].mxu0 %vm165_vm0, %v809_v18  ;;  %5332 = vmatprep.subr.msk.bf16.mxu1 %vm6018_vm2, %v5330_v22  ;;  %v811_v27 = vmul.f32 %v5768_v23, %v6124_v21 }
 0x3d0   :  { %4891 = vmatprep.mubr.msk.f32.mxu0 %vm165_vm0, %v810_v24  ;;  %5335 = vmatpush3.bf16.xpose.msk.msra.mxu1 %vm6018_vm2, %v5330_v22 }
 0x3d1   :  { %v1234_v28 = vpop.xlane.xlu0 %1233 }
 0x3d2   :  { %v1244_v17 = vsub.f32 %v6142_v29, %v1234_v28  ;;  %v1493_v38 = vpop.permute.xlu1 %1492 }
 0x3d3   :  { %4892 = vmatmul.mubr.msk.f32.gmra.mrb[10].mxu0 %vm165_vm0, %v811_v27 }
 0x3d4   :  { %v1248_v36 = vmul.f32 1.442695, %v1244_v17 }
 0x3d5   :  { %v1240_v25 = vpop.xlane.xlu0 %1239 }
 0x3d6   :  { %5769 = vpow2.f32 %v1248_v36  ;;  %v1246_v40 = vsub.f32 %v6146_v30, %v1240_v25 }
 0x3d7   :  { %4955 = vmatmul.mubr.msk.f32.vlgmr.msra.gmra.mrb[12].mxu1 %vm392_vm1, %v1489_v35  ;;  %v373_v35 = vld [vmem:[%s6222_s9 + $0x10] sm:$0xff] }
 0x3d8   :  { %v1252_v41 = vmul.f32 1.442695, %v1246_v40  ;;  %4957 = vmatprep.mubr.msk.f32.mxu1 %vm392_vm1, %v1491_v20 }
 0x3d9   :  { %v1243_v43 = vpop.xlane.xlu0 %1242 }
 0x3da   :  { %5771 = vpow2.f32 %v1252_v41  ;;  %v1247_v44 = vsub.f32 %v6154_v34, %v1243_v43  ;;  %v372_v34 = vld [vmem:[%s6222_s9 + $0x8] sm:$0xff] }
 0x3db   :  { %4958 = vmatmul.mubr.msk.f32.gmra.mrb[14].mxu1 %vm392_vm1, %v1493_v38  ;;  %4894 = vmatprep.subr.mxu0 %v372_v34 }
 0x3dc   :  { %v1254_v32 = vmul.f32 1.442695, %v1247_v44  ;;  %4895 = vmatpush3.msra.mxu0 %v372_v34 }
 0x3e0   :  { %v6199_v21 = vpop.eup %5769 }
 0x3e1   :  { %v1256_v29 = vsel %vm165_vm0, %v6199_v21, 0.0 }
 0x3e2   :  { %1257 = vadd.xlane.f32.xlu1 %v1256_v29 }
 0x3e4   :  { %v6203_v42 = vpop.eup %5771 }
 0x3e5   :  { %v1262_v30 = vsel %vm165_vm0, %v6203_v42, 0.0 }
 0x3e6   :  { %1263 = vadd.xlane.f32.xlu1 %v1262_v30 }
 0x3f7   :  { %5648 = vrot.lane.b32.xlu1 %v5980_v26, %s5911_s5 }
 0x403   :  { %v1237_v45 = vpop.xlane.xlu1 %1236 }
 0x404   :  { %v1245_v46 = vsub.f32 %v6165_v37, %v1237_v45  ;;  %v371_v37 = vld [vmem:[%s6222_s9] sm:$0xff] }
 0x405   :  { %4902 = vmatprep.subr.mxu0 %v371_v37 }
 0x406   :  { %v1250_v33 = vmul.f32 1.442695, %v1245_v46 }
 0x408   :  { %5773 = vpow2.f32 %v1250_v33 }
 0x409   :  { %5775 = vpow2.f32 %v1254_v32 }
 0x412   :  { %v6211_v39 = vpop.eup %5773 }
 0x413   :  { %v1259_v47 = vsel %vm165_vm0, %v6211_v39, 0.0  ;;  %v6215_v48 = vpop.eup %5775 }
 0x414   :  { %1260 = vadd.xlane.f32.xlu0 %v1259_v47  ;;  %v1265_v49 = vsel %vm165_vm0, %v6215_v48, 0.0 }
 0x418   :  { %1266 = vadd.xlane.f32.xlu0 %v1265_v49 }
 0x42e   :  { %5653 = vrot.lane.b32.xlu0 %v5989_v31, %s5911_s5 }
 0x46f   :  { %v1258_v54 = vpop.xlane.xlu1 %1257 }
 0x470   :  { %v4862_v50 = vpop.f32.mrb[4].mxu0  ;;  %5777 = vrcp.f32 %v1258_v54 }
 0x471   :  { %v632_v51 = vpop.f32.mrb[5].mxu0 }
 0x473   :  { %v1264_v57 = vpop.xlane.xlu1 %1263 }
 0x474   :  { %v4865_v52 = vpop.f32.mrb[6].mxu0 }
 0x475   :  { %v642_v53 = vpop.f32.mrb[7].mxu0 }
 0x477   :  { %v5649_v58 = vpop.permute.xlu1 %5648 }
 0x478   :  { %v5651_v56 = vunpack.i.h.bf16 %v5649_v58  ;;  %v5650_v59 = vunpack.i.l.bf16 %v5649_v58 }
 0x47a   :  { %v5316_v63 = vpack.c.bf16 %v5651_v56, %v5650_v59  ;;  %v5778_v16 = vpop.eup %5777 }
 0x47b   :  { %v1272_v24 = vmul.f32 %v5778_v16, %v6199_v21 }
 0x4a1   :  { %v1261_v60 = vpop.xlane.xlu0 %1260 }
 0x4a2   :  { %v4890_v61 = vpop.f32.mrb[8].mxu0  ;;  %5779 = vrcp.f32 %v1261_v60 }
 0x4a3   :  { %v902_v62 = vpop.f32.mrb[9].mxu0  ;;  %5781 = vrcp.f32 %v1264_v57 }
 0x4a4   :  { %4896 = vmatprep.mubr.msk.f32.mxu0 %vm392_vm1, %v902_v62 }
 0x4a5   :  { %v1267_v1 = vpop.xlane.xlu0 %1266  ;;  %4897 = vmatmul.mubr.msk.f32.vlgmr.msra.gmra.mrb[12].mxu0 %vm392_vm1, %v4890_v61 }
 0x4a6   :  { %4903 = vmatpush3.msra.mxu0 %v371_v37  ;;  %v4893_v2 = vpop.f32.mrb[10].mxu0  ;;  %5783 = vrcp.f32 %v1267_v1 }
 0x4a7   :  { %5317 = vmatprep.subr.bf16.mxu0 %v5316_v63  ;;  %v912_v3 = vpop.f32.mrb[11].mxu0 }
 0x4a8   :  { %4899 = vmatprep.mubr.msk.f32.mxu0 %vm392_vm1, %v912_v3 }
 0x4a9   :  { %v5654_v55 = vpop.permute.xlu0 %5653  ;;  %4900 = vmatmul.mubr.msk.f32.gmra.mrb[14].mxu0 %vm392_vm1, %v4893_v2 }
 0x4aa   :  { %v5656_v6 = vunpack.i.h.bf16 %v5654_v55  ;;  %v5655_v0 = vunpack.i.l.bf16 %v5654_v55  ;;  %4904 = vmatprep.mubr.msk.f32.mxu0 %vm392_vm1, %v632_v51  ;;  %v4956_v7 = vpop.f32.mrb[12].mxu1  ;;  %v374_v55 = vld [vmem:[%s6222_s9 + $0x18] sm:$0xff]  ;;  %s5925_s9 = smov 5  }
 0x4ab   :  { %v1590_v8 = vadd.f32 %v4956_v7, %v6063_v4  ;;  %v1584_v10 = vpop.f32.mrb[13].mxu1  ;;  %s4356_s14 = sld [smem:[%s6760_s0 + %s5925_s9]]  }
 0x4ac   :  { %v5320_v12 = vpack.c.bf16 %v5656_v6, %v5655_v0  ;;  %v1585_v13 = vadd.f32 %v1584_v10, %v6065_v5  ;;  %v5780_v20 = vpop.eup %5779 }
 0x4ad   :  { %4905 = vmatmul.mubr.msk.f32.vlgmr.msra.gmra.mrb[12].mxu0 %vm392_vm1, %v4862_v50  ;;  %v1606_v15 = vsel %vm165_vm0, %v1590_v8, -inf  ;;  %v5782_v5 = vpop.eup %5781  ;;  %v1273_v27 = vmul.f32 %v5780_v20, %v6211_v39 }
 0x4ae   :  { %5319 = vmatpush3.bf16.msra.mxu0 %v5316_v63  ;;  %1607 = vmax.xlane.f32.xlu0 %v1606_v15  ;;  %v4959_v19 = vpop.f32.mrb[14].mxu1  ;;  %v1603_v9 = vsel %vm165_vm0, %v1585_v13, -inf }
 0x4af   :  { %4907 = vmatprep.mubr.msk.f32.mxu0 %vm392_vm1, %v642_v53  ;;  %5321 = vmatprep.subr.bf16.mxu0 %v5320_v12  ;;  %v1600_v18 = vadd.f32 %v4959_v19, %v6073_v14  ;;  %v1594_v4 = vpop.f32.mrb[15].mxu1  ;;  %v4457_v19 = vld [vmem:[%s4361_s15] ss:$0 sm:$0xff] }
 0x4b0   :  { %v1595_v22 = vadd.f32 %v1594_v4, %v6070_v11  ;;  %1604 = vmax.xlane.f32.xlu1 %v1603_v9  ;;  %v5784_v14 = vpop.eup %5783  ;;  %v1274_v11 = vmul.f32 %v5782_v5, %v6203_v42 }
 0x4b1   :  { %4908 = vmatmul.mubr.msk.f32.gmra.mrb[14].mxu0 %vm392_vm1, %v4865_v52  ;;  %v1612_v23 = vsel %vm165_vm0, %v1600_v18, -inf  ;;  %v1275_v17 = vmul.f32 %v5784_v14, %v6215_v48 }
 0x4b2   :  { %5323 = vmatpush3.bf16.msra.mxu0 %v5320_v12  ;;  %1613 = vmax.xlane.f32.xlu0 %v1612_v23  ;;  %v1609_v28 = vsel %vm165_vm0, %v1595_v22, -inf }
 0x4b3   :  { %4932 = vmatprep.mubr.msk.f32.mxu0 %vm165_vm0, %v1272_v24  ;;  %4938 = vmatprep.subr.mxu0 %v373_v35  ;;  %v5890_v24 = vld [vmem:[%s5961_s17] sm:$0xff] }
 0x4b4   :  { %1610 = vmax.xlane.f32.xlu1 %v1609_v28 }
 0x4b5   :  { %4933 = vmatmul.mubr.msk.f32.vlgmr.msra.gmra.mrb[16].mxu0 %vm165_vm0, %v1273_v27 }
 0x4b6   :  { %4935 = vmatprep.mubr.msk.f32.mxu0 %vm165_vm0, %v1274_v11  ;;  %4939 = vmatpush3.msra.mxu0 %v373_v35 }
 0x4b9   :  { %4936 = vmatmul.mubr.msk.f32.gmra.mrb[18].mxu0 %vm165_vm0, %v1275_v17 }
 0x53b   :  { %v1608_v36 = vpop.xlane.xlu0 %1607 }
 0x53c   :  { %v1616_v25 = vsub.f32 %v1590_v8, %v1608_v36  ;;  %v5891_v36 = vld [vmem:[%s5961_s17 + $0x18] sm:$0xff] }
 0x53d   :  { %v1605_v40 = vpop.xlane.xlu1 %1604 }
 0x53e   :  { %v1621_v41 = vmul.f32 1.442695, %v1616_v25  ;;  %v1615_v38 = vsub.f32 %v1585_v13, %v1605_v40  ;;  %v5892_v40 = vld [vmem:[%s5961_s17 + $0x10] sm:$0xff] }
 0x53f   :  { %v1614_v21 = vpop.xlane.xlu0 %1613 }
 0x540   :  { %5785 = vpow2.f32 %v1621_v41  ;;  %v1619_v29 = vmul.f32 1.442695, %v1615_v38  ;;  %v1618_v42 = vsub.f32 %v1600_v18, %v1614_v21 }
 0x541   :  { %v1611_v30 = vpop.xlane.xlu1 %1610 }
 0x542   :  { %5787 = vpow2.f32 %v1619_v29  ;;  %v1625_v43 = vmul.f32 1.442695, %v1618_v42  ;;  %v1617_v44 = vsub.f32 %v1595_v22, %v1611_v30  ;;  %v5889_v22 = vld [vmem:[%s5961_s17 + $0x8] sm:$0xff]  ;;  %v1950_v29 = vld [vmem:[%s6288_s20] sm:$0xff]  ;;  %s5916_s17 = smov 17  }
 0x543   :  { %v1951_v42 = vld [vmem:[%s6288_s20 + $0x8] sm:$0xff]  ;;  %s4368_s24 = sld [smem:[%s6760_s0 + %s5916_s17]]   ;;  %s5929_s17 = smov 25  }
 0x544   :  { %5789 = vpow2.f32 %v1625_v43  ;;  %v1623_v45 = vmul.f32 1.442695, %v1617_v44  ;;  %v5344_v30 = vpack.c.bf16 %v1951_v42, %v1950_v29 }
 0x546   :  { %5791 = vpow2.f32 %v1623_v45 }
 0x54a   :  { %v5786_v46 = vpop.eup %5785 }
 0x54b   :  { %v1630_v32 = vsel %vm165_vm0, %v5786_v46, 0.0 }
 0x54c   :  { %v5788_v33 = vpop.eup %5787  ;;  %1631 = vadd.xlane.f32.xlu0 %v1630_v32 }
 0x54d   :  { %v1627_v39 = vsel %vm165_vm0, %v5788_v33, 0.0 }
 0x54e   :  { %v5790_v47 = vpop.eup %5789  ;;  %1628 = vadd.xlane.f32.xlu1 %v1627_v39 }
 0x54f   :  { %v1636_v48 = vsel %vm165_vm0, %v5790_v47, 0.0 }
 0x550   :  { %v5792_v49 = vpop.eup %5791  ;;  %1637 = vadd.xlane.f32.xlu0 %v1636_v48 }
 0x551   :  { %v1633_v34 = vsel %vm165_vm0, %v5792_v49, 0.0 }
 0x552   :  { %1634 = vadd.xlane.f32.xlu1 %v1633_v34 }
 0x563   :  { %5658 = vrot.lane.b32.xlu1 %v5980_v26, %s5913_s11 }
 0x566   :  { %5663 = vrot.lane.b32.xlu0 %v5989_v31, %s5913_s11 }
 0x588   :  { %v4934_v37 = vpop.f32.mrb[16].mxu0 }
 0x589   :  { %v1366_v50 = vpop.f32.mrb[17].mxu0 }
 0x58a   :  { %4940 = vmatprep.mubr.msk.f32.mxu0 %vm392_vm1, %v1366_v50 }
 0x58b   :  { %4941 = vmatmul.mubr.msk.f32.vlgmr.msra.gmra.mrb[12].mxu0 %vm392_vm1, %v4934_v37 }
 0x58c   :  { %v4937_v51 = vpop.f32.mrb[18].mxu0 }
 0x58d   :  { %v1376_v52 = vpop.f32.mrb[19].mxu0 }
 0x58e   :  { %4943 = vmatprep.mubr.msk.f32.mxu0 %vm392_vm1, %v1376_v52 }
 0x58f   :  { %4944 = vmatmul.mubr.msk.f32.gmra.mrb[14].mxu0 %vm392_vm1, %v4937_v51 }
 0x5d9   :  { %v1632_v53 = vpop.xlane.xlu0 %1631 }
 0x5db   :  { %v1629_v54 = vpop.xlane.xlu1 %1628 }
 0x5dc   :  { %5793 = vrcp.f32 %v1629_v54 }
 0x5dd   :  { %v1638_v57 = vpop.xlane.xlu0 %1637  ;;  %5795 = vrcp.f32 %v1632_v53 }
 0x5df   :  { %v1635_v26 = vpop.xlane.xlu1 %1634 }
 0x5e0   :  { %5797 = vrcp.f32 %v1635_v26 }
 0x5e1   :  { %v5664_v58 = vpop.permute.xlu0 %5663  ;;  %5799 = vrcp.f32 %v1638_v57 }
 0x5e2   :  { %v5666_v56 = vunpack.i.h.bf16 %v5664_v58  ;;  %v5665_v59 = vunpack.i.l.bf16 %v5664_v58 }
 0x5e3   :  { %v5659_v31 = vpop.permute.xlu1 %5658 }
 0x5e4   :  { %v5661_v60 = vunpack.i.h.bf16 %v5659_v31  ;;  %v5660_v61 = vunpack.i.l.bf16 %v5659_v31  ;;  %v5340_v2 = vpack.c.bf16 %v5666_v56, %v5665_v59  ;;  %v1952_v31 = vld [vmem:[%s6288_s20 + $0x10] sm:$0xff]  ;;  %v1953_v56 = vld [vmem:[%s6288_s20 + $0x18] sm:$0xff]  ;;  %s4374_s20 = sld [smem:[%s6760_s0 + %s5928_s16]]  }
 0x5e5   :  { %v5348_v59 = vpack.c.bf16 %v1953_v56, %v1952_v31 }
 0x5e6   :  { %v5794_v62 = vpop.eup %5793  ;;  %v5336_v63 = vpack.c.bf16 %v5661_v60, %v5660_v61  ;;  %v2252_v60 = vld [vmem:[%s4368_s24] sm:$0xff]  ;;  %v2253_v61 = vld [vmem:[%s4368_s24 + $0x8] sm:$0xff] }
 0x5e7   :  { %v1643_v1 = vmul.f32 %v5794_v62, %v5788_v33  ;;  %v5796_v3 = vpop.eup %5795  ;;  %v141_v62 = vld [vmem:[%s4353_s30] sm:$0xff] }
 0x5e8   :  { %5337 = vmatprep.subr.bf16.mxu0 %v5336_v63  ;;  %v1644_v0 = vmul.f32 %v5796_v3, %v5786_v46  ;;  %v2255_v3 = vld [vmem:[%s4368_s24 + $0x18] sm:$0xff] }
 0x5e9   :  { %5339 = vmatpush3.bf16.msra.mxu0 %v5336_v63  ;;  %4968 = vmatprep.mubr.msk.f32.mxu0 %vm165_vm0, %v1643_v1  ;;  %v5368_v63 = vpack.c.bf16 %v2253_v61, %v2252_v60  ;;  %v142_v1 = vld [vmem:[%s4353_s30 + $0x8] sm:$0xff]  ;;  %v4473_v60 = vld [vmem:[%s4369_s4] ss:$0 sm:$0xff]  ;;  %s4381_s4 = sld [smem:[%s6760_s0 + %s5938_s29]]  }
 0x5ea   :  { %5341 = vmatprep.subr.bf16.mxu0 %v5340_v2  ;;  %v5798_v6 = vpop.eup %5797 }
 0x5eb   :  { %v5800_v7 = vpop.eup %5799  ;;  %v1645_v8 = vmul.f32 %v5798_v6, %v5792_v49 }
 0x5ec   :  { %v1646_v10 = vmul.f32 %v5800_v7, %v5790_v47  ;;  %v145_v7 = vld [vmem:[%s6325_s7] sm:$0xff] }
 0x5ed   :  { %5343 = vmatpush3.bf16.msra.mxu0 %v5340_v2  ;;  %v2254_v2 = vld [vmem:[%s4368_s24 + $0x10] sm:$0xff]  ;;  %s6680_s24 = sld [smem:[%s6760_s0 + %s5929_s17]]  }
 0x5ee   :  { %4974 = vmatprep.subr.mxu0 %v374_v55  ;;  %v5372_v6 = vpack.c.bf16 %v2255_v3, %v2254_v2 }
 0x5f0   :  { %4969 = vmatmul.mubr.msk.f32.vlgmr.msra.gmra.mrb[20].mxu0 %vm165_vm0, %v1644_v0  ;;  %v144_v0 = vld [vmem:[%s4353_s30 + $0x18] sm:$0xff] }
 0x5f1   :  { %4971 = vmatprep.mubr.msk.f32.mxu0 %vm165_vm0, %v1645_v8  ;;  %4975 = vmatpush3.msra.mxu0 %v374_v55  ;;  %v143_v55 = vld [vmem:[%s4353_s30 + $0x10] sm:$0xff]  ;;  %v1946_v8 = vld [vmem:[%s4364_s13] sm:$0xff]  ;;  %s4372_s30 = sld [smem:[%s6760_s0 + %s5930_s27]]  }
 0x5f2   :  { %5345 = vmatprep.subr.bf16.mxu0 %v5344_v30 }
 0x5f4   :  { %4972 = vmatmul.mubr.msk.f32.gmra.mrb[22].mxu0 %vm165_vm0, %v1646_v10  ;;  %v1947_v10 = vld [vmem:[%s4364_s13 + $0x8] sm:$0xff] }
 0x6c3   :  { %v4970_v12 = vpop.f32.mrb[20].mxu0 }
 0x6c4   :  { %v1737_v13 = vpop.f32.mrb[21].mxu0 }
 0x6c5   :  { %4976 = vmatprep.mubr.msk.f32.mxu0 %vm392_vm1, %v1737_v13  ;;  %v5352_v13 = vpack.c.bf16 %v1947_v10, %v1946_v8 }
 0x6c6   :  { %4977 = vmatmul.mubr.msk.f32.vlgmr.msra.gmra.mrb[12].mxu0 %vm392_vm1, %v4970_v12  ;;  %v146_v12 = vld [vmem:[%s6325_s7 + $0x8] sm:$0xff] }
 0x6c7   :  { %v4973_v15 = vpop.f32.mrb[22].mxu0  ;;  %5347 = vmatpush3.bf16.msra.mxu0 %v5344_v30  ;;  %5353 = vmatprep.subr.bf16.mxu1 %v5352_v13  ;;  %v4459_v30 = vld [vmem:[%s4363_s28] ss:$0 sm:$0xff]  ;;  %s4382_s28 = sld [smem:[%s6760_s0 + %s5937_s22]]  }
 0x6c8   :  { %v1747_v16 = vpop.f32.mrb[23].mxu0  ;;  %5349 = vmatprep.subr.bf16.mxu0 %v5348_v59  ;;  %5355 = vmatpush3.bf16.msra.mxu1 %v5352_v13 }
 0x6c9   :  { %4979 = vmatprep.mubr.msk.f32.mxu0 %vm392_vm1, %v1747_v16  ;;  %v1949_v16 = vld [vmem:[%s4364_s13 + $0x18] sm:$0xff] }
 0x6ca   :  { %4980 = vmatmul.mubr.msk.f32.gmra.mrb[14].mxu0 %vm392_vm1, %v4973_v15  ;;  %v1948_v15 = vld [vmem:[%s4364_s13 + $0x10] sm:$0xff]  ;;  %s5933_s13 = smov 26  }
 0x6cb   :  { %5351 = vmatpush3.bf16.msra.mxu0 %v5348_v59  ;;  %4990 = vmatprep.mubr.msk.f32.mxu0 %vm165_vm0, %v141_v62 }
 0x6cc   :  { %5369 = vmatprep.subr.bf16.mxu0 %v5368_v63 }
 0x6ce   :  { %4991 = vmatmul.mubr.msk.f32.vlgmr.msra.gmra.mrb[24].mxu0 %vm165_vm0, %v142_v1 }
 0x6cf   :  { %5371 = vmatpush3.bf16.msra.mxu0 %v5368_v63  ;;  %4993 = vmatprep.mubr.msk.f32.mxu0 %vm165_vm0, %v143_v55 }
 0x6d0   :  { %5373 = vmatprep.subr.bf16.mxu0 %v5372_v6 }
 0x6d2   :  { %4994 = vmatmul.mubr.msk.f32.gmra.mrb[26].mxu0 %vm165_vm0, %v144_v0 }
 0x6d3   :  { %5375 = vmatpush3.bf16.msra.mxu0 %v5372_v6  ;;  %5032 = vmatprep.mubr.msk.f32.mxu0 %vm165_vm0, %v145_v7 }
 0x6d6   :  { %5033 = vmatmul.mubr.msk.f32.vlgmr.msra.gmra.mrb[28].mxu0 %vm165_vm0, %v146_v12 }
 0x799   :  { %v4978_v9 = vpop.f32.mrb[12].mxu0 }
 0x79a   :  { %v1864_v18 = vadd.f32 %v4978_v9, %v4457_v19  ;;  %v1834_v4 = vpop.f32.mrb[13].mxu0  ;;  %v5356_v9 = vpack.c.bf16 %v1949_v16, %v1948_v15 }
 0x79b   :  { %v1863_v20 = vadd.f32 %v4457_v19, %v1834_v4  ;;  %v2160_v4 = vld [vmem:[%s6340_s18 + $0x8] sm:$0xff] }
 0x79c   :  { %v1868_v5 = vadd.f32 %v5889_v22, %v1864_v18  ;;  %5357 = vmatprep.subr.bf16.mxu1 %v5356_v9  ;;  %v2159_v18 = vld [vmem:[%s6340_s18] sm:$0xff] }
 0x79d   :  { %v4981_v23 = vpop.f32.mrb[14].mxu0  ;;  %v1867_v28 = vadd.f32 %v5890_v24, %v1863_v20  ;;  %5359 = vmatpush3.bf16.msra.mxu1 %v5356_v9  ;;  %v148_v20 = vld [vmem:[%s6325_s7 + $0x18] sm:$0xff]  ;;  %v5360_v22 = vpack.c.bf16 %v2160_v4, %v2159_v18 }
 0x79e   :  { %v1866_v27 = vadd.f32 %v4981_v23, %v4457_v19  ;;  %v1844_v14 = vpop.f32.mrb[15].mxu0  ;;  %v1876_v11 = vsel %vm165_vm0, %v1868_v5, 0.0 }
 0x79f   :  { %v1865_v17 = vadd.f32 %v4457_v19, %v1844_v14  ;;  %1877 = vadd.xlane.f32.xlu0 %v1876_v11  ;;  %v1873_v35 = vsel %vm165_vm0, %v1867_v28, 0.0  ;;  %v147_v19 = vld [vmem:[%s6325_s7 + $0x10] sm:$0xff]  ;;  %5361 = vmatprep.subr.bf16.mxu1 %v5360_v22  ;;  %s5932_s7 = smov 24  }
 0x7a0   :  { %1874 = vadd.xlane.f32.xlu1 %v1873_v35  ;;  %v1870_v25 = vadd.f32 %v5891_v36, %v1866_v27  ;;  %5035 = vmatprep.mubr.msk.f32.mxu0 %vm165_vm0, %v147_v19  ;;  %s4375_s12 = sld [smem:[%s6760_s0 + %s5932_s7]]  }
 0x7a1   :  { %v1869_v41 = vadd.f32 %v5892_v40, %v1865_v17  ;;  %5036 = vmatmul.mubr.msk.f32.gmra.mrb[30].mxu0 %vm165_vm0, %v148_v20 }
 0x7a2   :  { %v1882_v38 = vsel %vm165_vm0, %v1870_v25, 0.0 }
 0x7a3   :  { %1883 = vadd.xlane.f32.xlu0 %v1882_v38  ;;  %v1879_v21 = vsel %vm165_vm0, %v1869_v41, 0.0  ;;  %v4458_v38 = vld [vmem:[%s4362_s21] ss:$0 sm:$0xff]  ;;  %s4379_s21 = sld [smem:[%s6760_s0 + %s5936_s19]]  }
 0x7a4   :  { %1880 = vadd.xlane.f32.xlu1 %v1879_v21 }
 0x82c   :  { %v1878_v43 = vpop.xlane.xlu0 %1877 }
 0x82d   :  { %v1887_v44 = vmul.f32 0.03125, %v1878_v43  ;;  %v1875_v45 = vpop.xlane.xlu1 %1874 }
 0x82e   :  { %v1886_v46 = vmul.f32 0.03125, %v1875_v45 }
 0x82f   :  { %v6292_v32 = vsub.f32 %v1868_v5, %v1887_v44 }
 0x830   :  { %v6294_v33 = vsub.f32 %v1867_v28, %v1886_v46  ;;  %v1884_v39 = vpop.xlane.xlu0 %1883  ;;  %v2161_v46 = vld [vmem:[%s6340_s18 + $0x10] sm:$0xff] }
 0x831   :  { %v1889_v47 = vmul.f32 0.03125, %v1884_v39  ;;  %v1881_v48 = vpop.xlane.xlu1 %1880  ;;  %v1895_v49 = vmul.f32 %v6292_v32, %v6292_v32  ;;  %v2162_v39 = vld [vmem:[%s6340_s18 + $0x18] sm:$0xff] }
 0x832   :  { %v1888_v34 = vmul.f32 0.03125, %v1881_v48  ;;  %v1894_v37 = vmul.f32 %v6294_v33, %v6294_v33 }
 0x833   :  { %v6300_v50 = vsub.f32 %v1870_v25, %v1889_v47  ;;  %v1901_v51 = vsel %vm165_vm0, %v1895_v49, 0.0 }
 0x834   :  { %v6303_v52 = vsub.f32 %v1869_v41, %v1888_v34  ;;  %1902 = vadd.xlane.f32.xlu0 %v1901_v51  ;;  %v1898_v53 = vsel %vm165_vm0, %v1894_v37, 0.0 }
 0x835   :  { %1899 = vadd.xlane.f32.xlu1 %v1898_v53  ;;  %v1897_v54 = vmul.f32 %v6300_v50, %v6300_v50 }
 0x836   :  { %v1896_v57 = vmul.f32 %v6303_v52, %v6303_v52 }
 0x837   :  { %v1907_v26 = vsel %vm165_vm0, %v1897_v54, 0.0  ;;  %v5894_v54 = vld [vmem:[%s5951_s10 + $0x8] sm:$0xff] }
 0x838   :  { %1908 = vadd.xlane.f32.xlu0 %v1907_v26  ;;  %v1904_v58 = vsel %vm165_vm0, %v1896_v57, 0.0  ;;  %v5895_v57 = vld [vmem:[%s5951_s10 + $0x10] sm:$0xff]  ;;  %v5896_v26 = vld [vmem:[%s5951_s10 + $0x18] sm:$0xff] }
 0x839   :  { %1905 = vadd.xlane.f32.xlu1 %v1904_v58  ;;  %v4992_v58 = vpop.f32.mrb[24].mxu0 }
 0x83a   :  { %v2032_v31 = vpop.f32.mrb[25].mxu0 }
 0x83b   :  { %v4995_v56 = vpop.f32.mrb[26].mxu0 }
 0x83c   :  { %v2042_v59 = vpop.f32.mrb[27].mxu0 }
 0x83d   :  { %v5034_v61 = vpop.f32.mrb[28].mxu0 }
 0x83e   :  { %v2347_v62 = vadd.f32 %v5034_v61, %v4473_v60  ;;  %v2341_v63 = vpop.f32.mrb[29].mxu0 }
 0x83f   :  { %v2342_v1 = vadd.f32 %v4473_v60, %v2341_v63 }
 0x841   :  { %v5376_v3 = vpack.c.bf16 %v2347_v62, %v2342_v1  ;;  %v6392_v55 = vpack.i.bf16 %v2347_v62, %v2342_v1 }
 0x843   :  { %5378 = vmatprep.subr.msk.bf16.mxu0 %vm6388_vm4, %v5376_v3 }
 0x844   :  { %5381 = vmatpush3.bf16.xpose.msk.msra.mxu0 %vm6388_vm4, %v5376_v3 }
 0x874   :  { %v5037_v6 = vpop.f32.mrb[30].mxu0 }
 0x875   :  { %v2357_v0 = vadd.f32 %v5037_v6, %v4473_v60  ;;  %v2351_v7 = vpop.f32.mrb[31].mxu0 }
 0x876   :  { %v2352_v8 = vadd.f32 %v4473_v60, %v2351_v7 }
 0x878   :  { %v5382_v10 = vpack.c.bf16 %v2357_v0, %v2352_v8  ;;  %v6398_v12 = vpack.i.bf16 %v2357_v0, %v2352_v8 }
 0x87a   :  { %5384 = vmatprep.subr.msk.bf16.mxu0 %vm6388_vm4, %v5382_v10 }
 0x87b   :  { %5387 = vmatpush3.bf16.xpose.msk.msra.mxu0 %vm6388_vm4, %v5382_v10 }
 0x8c1   :  { %v1903_v5 = vpop.xlane.xlu0 %1902 }
 0x8c2   :  { %v1911_v23 = vmul.f32 0.03125, %v1903_v5  ;;  %v1900_v24 = vpop.xlane.xlu1 %1899 }
 0x8c3   :  { %v1910_v28 = vmul.f32 0.03125, %v1900_v24 }
 0x8c4   :  { %v1915_v27 = vadd.f32 1e-05, %v1911_v23 }
 0x8c5   :  { %v1914_v14 = vadd.f32 1e-05, %v1910_v28  ;;  %v1909_v11 = vpop.xlane.xlu0 %1908 }
 0x8c6   :  { %5801 = vrsqrt.f32 %v1915_v27  ;;  %v1913_v17 = vmul.f32 0.03125, %v1909_v11  ;;  %v1906_v35 = vpop.xlane.xlu1 %1905 }
 0x8c7   :  { %5803 = vrsqrt.f32 %v1914_v14  ;;  %v1912_v36 = vmul.f32 0.03125, %v1906_v35  ;;  %v6426_v35 = vld [vmem:[%s4356_s14 + $0x8] sm:$0xff] }
 0x8c8   :  { %v1917_v25 = vadd.f32 1e-05, %v1913_v17 }
 0x8c9   :  { %v1916_v40 = vadd.f32 1e-05, %v1912_v36  ;;  %v6428_v36 = vld [vmem:[%s4356_s14] sm:$0xff] }
 0x8ca   :  { %5805 = vrsqrt.f32 %v1917_v25 }
 0x8cb   :  { %5807 = vrsqrt.f32 %v1916_v40 }
 0x8d0   :  { %v5802_v41 = vpop.eup %5801 }
 0x8d1   :  { %v5804_v21 = vpop.eup %5803  ;;  %v1923_v29 = vmul.f32 %v5802_v41, %v6292_v32 }
 0x8d2   :  { %v1922_v42 = vmul.f32 %v5804_v21, %v6294_v33  ;;  %v5364_v33 = vpack.c.bf16 %v2162_v39, %v2161_v46  ;;  %v6432_v21 = vld [vmem:[%s4356_s14 + $0x18] sm:$0xff]  ;;  %v6440_v46 = vld [vmem:[%s4356_s14 + $0x10] sm:$0xff] }
 0x8d3   :  { %v1933_v43 = vmul.f32 %v4458_v38, %v1923_v29 }
 0x8d4   :  { %v5806_v44 = vpop.eup %5805  ;;  %v1932_v45 = vmul.f32 %v4458_v38, %v1922_v42 }
 0x8d5   :  { %v5808_v47 = vpop.eup %5807  ;;  %v1925_v48 = vmul.f32 %v5806_v44, %v6300_v50  ;;  %v6361_v37 = vadd.f32 %v4459_v30, %v1933_v43 }
 0x8d6   :  { %v6358_v49 = vadd.f32 %v4459_v30, %v1932_v45  ;;  %v1924_v34 = vmul.f32 %v5808_v47, %v6303_v52  ;;  %v5893_v52 = vld [vmem:[%s5951_s10] sm:$0xff]  ;;  %s5924_s10 = smov 16  }
 0x8d7   :  { %v1935_v32 = vmul.f32 %v4458_v38, %v1925_v48  ;;  %s4367_s8 = sld [smem:[%s6760_s0 + %s5924_s10]]   ;;  %s5939_s10 = smov 32  }
 0x8d8   :  { %5004 = vmatprep.mubr.msk.f32.mxu1 %vm165_vm0, %v6358_v49  ;;  %v1934_v51 = vmul.f32 %v4458_v38, %v1924_v34 }
 0x8d9   :  { %5005 = vmatmul.mubr.msk.f32.vlgmr.msra.gmra.mrb[16].mxu1 %vm165_vm0, %v6361_v37  ;;  %v6369_v53 = vadd.f32 %v4459_v30, %v1935_v32 }
 0x8da   :  { %5363 = vmatpush3.bf16.msra.mxu1 %v5360_v22  ;;  %v6367_v50 = vadd.f32 %v4459_v30, %v1934_v51 }
 0x8db   :  { %5365 = vmatprep.subr.bf16.mxu1 %v5364_v33 }
 0x8dc   :  { %5007 = vmatprep.mubr.msk.f32.mxu1 %vm165_vm0, %v6367_v50 }
 0x8dd   :  { %5008 = vmatmul.mubr.msk.f32.gmra.mrb[18].mxu1 %vm165_vm0, %v6369_v53  ;;  %v4468_v13 = vld [vmem:[%s4367_s8] ss:$0 sm:$0xff]  ;;  %s4383_s8 = sld [smem:[%s6760_s0 + %s5939_s10]]  }
 0x8de   :  { %5367 = vmatpush3.bf16.msra.mxu1 %v5364_v33  ;;  %5018 = vmatprep.mubr.msk.f32.mxu1 %vm165_vm0, %v5893_v52  ;;  %v5504_v15 = vadd.f32 %v4992_v58, %v4468_v13  ;;  %v5506_v16 = vadd.f32 %v4468_v13, %v2032_v31  ;;  %v5508_v20 = vadd.f32 %v4995_v56, %v4468_v13 }
 0x8df   :  { %v5510_v22 = vadd.f32 %v4468_v13, %v2042_v59 }
 0x8e1   :  { %5019 = vmatmul.mubr.msk.f32.vlgmr.msra.gmra.mrb[16].mxu1 %vm165_vm0, %v5894_v54 }
 0x8e2   :  { %5021 = vmatprep.mubr.msk.f32.mxu1 %vm165_vm0, %v5895_v57 }
 0x8e5   :  { %5022 = vmatmul.mubr.msk.f32.gmra.mrb[18].mxu1 %vm165_vm0, %v5896_v26 }
 0x9b4   :  { %v5020_v19 = vpop.f32.mrb[16].mxu1 }
 0x9b5   :  { %v5505_v9 = vadd.f32 %v5504_v15, %v5020_v19  ;;  %v2229_v18 = vpop.f32.mrb[17].mxu1 }
 0x9b6   :  { %v5507_v4 = vadd.f32 %v5506_v16, %v2229_v18 }
 0x9b7   :  { %v6409_v24 = vmul.f32 0.25, %v5505_v9 }
 0x9b8   :  { %v6407_v5 = vmul.f32 0.25, %v5507_v4  ;;  %v5023_v23 = vpop.f32.mrb[18].mxu1 }
 0x9b9   :  { %v5509_v28 = vadd.f32 %v5508_v20, %v5023_v23  ;;  %v2239_v27 = vpop.f32.mrb[19].mxu1 }
 0x9ba   :  { %v5511_v14 = vadd.f32 %v5510_v22, %v2239_v27  ;;  %5046 = vmatprep.mubr.msk.f32.mxu0 %vm2369_vm3, %v6407_v5 }
 0x9bb   :  { %5047 = vmatmul.mubr.msk.f32.vlgmr.msra.gmra.mrb[32].mxu0 %vm2369_vm3, %v6409_v24  ;;  %v6417_v17 = vmul.f32 0.25, %v5509_v28 }
 0x9bc   :  { %v6415_v11 = vmul.f32 0.25, %v5511_v14 }
 0x9be   :  { %5049 = vmatprep.mubr.msk.f32.mxu0 %vm2369_vm3, %v6415_v11 }
 0x9bf   :  { %5050 = vmatmul.mubr.msk.f32.gmra.mrb[34].mxu0 %vm2369_vm3, %v6417_v17 }
 0xa8e   :  { %v5048_v25 = vpop.f32.mrb[32].mxu0 }
 0xa8f   :  { %v2466_v40 = vadd.f32 %v5048_v25, %v6426_v35  ;;  %v2460_v41 = vpop.f32.mrb[33].mxu0 }
 0xa90   :  { %v2461_v38 = vadd.f32 %v2460_v41, %v6428_v36 }
 0xa91   :  { %v2482_v29 = vsel %vm165_vm0, %v2466_v40, -inf }
 0xa92   :  { %2483 = vmax.xlane.f32.xlu0 %v2482_v29  ;;  %v5051_v42 = vpop.f32.mrb[34].mxu0  ;;  %v2479_v30 = vsel %vm165_vm0, %v2461_v38, -inf }
 0xa93   :  { %v2476_v43 = vadd.f32 %v5051_v42, %v6432_v21  ;;  %2480 = vmax.xlane.f32.xlu1 %v2479_v30  ;;  %v2470_v44 = vpop.f32.mrb[35].mxu0 }
 0xa94   :  { %v2471_v39 = vadd.f32 %v2470_v44, %v6440_v46 }
 0xa95   :  { %v2488_v45 = vsel %vm165_vm0, %v2476_v43, -inf }
 0xa96   :  { %2489 = vmax.xlane.f32.xlu0 %v2488_v45  ;;  %v2485_v47 = vsel %vm165_vm0, %v2471_v39, -inf }
 0xaa4   :  { %5668 = vrot.lane.b32.xlu1 %v6392_v55, %s5907_s1 }
 0xac8   :  { %2486 = vmax.xlane.f32.xlu1 %v2485_v47 }
 0xad9   :  { %5678 = vrot.lane.b32.xlu1 %v6392_v55, %s5905_s26 }
 0xadd   :  { %5683 = vrot.lane.b32.xlu1 %v6398_v12, %s5905_s26 }
 0xb1f   :  { %v2484_v48 = vpop.xlane.xlu0 %2483 }
 0xb20   :  { %v2492_v34 = vsub.f32 %v2466_v40, %v2484_v48  ;;  %v2481_v32 = vpop.xlane.xlu1 %2480 }
 0xb21   :  { %v2491_v33 = vsub.f32 %v2461_v38, %v2481_v32 }
 0xb22   :  { %v2497_v51 = vmul.f32 1.442695, %v2492_v34 }
 0xb23   :  { %v2495_v52 = vmul.f32 1.442695, %v2491_v33  ;;  %v2490_v61 = vpop.xlane.xlu0 %2489 }
 0xb24   :  { %5809 = vpow2.f32 %v2497_v51  ;;  %v5669_v54 = vpop.permute.xlu1 %5668  ;;  %v2494_v62 = vsub.f32 %v2476_v43, %v2490_v61 }
 0xb25   :  { %5811 = vpow2.f32 %v2495_v52  ;;  %v5671_v57 = vunpack.i.h.bf16 %v5669_v54  ;;  %v5670_v26 = vunpack.i.l.bf16 %v5669_v54 }
 0xb26   :  { %v2501_v63 = vmul.f32 1.442695, %v2494_v62 }
 0xb27   :  { %v5388_v58 = vpack.c.bf16 %v5671_v57, %v5670_v26 }
 0xb28   :  { %5813 = vpow2.f32 %v2501_v63 }
 0xb29   :  { %5389 = vmatprep.subr.bf16.mxu1 %v5388_v58 }
 0xb2a   :  { %5391 = vmatpush3.bf16.msra.mxu1 %v5388_v58 }
 0xb2e   :  { %v5810_v31 = vpop.eup %5809 }
 0xb2f   :  { %v5812_v56 = vpop.eup %5811  ;;  %v2506_v59 = vsel %vm165_vm0, %v5810_v31, 0.0 }
 0xb30   :  { %2507 = vadd.xlane.f32.xlu0 %v2506_v59  ;;  %v2503_v60 = vsel %vm165_vm0, %v5812_v56, 0.0 }
 0xb31   :  { %2504 = vadd.xlane.f32.xlu1 %v2503_v60 }
 0xb32   :  { %v5814_v0 = vpop.eup %5813 }
 0xb33   :  { %v2512_v8 = vsel %vm165_vm0, %v5814_v0, 0.0 }
 0xb42   :  { %2634 = vrot.lane.b32.xlu1 %v6409_v24, %s5905_s26 }
 0xb46   :  { %5673 = vrot.lane.b32.xlu0 %v6398_v12, %s5907_s1 }
 0xb55   :  { %v2487_v1 = vpop.xlane.xlu1 %2486 }
 0xb56   :  { %v2493_v3 = vsub.f32 %v2471_v39, %v2487_v1 }
 0xb58   :  { %v2499_v6 = vmul.f32 1.442695, %v2493_v3 }
 0xb59   :  { %v5679_v13 = vpop.permute.xlu1 %5678 }
 0xb5a   :  { %5815 = vpow2.f32 %v2499_v6  ;;  %v5681_v18 = vunpack.i.h.bf16 %v5679_v13  ;;  %v5680_v4 = vunpack.i.l.bf16 %v5679_v13 }
 0xb5c   :  { %v5396_v28 = vpack.c.bf16 %v5681_v18, %v5680_v4 }
 0xb5d   :  { %v5684_v15 = vpop.permute.xlu1 %5683 }
 0xb5e   :  { %v5686_v40 = vunpack.i.h.bf16 %v5684_v15  ;;  %v5685_v41 = vunpack.i.l.bf16 %v5684_v15 }
 0xb60   :  { %v5402_v29 = vpack.c.bf16 %v5686_v40, %v5685_v41 }
 0xb64   :  { %v5816_v7 = vpop.eup %5815 }
 0xb65   :  { %2513 = vadd.xlane.f32.xlu0 %v2512_v8  ;;  %v2509_v10 = vsel %vm165_vm0, %v5816_v7, 0.0 }
 0xb66   :  { %2510 = vadd.xlane.f32.xlu1 %v2509_v10 }
 0xb77   :  { %2638 = vrot.lane.b32.xlu1 %v6417_v17, %s5905_s26 }
 0xb7b   :  { %2632 = vrot.lane.b32.xlu0 %v6407_v5, %s5905_s26  ;;  %5693 = vrot.lane.b32.xlu1 %v6398_v12, %s5902_s23 }
 0xb7f   :  { %2636 = vrot.lane.b32.xlu0 %v6415_v11, %s5905_s26  ;;  %3098 = vrot.lane.b32.xlu1 %v6409_v24, %s5902_s23  ;;  %s5934_s26 = smov 29  }
 0xb83   :  { %5688 = vrot.lane.b32.xlu0 %v6392_v55, %s5902_s23  ;;  %3102 = vrot.lane.b32.xlu1 %v6417_v17, %s5902_s23 }
 0xb87   :  { %3096 = vrot.lane.b32.xlu0 %v6407_v5, %s5902_s23 }
 0xb8b   :  { %3100 = vrot.lane.b32.xlu0 %v6415_v11, %s5902_s23  ;;  %s5926_s23 = smov 19  }
 0xb8c   :  { %s6603_s1 = sld [smem:[%s6760_s0 + %s5926_s23]]  }
 0xbbd   :  { %v2508_v16 = vpop.xlane.xlu0 %2507 }
 0xbbe   :  { %5817 = vrcp.f32 %v2508_v16  ;;  %v2505_v19 = vpop.xlane.xlu1 %2504 }
 0xbbf   :  { %5819 = vrcp.f32 %v2505_v19 }
 0xbc1   :  { %v5674_v9 = vpop.permute.xlu0 %5673 }
 0xbc2   :  { %v5676_v20 = vunpack.i.h.bf16 %v5674_v9  ;;  %v5675_v22 = vunpack.i.l.bf16 %v5674_v9  ;;  %v2635_v42 = vpop.permute.xlu1 %2634 }
 0xbc4   :  { %v5392_v23 = vpack.c.bf16 %v5676_v20, %v5675_v22 }
 0xbc6   :  { %5393 = vmatprep.subr.bf16.mxu1 %v5392_v23 }
 0xbc7   :  { %5395 = vmatpush3.bf16.msra.mxu1 %v5392_v23 }
 0xbc8   :  { %v5818_v27 = vpop.eup %5817  ;;  %5398 = vmatprep.subr.msk.bf16.mxu1 %vm6388_vm4, %v5396_v28 }
 0xbc9   :  { %v5820_v14 = vpop.eup %5819  ;;  %v2520_v38 = vmul.f32 %v5818_v27, %v5810_v31 }
 0xbca   :  { %v2519_v25 = vmul.f32 %v5820_v14, %v5812_v56 }
 0xbcc   :  { %5060 = vmatprep.mubr.msk.f32.mxu1 %vm165_vm0, %v2519_v25 }
 0xbcd   :  { %5061 = vmatmul.mubr.msk.f32.vlgmr.msra.gmra.mrb[20].mxu1 %vm165_vm0, %v2520_v38 }
 0xbd0   :  { %5401 = vmatpush3.bf16.xpose.msk.msra.mxu1 %vm6388_vm4, %v5396_v28 }
 0xbd1   :  { %5404 = vmatprep.subr.msk.bf16.mxu1 %vm6388_vm4, %v5402_v29 }
 0xbd8   :  { %5407 = vmatpush3.bf16.xpose.msk.msra.mxu1 %vm6388_vm4, %v5402_v29 }
 0xbf2   :  { %v2514_v30 = vpop.xlane.xlu0 %2513 }
 0xbf3   :  { %5821 = vrcp.f32 %v2514_v30  ;;  %v2511_v43 = vpop.xlane.xlu1 %2510 }
 0xbf4   :  { %5823 = vrcp.f32 %v2511_v43 }
 0xbf6   :  { %v2633_v44 = vpop.permute.xlu0 %2632 }
 0xbf7   :  { %v2639_v45 = vpop.permute.xlu1 %2638 }
 0xbfa   :  { %v2637_v39 = vpop.permute.xlu0 %2636 }
 0xbfb   :  { %v5694_v32 = vpop.permute.xlu1 %5693 }
 0xbfc   :  { %v5696_v26 = vunpack.i.h.bf16 %v5694_v32  ;;  %v5695_v58 = vunpack.i.l.bf16 %v5694_v32 }
 0xbfd   :  { %v5822_v47 = vpop.eup %5821 }
 0xbfe   :  { %v5824_v48 = vpop.eup %5823  ;;  %v5689_v34 = vpop.permute.xlu0 %5688  ;;  %v2522_v54 = vmul.f32 %v5822_v47, %v5814_v0  ;;  %v5422_v31 = vpack.c.bf16 %v5696_v26, %v5695_v58 }
 0xbff   :  { %v5691_v33 = vunpack.i.h.bf16 %v5689_v34  ;;  %v5690_v51 = vunpack.i.l.bf16 %v5689_v34  ;;  %v2521_v52 = vmul.f32 %v5824_v48, %v5816_v7  ;;  %v3099_v59 = vpop.permute.xlu1 %3098 }
 0xc01   :  { %v5416_v57 = vpack.c.bf16 %v5691_v33, %v5690_v51  ;;  %5063 = vmatprep.mubr.msk.f32.mxu1 %vm165_vm0, %v2521_v52 }
 0xc02   :  { %5064 = vmatmul.mubr.msk.f32.gmra.mrb[22].mxu1 %vm165_vm0, %v2522_v54  ;;  %v3097_v56 = vpop.permute.xlu0 %3096 }
 0xc03   :  { %5074 = vmatprep.mubr.msk.f32.mxu1 %vm2369_vm3, %v2633_v44  ;;  %5418 = vmatprep.subr.msk.bf16.mxu1 %vm6388_vm4, %v5416_v57  ;;  %v3103_v61 = vpop.permute.xlu1 %3102 }
 0xc06   :  { %5075 = vmatmul.mubr.msk.f32.vlgmr.msra.gmra.mrb[24].mxu1 %vm2369_vm3, %v2635_v42  ;;  %v3101_v60 = vpop.permute.xlu0 %3100 }
 0xc07   :  { %5421 = vmatpush3.bf16.xpose.msk.msra.mxu1 %vm6388_vm4, %v5416_v57  ;;  %5077 = vmatprep.mubr.msk.f32.mxu1 %vm2369_vm3, %v2637_v39 }
 0xc08   :  { %5424 = vmatprep.subr.msk.bf16.mxu1 %vm6388_vm4, %v5422_v31 }
 0xc0a   :  { %5078 = vmatmul.mubr.msk.f32.gmra.mrb[26].mxu1 %vm2369_vm3, %v2639_v45 }
 0xc0b   :  { %5118 = vmatprep.mubr.msk.f32.mxu1 %vm2369_vm3, %v3097_v56 }
 0xc0f   :  { %5427 = vmatpush3.bf16.xpose.msk.msra.mxu1 %vm6388_vm4, %v5422_v31 }
 0xc16   :  { %5119 = vmatmul.mubr.msk.f32.vlgmr.msra.gmra.mrb[28].mxu1 %vm2369_vm3, %v3099_v59 }
 0xc17   :  { %5121 = vmatprep.mubr.msk.f32.mxu1 %vm2369_vm3, %v3101_v60 }
 0xc1a   :  { %5122 = vmatmul.mubr.msk.f32.gmra.mrb[30].mxu1 %vm2369_vm3, %v3103_v61 }
 0xca0   :  { %v6502_v62 = vpop.f32.mrb[20].mxu1 }
 0xca1   :  { %v6504_v63 = vpop.f32.mrb[21].mxu1 }
 0xcd5   :  { %v6506_v1 = vpop.f32.mrb[22].mxu1 }
 0xcd6   :  { %v6508_v3 = vpop.f32.mrb[23].mxu1 }
 0xcd9   :  { %v5076_v6 = vpop.f32.mrb[24].mxu1 }
 0xcda   :  { %v2736_v0 = vadd.f32 %v5076_v6, %v6426_v35  ;;  %v2730_v7 = vpop.f32.mrb[25].mxu1 }
 0xcdb   :  { %v2731_v8 = vadd.f32 %v2730_v7, %v6428_v36 }
 0xcdc   :  { %v2752_v10 = vsel %vm165_vm0, %v2736_v0, -inf }
 0xcdd   :  { %2753 = vmax.xlane.f32.xlu1 %v2752_v10  ;;  %v5079_v13 = vpop.f32.mrb[26].mxu1  ;;  %v2749_v15 = vsel %vm165_vm0, %v2731_v8, -inf }
 0xcde   :  { %v2740_v16 = vpop.f32.mrb[27].mxu1  ;;  %2750 = vmax.xlane.f32.xlu0 %v2749_v15  ;;  %v2746_v9 = vadd.f32 %v5079_v13, %v6432_v21 }
 0xcdf   :  { %v2741_v19 = vadd.f32 %v2740_v16, %v6440_v46 }
 0xce0   :  { %v2758_v4 = vsel %vm165_vm0, %v2746_v9, -inf }
 0xce1   :  { %v2755_v18 = vsel %vm165_vm0, %v2741_v19, -inf }
 0xce2   :  { %2756 = vmax.xlane.f32.xlu0 %v2755_v18 }
 0xce6   :  { %2759 = vmax.xlane.f32.xlu0 %v2758_v4 }
 0xce9   :  { %v5120_v20 = vpop.f32.mrb[28].mxu1 }
 0xcea   :  { %v3194_v22 = vpop.f32.mrb[29].mxu1  ;;  %v6551_v57 = vadd.f32 %v5120_v20, %v6426_v35 }
 0xceb   :  { %v6548_v54 = vadd.f32 %v3194_v22, %v6428_v36 }
 0xced   :  { %v5123_v23 = vpop.f32.mrb[30].mxu1 }
 0xcee   :  { %v3204_v28 = vpop.f32.mrb[31].mxu1 }
 0xcef   :  { %v6554_v26 = vadd.f32 %v3204_v28, %v6440_v46 }
 0xd6a   :  { %v2754_v27 = vpop.xlane.xlu1 %2753 }
 0xd6b   :  { %v2762_v14 = vsub.f32 %v2736_v0, %v2754_v27  ;;  %v2751_v25 = vpop.xlane.xlu0 %2750 }
 0xd6c   :  { %v2761_v40 = vsub.f32 %v2731_v8, %v2751_v25 }
 0xd6d   :  { %v2767_v41 = vmul.f32 1.442695, %v2762_v14 }
 0xd6e   :  { %v2765_v38 = vmul.f32 1.442695, %v2761_v40 }
 0xd6f   :  { %5825 = vpow2.f32 %v2767_v41  ;;  %v2757_v29 = vpop.xlane.xlu0 %2756 }
 0xd70   :  { %5827 = vpow2.f32 %v2765_v38  ;;  %v2763_v42 = vsub.f32 %v2741_v19, %v2757_v29 }
 0xd72   :  { %v2769_v30 = vmul.f32 1.442695, %v2763_v42 }
 0xd73   :  { %v2760_v43 = vpop.xlane.xlu0 %2759 }
 0xd74   :  { %5829 = vpow2.f32 %v2769_v30  ;;  %v2764_v44 = vsub.f32 %v2746_v9, %v2760_v43 }
 0xd76   :  { %v2771_v45 = vmul.f32 1.442695, %v2764_v44 }
 0xd78   :  { %5831 = vpow2.f32 %v2771_v45 }
 0xd79   :  { %v6518_v39 = vpop.eup %5825 }
 0xd7a   :  { %v5828_v47 = vpop.eup %5827  ;;  %v2776_v48 = vsel %vm165_vm0, %v6518_v39, 0.0 }
 0xd7b   :  { %2777 = vadd.xlane.f32.xlu0 %v2776_v48  ;;  %v2773_v34 = vsel %vm165_vm0, %v5828_v47, 0.0 }
 0xd7c   :  { %2774 = vadd.xlane.f32.xlu1 %v2773_v34 }
 0xd7e   :  { %v6523_v32 = vpop.eup %5829 }
 0xd7f   :  { %v2779_v33 = vsel %vm165_vm0, %v6523_v32, 0.0 }
 0xd80   :  { %2780 = vadd.xlane.f32.xlu1 %v2779_v33 }
 0xd82   :  { %v6527_v51 = vpop.eup %5831 }
 0xd83   :  { %v2782_v52 = vsel %vm165_vm0, %v6527_v51, 0.0 }
 0xd84   :  { %2783 = vadd.xlane.f32.xlu0 %v2782_v52 }
 0xd91   :  { %5698 = vrot.lane.b32.xlu1 %v6392_v55, %s5908_s2 }
 0xd95   :  { %5708 = vrot.lane.b32.xlu1 %v6392_v55, %s5904_s25 }
 0xd99   :  { %5713 = vrot.lane.b32.xlu1 %v6398_v12, %s5904_s25 }
 0xd9a   :  { %5703 = vrot.lane.b32.xlu0 %v6398_v12, %s5908_s2  ;;  %s5927_s2 = smov 20  }
 0xd9b   :  { %s4371_s15 = sld [smem:[%s6760_s0 + %s5927_s2]]  }
 0xd9d   :  { %3469 = vrot.lane.b32.xlu1 %v6409_v24, %s5904_s25  ;;  %v3213_v24 = vsel %vm165_vm0, %v6548_v54, -inf }
 0xd9e   :  { %3467 = vrot.lane.b32.xlu0 %v6407_v5, %s5904_s25  ;;  %v6559_v5 = vadd.f32 %v5123_v23, %v6432_v21 }
 0xda0   :  { %v3222_v58 = vsel %vm165_vm0, %v6559_v5, -inf }
 0xda1   :  { %3473 = vrot.lane.b32.xlu1 %v6417_v17, %s5904_s25  ;;  %v3216_v17 = vsel %vm165_vm0, %v6551_v57, -inf }
 0xda2   :  { %3471 = vrot.lane.b32.xlu0 %v6415_v11, %s5904_s25  ;;  %v3219_v11 = vsel %vm165_vm0, %v6554_v26, -inf  ;;  %s4377_s25 = sld [smem:[%s6760_s0 + %s5933_s13]]  }
 0xdc1   :  { %3214 = vmax.xlane.f32.xlu0 %v3213_v24 }
 0xdc5   :  { %3217 = vmax.xlane.f32.xlu1 %v3216_v17  ;;  %3220 = vmax.xlane.f32.xlu0 %v3219_v11 }
 0xdc9   :  { %3223 = vmax.xlane.f32.xlu0 %v3222_v58 }
 0xe08   :  { %v2778_v56 = vpop.xlane.xlu0 %2777 }
 0xe09   :  { %v2775_v31 = vpop.xlane.xlu1 %2774 }
 0xe0a   :  { %5833 = vrcp.f32 %v2775_v31 }
 0xe0b   :  { %5835 = vrcp.f32 %v2778_v56 }
 0xe0d   :  { %v2781_v59 = vpop.xlane.xlu1 %2780 }
 0xe0e   :  { %5837 = vrcp.f32 %v2781_v59  ;;  %v2361_v59 = vld [vmem:[%s6603_s1 + $0x8] sm:$0xff] }
 0xe11   :  { %v5699_v60 = vpop.permute.xlu1 %5698  ;;  %v2784_v61 = vpop.xlane.xlu0 %2783 }
 0xe12   :  { %v5701_v6 = vunpack.i.h.bf16 %v5699_v60  ;;  %v5700_v0 = vunpack.i.l.bf16 %v5699_v60  ;;  %5839 = vrcp.f32 %v2784_v61  ;;  %v2360_v60 = vld [vmem:[%s6603_s1] sm:$0xff] }
 0xe14   :  { %v5834_v7 = vpop.eup %5833  ;;  %v5408_v8 = vpack.c.bf16 %v5701_v6, %v5700_v0 }
 0xe15   :  { %v5709_v10 = vpop.permute.xlu1 %5708  ;;  %v5704_v13 = vpop.permute.xlu0 %5703  ;;  %v2789_v15 = vmul.f32 %v5834_v7, %v5828_v47 }
 0xe16   :  { %v5711_v16 = vunpack.i.h.bf16 %v5709_v10  ;;  %v5710_v19 = vunpack.i.l.bf16 %v5709_v10  ;;  %v5706_v9 = vunpack.i.h.bf16 %v5704_v13  ;;  %v5705_v18 = vunpack.i.l.bf16 %v5704_v13  ;;  %5409 = vmatprep.subr.bf16.mxu0 %v5408_v8  ;;  %v5836_v22 = vpop.eup %5835 }
 0xe17   :  { %5411 = vmatpush3.bf16.msra.mxu0 %v5408_v8  ;;  %5088 = vmatprep.mubr.msk.f32.mxu0 %vm165_vm0, %v2789_v15  ;;  %v2790_v40 = vmul.f32 %v5836_v22, %v6518_v39 }
 0xe18   :  { %v5436_v4 = vpack.c.bf16 %v5711_v16, %v5710_v19  ;;  %v5412_v20 = vpack.c.bf16 %v5706_v9, %v5705_v18  ;;  %v5838_v27 = vpop.eup %5837 }
 0xe19   :  { %v5714_v23 = vpop.permute.xlu1 %5713  ;;  %v3468_v28 = vpop.permute.xlu0 %3467  ;;  %v2791_v29 = vmul.f32 %v5838_v27, %v6523_v32 }
 0xe1a   :  { %v5716_v14 = vunpack.i.h.bf16 %v5714_v23  ;;  %v5715_v25 = vunpack.i.l.bf16 %v5714_v23  ;;  %5413 = vmatprep.subr.bf16.mxu0 %v5412_v20  ;;  %5438 = vmatprep.subr.msk.bf16.mxu1 %vm6388_vm4, %v5436_v4 }
 0xe1b   :  { %5154 = vmatprep.mubr.msk.f32.mxu1 %vm2369_vm3, %v3468_v28  ;;  %5415 = vmatpush3.bf16.msra.mxu0 %v5412_v20 }
 0xe1c   :  { %v5442_v41 = vpack.c.bf16 %v5716_v14, %v5715_v25  ;;  %5441 = vmatpush3.bf16.xpose.msk.msra.mxu1 %vm6388_vm4, %v5436_v4  ;;  %v5840_v38 = vpop.eup %5839  ;;  %5094 = vmatprep.subr.mxu0 %v2361_v59 }
 0xe1d   :  { %v2792_v42 = vmul.f32 %v5840_v38, %v6527_v51  ;;  %v3470_v30 = vpop.permute.xlu1 %3469  ;;  %v3472_v43 = vpop.permute.xlu0 %3471 }
 0xe1e   :  { %5089 = vmatmul.mubr.msk.f32.vlgmr.msra.gmra.mrb[36].mxu0 %vm165_vm0, %v2790_v40  ;;  %5444 = vmatprep.subr.msk.bf16.mxu1 %vm6388_vm4, %v5442_v41 }
 0xe1f   :  { %5091 = vmatprep.mubr.msk.f32.mxu0 %vm165_vm0, %v2791_v29  ;;  %5095 = vmatpush3.msra.mxu0 %v2361_v59 }
 0xe20   :  { %5102 = vmatprep.subr.mxu0 %v2360_v60 }
 0xe21   :  { %v3474_v44 = vpop.permute.xlu1 %3473 }
 0xe22   :  { %5092 = vmatmul.mubr.msk.f32.gmra.mrb[38].mxu0 %vm165_vm0, %v2792_v42 }
 0xe24   :  { %5447 = vmatpush3.bf16.xpose.msk.msra.mxu1 %vm6388_vm4, %v5442_v41 }
 0xe2b   :  { %5155 = vmatmul.mubr.msk.f32.vlgmr.msra.gmra.mrb[32].mxu1 %vm2369_vm3, %v3470_v30 }
 0xe2c   :  { %5157 = vmatprep.mubr.msk.f32.mxu1 %vm2369_vm3, %v3472_v43 }
 0xe2f   :  { %5158 = vmatmul.mubr.msk.f32.gmra.mrb[34].mxu1 %vm2369_vm3, %v3474_v44 }
 0xe4e   :  { %v3215_v45 = vpop.xlane.xlu0 %3214 }
 0xe4f   :  { %v3225_v39 = vsub.f32 %v6548_v54, %v3215_v45 }
 0xe51   :  { %v3229_v47 = vmul.f32 1.442695, %v3225_v39 }
 0xe52   :  { %v3218_v48 = vpop.xlane.xlu1 %3217  ;;  %v3221_v34 = vpop.xlane.xlu0 %3220 }
 0xe53   :  { %5841 = vpow2.f32 %v3229_v47  ;;  %v3226_v32 = vsub.f32 %v6551_v57, %v3218_v48  ;;  %v3227_v2 = vsub.f32 %v6554_v26, %v3221_v34 }
 0xe55   :  { %v3231_v33 = vmul.f32 1.442695, %v3226_v32  ;;  %v3233_v51 = vmul.f32 1.442695, %v3227_v2 }
 0xe56   :  { %v3224_v52 = vpop.xlane.xlu0 %3223 }
 0xe57   :  { %5843 = vpow2.f32 %v3231_v33  ;;  %v3228_v24 = vsub.f32 %v6559_v5, %v3224_v52 }
 0xe58   :  { %5845 = vpow2.f32 %v3233_v51 }
 0xe59   :  { %v3235_v17 = vmul.f32 1.442695, %v3228_v24 }
 0xe5b   :  { %5847 = vpow2.f32 %v3235_v17 }
 0xe5d   :  { %v5842_v11 = vpop.eup %5841 }
 0xe5e   :  { %v3237_v54 = vsel %vm165_vm0, %v5842_v11, 0.0 }
 0xe5f   :  { %3238 = vadd.xlane.f32.xlu1 %v3237_v54 }
 0xe61   :  { %v5844_v58 = vpop.eup %5843 }
 0xe62   :  { %v6591_v31 = vpop.eup %5845  ;;  %v3240_v57 = vsel %vm165_vm0, %v5844_v58, 0.0 }
 0xe63   :  { %3241 = vadd.xlane.f32.xlu0 %v3240_v57  ;;  %v3243_v26 = vsel %vm165_vm0, %v6591_v31, 0.0 }
 0xe64   :  { %3244 = vadd.xlane.f32.xlu1 %v3243_v26 }
 0xe65   :  { %v6596_v56 = vpop.eup %5847 }
 0xe66   :  { %v3246_v5 = vsel %vm165_vm0, %v6596_v56, 0.0 }
 0xe67   :  { %3247 = vadd.xlane.f32.xlu0 %v3246_v5 }
 0xe75   :  { %5718 = vrot.lane.b32.xlu1 %v6392_v55, %s5911_s5 }
 0xe7d   :  { %5723 = vrot.lane.b32.xlu0 %v6398_v12, %s5911_s5  ;;  %s4380_s5 = sld [smem:[%s6760_s0 + %s5934_s26]]  }
 0xeec   :  { %v3239_v61 = vpop.xlane.xlu1 %3238 }
 0xeed   :  { %5849 = vrcp.f32 %v3239_v61 }
 0xef0   :  { %v3242_v6 = vpop.xlane.xlu0 %3241 }
 0xef1   :  { %v3245_v0 = vpop.xlane.xlu1 %3244  ;;  %v5090_v7 = vpop.f32.mrb[36].mxu0  ;;  %5851 = vrcp.f32 %v3242_v6 }
 0xef2   :  { %v2883_v8 = vpop.f32.mrb[37].mxu0  ;;  %5853 = vrcp.f32 %v3245_v0 }
 0xef3   :  { %5096 = vmatprep.mubr.msk.f32.mxu0 %vm392_vm1, %v2883_v8 }
 0xef4   :  { %v3248_v10 = vpop.xlane.xlu0 %3247  ;;  %5097 = vmatmul.mubr.msk.f32.vlgmr.msra.gmra.mrb[40].mxu0 %vm392_vm1, %v5090_v7 }
 0xef5   :  { %v5719_v13 = vpop.permute.xlu1 %5718  ;;  %v5093_v15 = vpop.f32.mrb[38].mxu0  ;;  %5103 = vmatpush3.msra.mxu0 %v2360_v60  ;;  %5855 = vrcp.f32 %v3248_v10 }
 0xef6   :  { %v5721_v16 = vunpack.i.h.bf16 %v5719_v13  ;;  %v5720_v19 = vunpack.i.l.bf16 %v5719_v13  ;;  %v2893_v9 = vpop.f32.mrb[39].mxu0 }
 0xef7   :  { %5099 = vmatprep.mubr.msk.f32.mxu0 %vm392_vm1, %v2893_v9  ;;  %v5850_v28 = vpop.eup %5849 }
 0xef8   :  { %v5428_v18 = vpack.c.bf16 %v5721_v16, %v5720_v19  ;;  %v5724_v4 = vpop.permute.xlu0 %5723  ;;  %5100 = vmatmul.mubr.msk.f32.gmra.mrb[42].mxu0 %vm392_vm1, %v5093_v15  ;;  %v3253_v41 = vmul.f32 %v5850_v28, %v5842_v11  ;;  %v2363_v28 = vld [vmem:[%s6603_s1 + $0x18] sm:$0xff] }
 0xef9   :  { %v5726_v20 = vunpack.i.h.bf16 %v5724_v4  ;;  %v5725_v22 = vunpack.i.l.bf16 %v5724_v4  ;;  %5104 = vmatprep.mubr.msk.f32.mxu0 %vm392_vm1, %v6504_v63 }
 0xefa   :  { %5429 = vmatprep.subr.bf16.mxu0 %v5428_v18 }
 0xefb   :  { %v5432_v23 = vpack.c.bf16 %v5726_v20, %v5725_v22  ;;  %v5852_v14 = vpop.eup %5851 }
 0xefc   :  { %5105 = vmatmul.mubr.msk.f32.vlgmr.msra.gmra.mrb[40].mxu0 %vm392_vm1, %v6502_v62  ;;  %v5854_v38 = vpop.eup %5853  ;;  %v3254_v29 = vmul.f32 %v5852_v14, %v5844_v58 }
 0xefd   :  { %5431 = vmatpush3.bf16.msra.mxu0 %v5428_v18  ;;  %5107 = vmatprep.mubr.msk.f32.mxu0 %vm392_vm1, %v6508_v3 }
 0xefe   :  { %5433 = vmatprep.subr.bf16.mxu0 %v5432_v23  ;;  %v5156_v27 = vpop.f32.mrb[32].mxu1 }
 0xeff   :  { %v3571_v25 = vadd.f32 %v5156_v27, %v6426_v35  ;;  %v3565_v40 = vpop.f32.mrb[33].mxu1  ;;  %v5856_v35 = vpop.eup %5855 }
 0xf00   :  { %v3566_v63 = vadd.f32 %v3565_v40, %v6428_v36  ;;  %5108 = vmatmul.mubr.msk.f32.gmra.mrb[42].mxu0 %vm392_vm1, %v6506_v1  ;;  %v3255_v36 = vmul.f32 %v5854_v38, %v6591_v31  ;;  %v3256_v39 = vmul.f32 %v5856_v35, %v6596_v56 }
 0xf01   :  { %5435 = vmatpush3.bf16.msra.mxu0 %v5432_v23  ;;  %v3587_v62 = vsel %vm165_vm0, %v3571_v25, -inf  ;;  %5132 = vmatprep.mubr.msk.f32.mxu0 %vm165_vm0, %v3253_v41 }
 0xf02   :  { %v5159_v3 = vpop.f32.mrb[34].mxu1  ;;  %3588 = vmax.xlane.f32.xlu0 %v3587_v62  ;;  %v3584_v42 = vsel %vm165_vm0, %v3566_v63, -inf }
 0xf03   :  { %v3581_v30 = vadd.f32 %v5159_v3, %v6432_v21  ;;  %v3575_v43 = vpop.f32.mrb[35].mxu1  ;;  %3585 = vmax.xlane.f32.xlu1 %v3584_v42  ;;  %v2362_v21 = vld [vmem:[%s6603_s1 + $0x10] sm:$0xff]  ;;  %v4542_v3 = vld [vmem:[%s4371_s15] ss:$0 sm:$0xff] }
 0xf04   :  { %v3576_v1 = vadd.f32 %v3575_v43, %v6440_v46  ;;  %5133 = vmatmul.mubr.msk.f32.vlgmr.msra.gmra.mrb[44].mxu0 %vm165_vm0, %v3254_v29  ;;  %5138 = vmatprep.subr.mxu0 %v2362_v21 }
 0xf05   :  { %v3593_v44 = vsel %vm165_vm0, %v3581_v30, -inf  ;;  %5135 = vmatprep.mubr.msk.f32.mxu0 %vm165_vm0, %v3255_v36  ;;  %5139 = vmatpush3.msra.mxu0 %v2362_v21 }
 0xf06   :  { %3594 = vmax.xlane.f32.xlu0 %v3593_v44  ;;  %v3590_v45 = vsel %vm165_vm0, %v3576_v1, -inf }
 0xf07   :  { %3591 = vmax.xlane.f32.xlu1 %v3590_v45 }
 0xf08   :  { %5136 = vmatmul.mubr.msk.f32.gmra.mrb[46].mxu0 %vm165_vm0, %v3256_v39 }
 0xf8f   :  { %v3589_v47 = vpop.xlane.xlu0 %3588 }
 0xf90   :  { %v3597_v48 = vsub.f32 %v3571_v25, %v3589_v47  ;;  %v3586_v46 = vpop.xlane.xlu1 %3585 }
 0xf91   :  { %v3596_v34 = vsub.f32 %v3566_v63, %v3586_v46 }
 0xf92   :  { %v3602_v32 = vmul.f32 1.442695, %v3597_v48 }
 0xf93   :  { %v3600_v2 = vmul.f32 1.442695, %v3596_v34  ;;  %v3595_v33 = vpop.xlane.xlu0 %3594 }
 0xf94   :  { %5857 = vpow2.f32 %v3602_v32  ;;  %v3599_v51 = vsub.f32 %v3581_v30, %v3595_v33  ;;  %v3592_v52 = vpop.xlane.xlu1 %3591 }
 0xf95   :  { %5859 = vpow2.f32 %v3600_v2  ;;  %v3598_v24 = vsub.f32 %v3576_v1, %v3592_v52 }
 0xf96   :  { %v3606_v17 = vmul.f32 1.442695, %v3599_v51 }
 0xf97   :  { %v3604_v11 = vmul.f32 1.442695, %v3598_v24 }
 0xf98   :  { %5861 = vpow2.f32 %v3606_v17 }
 0xf99   :  { %5863 = vpow2.f32 %v3604_v11 }
 0xf9e   :  { %v5858_v54 = vpop.eup %5857 }
 0xf9f   :  { %v5860_v58 = vpop.eup %5859  ;;  %v3611_v31 = vsel %vm165_vm0, %v5858_v54, 0.0 }
 0xfa0   :  { %3612 = vadd.xlane.f32.xlu0 %v3611_v31  ;;  %v3608_v57 = vsel %vm165_vm0, %v5860_v58, 0.0 }
 0xfa1   :  { %3609 = vadd.xlane.f32.xlu1 %v3608_v57 }
 0xfa2   :  { %v5862_v26 = vpop.eup %5861 }
 0xfa3   :  { %v5864_v56 = vpop.eup %5863  ;;  %v3617_v5 = vsel %vm165_vm0, %v5862_v26, 0.0 }
 0xfa4   :  { %3618 = vadd.xlane.f32.xlu0 %v3617_v5  ;;  %v3614_v59 = vsel %vm165_vm0, %v5864_v56, 0.0 }
 0xfa5   :  { %3615 = vadd.xlane.f32.xlu1 %v3614_v59 }
 0xfb6   :  { %5728 = vrot.lane.b32.xlu1 %v6392_v55, %s5913_s11 }
 0xfba   :  { %5733 = vrot.lane.b32.xlu0 %v6398_v12, %s5913_s11  ;;  %s5935_s11 = smov 27  }
 0xfbb   :  { %s4378_s18 = sld [smem:[%s6760_s0 + %s5935_s11]]  }
 0xfd7   :  { %v5134_v60 = vpop.f32.mrb[44].mxu0 }
 0xfd8   :  { %v3347_v61 = vpop.f32.mrb[45].mxu0 }
 0xfd9   :  { %5140 = vmatprep.mubr.msk.f32.mxu0 %vm392_vm1, %v3347_v61 }
 0xfda   :  { %5141 = vmatmul.mubr.msk.f32.vlgmr.msra.gmra.mrb[40].mxu0 %vm392_vm1, %v5134_v60 }
 0xfdb   :  { %v5137_v6 = vpop.f32.mrb[46].mxu0 }
 0xfdc   :  { %v3357_v0 = vpop.f32.mrb[47].mxu0 }
 0xfdd   :  { %5143 = vmatprep.mubr.msk.f32.mxu0 %vm392_vm1, %v3357_v0  ;;  %v3927_v0 = vld [vmem:[%s4374_s20 + $0x8] sm:$0xff] }
 0xfde   :  { %5144 = vmatmul.mubr.msk.f32.gmra.mrb[42].mxu0 %vm392_vm1, %v5137_v6  ;;  %v3926_v6 = vld [vmem:[%s4374_s20] sm:$0xff] }
0x102d   :  { %v3613_v7 = vpop.xlane.xlu0 %3612 }
0x102e   :  { %v3610_v8 = vpop.xlane.xlu1 %3609 }
0x102f   :  { %5865 = vrcp.f32 %v3610_v8  ;;  %v3928_v8 = vld [vmem:[%s4374_s20 + $0x10] sm:$0xff] }
0x1030   :  { %5867 = vrcp.f32 %v3613_v7  ;;  %v5456_v7 = vpack.c.bf16 %v3927_v0, %v3926_v6 }
0x1031   :  { %v3619_v10 = vpop.xlane.xlu0 %3618 }
0x1032   :  { %v3616_v55 = vpop.xlane.xlu1 %3615  ;;  %5457 = vmatprep.subr.bf16.mxu1 %v5456_v7 }
0x1033   :  { %5869 = vrcp.f32 %v3616_v55  ;;  %5459 = vmatpush3.bf16.msra.mxu1 %v5456_v7 }
0x1034   :  { %5871 = vrcp.f32 %v3619_v10  ;;  %v3929_v10 = vld [vmem:[%s4374_s20 + $0x18] sm:$0xff] }
0x1035   :  { %v5734_v12 = vpop.permute.xlu0 %5733  ;;  %v5460_v55 = vpack.c.bf16 %v3929_v10, %v3928_v8 }
0x1036   :  { %v5729_v13 = vpop.permute.xlu1 %5728  ;;  %v5736_v15 = vunpack.i.h.bf16 %v5734_v12  ;;  %v5735_v16 = vunpack.i.l.bf16 %v5734_v12  ;;  %v4038_v12 = vld [vmem:[%s6680_s24] sm:$0xff] }
0x1037   :  { %v5731_v19 = vunpack.i.h.bf16 %v5729_v13  ;;  %v5730_v9 = vunpack.i.l.bf16 %v5729_v13  ;;  %5461 = vmatprep.subr.bf16.mxu1 %v5460_v55  ;;  %v4039_v13 = vld [vmem:[%s6680_s24 + $0x8] sm:$0xff] }
0x1038   :  { %v5452_v22 = vpack.c.bf16 %v5736_v15, %v5735_v16  ;;  %5463 = vmatpush3.bf16.msra.mxu1 %v5460_v55  ;;  %v5464_v15 = vpack.c.bf16 %v4039_v13, %v4038_v12 }
0x1039   :  { %v5866_v18 = vpop.eup %5865  ;;  %v5448_v4 = vpack.c.bf16 %v5731_v19, %v5730_v9 }
0x103a   :  { %v3624_v20 = vmul.f32 %v5866_v18, %v5860_v58  ;;  %v5868_v23 = vpop.eup %5867  ;;  %5465 = vmatprep.subr.bf16.mxu1 %v5464_v15 }
0x103b   :  { %5449 = vmatprep.subr.bf16.mxu0 %v5448_v4  ;;  %v3625_v14 = vmul.f32 %v5868_v23, %v5858_v54 }
0x103c   :  { %5451 = vmatpush3.bf16.msra.mxu0 %v5448_v4  ;;  %5168 = vmatprep.mubr.msk.f32.mxu0 %vm165_vm0, %v3624_v20 }
0x103d   :  { %5453 = vmatprep.subr.bf16.mxu0 %v5452_v22  ;;  %v5870_v27 = vpop.eup %5869 }
0x103e   :  { %v5872_v25 = vpop.eup %5871  ;;  %v3626_v40 = vmul.f32 %v5870_v27, %v5864_v56 }
0x103f   :  { %v3627_v41 = vmul.f32 %v5872_v25, %v5862_v26 }
0x1040   :  { %5455 = vmatpush3.bf16.msra.mxu0 %v5452_v22 }
0x1041   :  { %5174 = vmatprep.subr.mxu0 %v2363_v28 }
0x1043   :  { %5169 = vmatmul.mubr.msk.f32.vlgmr.msra.gmra.mrb[48].mxu0 %vm165_vm0, %v3625_v14 }
0x1044   :  { %5171 = vmatprep.mubr.msk.f32.mxu0 %vm165_vm0, %v3626_v40  ;;  %5175 = vmatpush3.msra.mxu0 %v2363_v28 }
0x1047   :  { %5172 = vmatmul.mubr.msk.f32.gmra.mrb[50].mxu0 %vm165_vm0, %v3627_v41  ;;  %v4543_v41 = vld [vmem:[%s4372_s30] ss:$0 sm:$0xff] }
0x1116   :  { %v5170_v38 = vpop.f32.mrb[48].mxu0 }
0x1117   :  { %v3718_v63 = vpop.f32.mrb[49].mxu0 }
0x1118   :  { %5176 = vmatprep.mubr.msk.f32.mxu0 %vm392_vm1, %v3718_v63 }
0x1119   :  { %5177 = vmatmul.mubr.msk.f32.vlgmr.msra.gmra.mrb[40].mxu0 %vm392_vm1, %v5170_v38 }
0x111a   :  { %v5173_v62 = vpop.f32.mrb[50].mxu0 }
0x111b   :  { %v3728_v29 = vpop.f32.mrb[51].mxu0 }
0x111c   :  { %5179 = vmatprep.mubr.msk.f32.mxu0 %vm392_vm1, %v3728_v29  ;;  %v4544_v29 = vld [vmem:[%s4373_s6] ss:$0 sm:$0xff] }
0x111d   :  { %5180 = vmatmul.mubr.msk.f32.gmra.mrb[42].mxu0 %vm392_vm1, %v5173_v62 }
0x11ec   :  { %v5178_v42 = vpop.f32.mrb[40].mxu0 }
0x11ed   :  { %v3845_v35 = vadd.f32 %v5178_v42, %v4542_v3  ;;  %v3815_v30 = vpop.f32.mrb[41].mxu0 }
0x11ee   :  { %v3844_v43 = vadd.f32 %v4542_v3, %v3815_v30  ;;  %v4040_v30 = vld [vmem:[%s6680_s24 + $0x10] sm:$0xff] }
0x11ef   :  { %v3849_v36 = vadd.f32 %v3845_v35, %v6361_v37 }
0x11f0   :  { %v3848_v1 = vadd.f32 %v3844_v43, %v6358_v49  ;;  %v5181_v44 = vpop.f32.mrb[42].mxu0  ;;  %v4041_v43 = vld [vmem:[%s6680_s24 + $0x18] sm:$0xff] }
0x11f1   :  { %v3847_v45 = vadd.f32 %v5181_v44, %v4542_v3  ;;  %v3825_v39 = vpop.f32.mrb[43].mxu0  ;;  %v3857_v21 = vsel %vm165_vm0, %v3849_v36, 0.0 }
0x11f2   :  { %v3846_v47 = vadd.f32 %v4542_v3, %v3825_v39  ;;  %3858 = vadd.xlane.f32.xlu0 %v3857_v21  ;;  %v3854_v48 = vsel %vm165_vm0, %v3848_v1, 0.0 }
0x11f3   :  { %v3851_v46 = vadd.f32 %v3847_v45, %v6369_v53  ;;  %3855 = vadd.xlane.f32.xlu1 %v3854_v48 }
0x11f4   :  { %v3850_v34 = vadd.f32 %v3846_v47, %v6367_v50  ;;  %v5468_v47 = vpack.c.bf16 %v4041_v43, %v4040_v30 }
0x11f5   :  { %v3863_v32 = vsel %vm165_vm0, %v3851_v46, 0.0 }
0x11f6   :  { %3864 = vadd.xlane.f32.xlu0 %v3863_v32  ;;  %v3860_v37 = vsel %vm165_vm0, %v3850_v34, 0.0 }
0x11f7   :  { %3861 = vadd.xlane.f32.xlu1 %v3860_v37 }
0x127f   :  { %v3859_v49 = vpop.xlane.xlu0 %3858 }
0x1280   :  { %v3867_v2 = vmul.f32 0.03125, %v3859_v49  ;;  %v3856_v33 = vpop.xlane.xlu1 %3855 }
0x1281   :  { %v3866_v51 = vmul.f32 0.03125, %v3856_v33  ;;  %v4045_v33 = vld [vmem:[%s6680_s24 + $0x38] sm:$0xff] }
0x1282   :  { %v3871_v52 = vsub.f32 %v3849_v36, %v3867_v2  ;;  %v4044_v2 = vld [vmem:[%s6680_s24 + $0x30] sm:$0xff] }
0x1283   :  { %v3870_v24 = vsub.f32 %v3848_v1, %v3866_v51  ;;  %v3865_v17 = vpop.xlane.xlu0 %3864  ;;  %v5476_v51 = vpack.c.bf16 %v4045_v33, %v4044_v2  ;;  %v4232_v33 = vld [vmem:[%s4380_s5] sm:$0xff] }
0x1284   :  { %v3869_v11 = vmul.f32 0.03125, %v3865_v17  ;;  %v3862_v54 = vpop.xlane.xlu1 %3861  ;;  %v3875_v58 = vmul.f32 %v3871_v52, %v3871_v52 }
0x1285   :  { %v3868_v53 = vmul.f32 0.03125, %v3862_v54  ;;  %v3874_v31 = vmul.f32 %v3870_v24, %v3870_v24  ;;  %v4049_v54 = vld [vmem:[%s6680_s24 + $0x58] sm:$0xff] }
0x1286   :  { %v3873_v57 = vsub.f32 %v3851_v46, %v3869_v11  ;;  %v3881_v50 = vsel %vm165_vm0, %v3875_v58, 0.0  ;;  %v4042_v46 = vld [vmem:[%s6680_s24 + $0x20] sm:$0xff]  ;;  %v4048_v11 = vld [vmem:[%s6680_s24 + $0x50] sm:$0xff] }
0x1287   :  { %v3872_v26 = vsub.f32 %v3850_v34, %v3868_v53  ;;  %3882 = vadd.xlane.f32.xlu0 %v3881_v50  ;;  %v3878_v56 = vsel %vm165_vm0, %v3874_v31, 0.0  ;;  %v4043_v34 = vld [vmem:[%s6680_s24 + $0x28] sm:$0xff]  ;;  %v5484_v58 = vpack.c.bf16 %v4049_v54, %v4048_v11  ;;  %v4050_v53 = vld [vmem:[%s6680_s24 + $0x60] sm:$0xff]  ;;  %v4052_v50 = vld [vmem:[%s6680_s24 + $0x70] sm:$0xff] }
0x1288   :  { %3879 = vadd.xlane.f32.xlu1 %v3878_v56  ;;  %v3877_v5 = vmul.f32 %v3873_v57, %v3873_v57  ;;  %v5472_v49 = vpack.c.bf16 %v4043_v34, %v4042_v46  ;;  %v4051_v31 = vld [vmem:[%s6680_s24 + $0x68] sm:$0xff] }
0x1289   :  { %v3876_v59 = vmul.f32 %v3872_v26, %v3872_v26 }
0x128a   :  { %v3887_v60 = vsel %vm165_vm0, %v3877_v5, 0.0  ;;  %v4545_v5 = vld [vmem:[%s4375_s12] ss:$0 sm:$0xff] }
0x128b   :  { %3888 = vadd.xlane.f32.xlu0 %v3887_v60  ;;  %v3884_v61 = vsel %vm165_vm0, %v3876_v59, 0.0 }
0x128c   :  { %3885 = vadd.xlane.f32.xlu1 %v3884_v61 }
0x1314   :  { %v3883_v16 = vpop.xlane.xlu0 %3882 }
0x1315   :  { %v3891_v19 = vmul.f32 0.03125, %v3883_v16  ;;  %v3880_v9 = vpop.xlane.xlu1 %3879 }
0x1316   :  { %v3890_v18 = vmul.f32 0.03125, %v3880_v9 }
0x1317   :  { %v3895_v4 = vadd.f32 1e-05, %v3891_v19  ;;  %v4550_v19 = vld [vmem:[%s4377_s25] ss:$0 sm:$0xff] }
0x1318   :  { %v3894_v20 = vadd.f32 1e-05, %v3890_v18  ;;  %v3889_v22 = vpop.xlane.xlu0 %3888 }
0x1319   :  { %5873 = vrsqrt.f32 %v3895_v4  ;;  %v3893_v23 = vmul.f32 0.03125, %v3889_v22  ;;  %v3886_v28 = vpop.xlane.xlu1 %3885 }
0x131a   :  { %5875 = vrsqrt.f32 %v3894_v20  ;;  %v3892_v27 = vmul.f32 0.03125, %v3886_v28 }
0x131b   :  { %v3897_v14 = vadd.f32 1e-05, %v3893_v23 }
0x131c   :  { %v3896_v25 = vadd.f32 1e-05, %v3892_v27 }
0x131d   :  { %5877 = vrsqrt.f32 %v3897_v14 }
0x131e   :  { %5879 = vrsqrt.f32 %v3896_v25 }
0x1323   :  { %v5874_v40 = vpop.eup %5873 }
0x1324   :  { %v5876_v38 = vpop.eup %5875  ;;  %v3903_v63 = vmul.f32 %v5874_v40, %v3871_v52  ;;  %v4046_v52 = vld [vmem:[%s6680_s24 + $0x40] sm:$0xff] }
0x1325   :  { %v3902_v62 = vmul.f32 %v5876_v38, %v3870_v24  ;;  %v4047_v24 = vld [vmem:[%s6680_s24 + $0x48] sm:$0xff] }
0x1326   :  { %v3913_v3 = vmul.f32 %v4543_v41, %v3903_v63  ;;  %v5480_v17 = vpack.c.bf16 %v4047_v24, %v4046_v52  ;;  %v4234_v24 = vld [vmem:[%s4380_s5 + $0x10] sm:$0xff] }
0x1327   :  { %v5878_v42 = vpop.eup %5877  ;;  %v3912_v35 = vmul.f32 %v4543_v41, %v3902_v62 }
0x1328   :  { %v5880_v36 = vpop.eup %5879  ;;  %v3905_v1 = vmul.f32 %v5878_v42, %v3873_v57  ;;  %v6694_v39 = vadd.f32 %v4544_v29, %v3913_v3  ;;  %v5488_v57 = vpack.c.bf16 %v4051_v31, %v4050_v53 }
0x1329   :  { %v6692_v44 = vadd.f32 %v4544_v29, %v3912_v35  ;;  %v3904_v45 = vmul.f32 %v5880_v36, %v3872_v26  ;;  %v4053_v26 = vld [vmem:[%s6680_s24 + $0x78] sm:$0xff] }
0x132a   :  { %v3915_v21 = vmul.f32 %v4543_v41, %v3905_v1  ;;  %v5492_v56 = vpack.c.bf16 %v4053_v26, %v4052_v50 }
0x132b   :  { %5190 = vmatprep.mubr.msk.f32.mxu1 %vm165_vm0, %v6692_v44  ;;  %v3914_v48 = vmul.f32 %v4543_v41, %v3904_v45 }
0x132c   :  { %5191 = vmatmul.mubr.msk.f32.vlgmr.msra.gmra.mrb[36].mxu1 %vm165_vm0, %v6694_v39  ;;  %v3925_v37 = vadd.f32 %v4544_v29, %v3915_v21 }
0x132d   :  { %v6702_v32 = vadd.f32 %v4544_v29, %v3914_v48  ;;  %5467 = vmatpush3.bf16.msra.mxu1 %v5464_v15 }
0x132e   :  { %5469 = vmatprep.subr.bf16.mxu1 %v5468_v47 }
0x132f   :  { %5193 = vmatprep.mubr.msk.f32.mxu1 %vm165_vm0, %v6702_v32 }
0x1330   :  { %5194 = vmatmul.mubr.msk.f32.gmra.mrb[38].mxu1 %vm165_vm0, %v3925_v37 }
0x1331   :  { %5471 = vmatpush3.bf16.msra.mxu1 %v5468_v47 }
0x1332   :  { %5473 = vmatprep.subr.bf16.mxu1 %v5472_v49 }
0x1335   :  { %5475 = vmatpush3.bf16.msra.mxu1 %v5472_v49 }
0x1336   :  { %5477 = vmatprep.subr.bf16.mxu1 %v5476_v51 }
0x1339   :  { %5479 = vmatpush3.bf16.msra.mxu1 %v5476_v51  ;;  %v4233_v51 = vld [vmem:[%s4380_s5 + $0x8] sm:$0xff] }
0x133a   :  { %5481 = vmatprep.subr.bf16.mxu1 %v5480_v17  ;;  %v5496_v52 = vpack.c.bf16 %v4233_v51, %v4232_v33 }
0x133c   :  { %5497 = vmatprep.subr.bf16.mxu0 %v5496_v52 }
0x133d   :  { %5483 = vmatpush3.bf16.msra.mxu1 %v5480_v17  ;;  %v4235_v17 = vld [vmem:[%s4380_s5 + $0x18] sm:$0xff]  ;;  %5499 = vmatpush3.bf16.msra.mxu0 %v5496_v52 }
0x133e   :  { %5485 = vmatprep.subr.bf16.mxu1 %v5484_v58  ;;  %v5500_v11 = vpack.c.bf16 %v4235_v17, %v4234_v24 }
0x1340   :  { %5501 = vmatprep.subr.bf16.mxu0 %v5500_v11 }
0x1341   :  { %5487 = vmatpush3.bf16.msra.mxu1 %v5484_v58  ;;  %5503 = vmatpush3.bf16.msra.mxu0 %v5500_v11 }
0x1342   :  { %5489 = vmatprep.subr.bf16.mxu1 %v5488_v57 }
0x1345   :  { %5491 = vmatpush3.bf16.msra.mxu1 %v5488_v57 }
0x1346   :  { %5493 = vmatprep.subr.bf16.mxu1 %v5492_v56 }
0x1349   :  { %5495 = vmatpush3.bf16.msra.mxu1 %v5492_v56 }
0x13ff   :  { %v5192_v59 = vpop.f32.mrb[36].mxu1 }
0x1400   :  { %v4021_v60 = vadd.f32 %v5192_v59, %v4545_v5  ;;  %v4015_v61 = vpop.f32.mrb[37].mxu1 }
0x1401   :  { %v4016_v6 = vadd.f32 %v4545_v5, %v4015_v61 }
0x1402   :  { %v4035_v8 = vmax.f32 %v4021_v60, 0.0 }
0x1403   :  { %v4034_v0 = vmax.f32 %v4016_v6, 0.0  ;;  %v5195_v7 = vpop.f32.mrb[38].mxu1 }
0x1404   :  { %v4031_v10 = vadd.f32 %v5195_v7, %v4545_v5  ;;  %v4025_v55 = vpop.f32.mrb[39].mxu1 }
0x1405   :  { %v4026_v12 = vadd.f32 %v4545_v5, %v4025_v55  ;;  %5228 = vmatprep.mubr.f32.mxu1 %v4034_v0  ;;  %v4551_v0 = vld [vmem:[%s4378_s18] ss:$0 sm:$0xff] }
0x1406   :  { %5229 = vmatmul.mubr.f32.vlgmr.msra.gmra.mrb[40].mxu1 %v4035_v8  ;;  %v4037_v15 = vmax.f32 %v4031_v10, 0.0  ;;  %v4552_v10 = vld [vmem:[%s4379_s21] ss:$0 sm:$0xff] }
0x1407   :  { %v4036_v13 = vmax.f32 %v4026_v12, 0.0 }
0x1409   :  { %5231 = vmatprep.mubr.f32.mxu1 %v4036_v13 }
0x140a   :  { %5232 = vmatmul.mubr.f32.gmra.mrb[42].mxu1 %v4037_v15 }
0x14d9   :  { %v5230_v16 = vpop.f32.mrb[40].mxu1 }
0x14da   :  { %v4140_v9 = vadd.f32 %v5230_v16, %v6694_v39  ;;  %v4120_v18 = vpop.f32.mrb[41].mxu1 }
0x14db   :  { %v4139_v4 = vadd.f32 %v4120_v18, %v6692_v44 }
0x14dc   :  { %v4151_v20 = vadd.f32 %v4550_v19, %v4140_v9 }
0x14dd   :  { %v4150_v22 = vadd.f32 %v4550_v19, %v4139_v4  ;;  %v5233_v23 = vpop.f32.mrb[42].mxu1 }
0x14de   :  { %v4142_v28 = vadd.f32 %v5233_v23, %v3925_v37  ;;  %v4130_v27 = vpop.f32.mrb[43].mxu1  ;;  %v4159_v14 = vsel %vm165_vm0, %v4151_v20, 0.0 }
0x14df   :  { %v4141_v25 = vadd.f32 %v4130_v27, %v6702_v32  ;;  %4160 = vadd.xlane.f32.xlu0 %v4159_v14  ;;  %v4156_v40 = vsel %vm165_vm0, %v4150_v22, 0.0  ;;  %v4553_v27 = vld [vmem:[%s4381_s4] ss:$0 sm:$0xff] }
0x14e0   :  { %v4153_v41 = vadd.f32 %v4550_v19, %v4142_v28  ;;  %4157 = vadd.xlane.f32.xlu1 %v4156_v40 }
0x14e1   :  { %v4152_v38 = vadd.f32 %v4550_v19, %v4141_v25 }
0x14e2   :  { %v4165_v63 = vsel %vm165_vm0, %v4153_v41, 0.0 }
0x14e3   :  { %4166 = vadd.xlane.f32.xlu0 %v4165_v63  ;;  %v4162_v62 = vsel %vm165_vm0, %v4152_v38, 0.0 }
0x14e4   :  { %4163 = vadd.xlane.f32.xlu1 %v4162_v62 }
0x156c   :  { %v4161_v29 = vpop.xlane.xlu0 %4160 }
0x156d   :  { %v4169_v3 = vmul.f32 0.03125, %v4161_v29  ;;  %v4158_v42 = vpop.xlane.xlu1 %4157 }
0x156e   :  { %v4168_v35 = vmul.f32 0.03125, %v4158_v42 }
0x156f   :  { %v4173_v30 = vsub.f32 %v4151_v20, %v4169_v3 }
0x1570   :  { %v4172_v43 = vsub.f32 %v4150_v22, %v4168_v35  ;;  %v4167_v36 = vpop.xlane.xlu0 %4166 }
0x1571   :  { %v4171_v1 = vmul.f32 0.03125, %v4167_v36  ;;  %v4164_v44 = vpop.xlane.xlu1 %4163  ;;  %v4177_v45 = vmul.f32 %v4173_v30, %v4173_v30 }
0x1572   :  { %v4170_v39 = vmul.f32 0.03125, %v4164_v44  ;;  %v4176_v21 = vmul.f32 %v4172_v43, %v4172_v43 }
0x1573   :  { %v4175_v47 = vsub.f32 %v4153_v41, %v4171_v1  ;;  %v4183_v48 = vsel %vm165_vm0, %v4177_v45, 0.0 }
0x1574   :  { %v4174_v46 = vsub.f32 %v4152_v38, %v4170_v39  ;;  %4184 = vadd.xlane.f32.xlu0 %v4183_v48  ;;  %v4180_v34 = vsel %vm165_vm0, %v4176_v21, 0.0 }
0x1575   :  { %4181 = vadd.xlane.f32.xlu1 %v4180_v34  ;;  %v4179_v32 = vmul.f32 %v4175_v47, %v4175_v47 }
0x1576   :  { %v4178_v37 = vmul.f32 %v4174_v46, %v4174_v46 }
0x1577   :  { %v4189_v49 = vsel %vm165_vm0, %v4179_v32, 0.0 }
0x1578   :  { %4190 = vadd.xlane.f32.xlu0 %v4189_v49  ;;  %v4186_v2 = vsel %vm165_vm0, %v4178_v37, 0.0 }
0x1579   :  { %4187 = vadd.xlane.f32.xlu1 %v4186_v2 }
0x1601   :  { %v4185_v54 = vpop.xlane.xlu0 %4184 }
0x1602   :  { %v4193_v58 = vmul.f32 0.03125, %v4185_v54  ;;  %v4182_v53 = vpop.xlane.xlu1 %4181 }
0x1603   :  { %v4192_v31 = vmul.f32 0.03125, %v4182_v53 }
0x1604   :  { %v4197_v57 = vadd.f32 1e-05, %v4193_v58 }
0x1605   :  { %v4196_v50 = vadd.f32 1e-05, %v4192_v31  ;;  %v4191_v26 = vpop.xlane.xlu0 %4190 }
0x1606   :  { %5881 = vrsqrt.f32 %v4197_v57  ;;  %v4195_v56 = vmul.f32 0.03125, %v4191_v26  ;;  %v4188_v5 = vpop.xlane.xlu1 %4187 }
0x1607   :  { %5883 = vrsqrt.f32 %v4196_v50  ;;  %v4194_v59 = vmul.f32 0.03125, %v4188_v5 }
0x1608   :  { %v4199_v60 = vadd.f32 1e-05, %v4195_v56 }
0x1609   :  { %v4198_v61 = vadd.f32 1e-05, %v4194_v59 }
0x160a   :  { %5885 = vrsqrt.f32 %v4199_v60 }
0x160b   :  { %5887 = vrsqrt.f32 %v4198_v61 }
0x1610   :  { %v5882_v6 = vpop.eup %5881 }
0x1611   :  { %v5884_v7 = vpop.eup %5883  ;;  %v4205_v8 = vmul.f32 %v5882_v6, %v4173_v30 }
0x1612   :  { %v4204_v55 = vmul.f32 %v5884_v7, %v4172_v43 }
0x1613   :  { %v4215_v12 = vmul.f32 %v4551_v0, %v4205_v8 }
0x1614   :  { %v5886_v13 = vpop.eup %5885  ;;  %v4214_v15 = vmul.f32 %v4551_v0, %v4204_v55 }
0x1615   :  { %v5888_v16 = vpop.eup %5887  ;;  %v4225_v19 = vadd.f32 %v4552_v10, %v4215_v12  ;;  %v4207_v9 = vmul.f32 %v5886_v13, %v4175_v47 }
0x1616   :  { %v4224_v18 = vadd.f32 %v4552_v10, %v4214_v15  ;;  %v4206_v4 = vmul.f32 %v5888_v16, %v4174_v46 }
0x1617   :  { %4229 = vst.msk [vmem:[%s4382_s28 + $0x8] sm:$0xff] %vm165_vm0, %v4225_v19  ;;  %v4217_v20 = vmul.f32 %v4551_v0, %v4207_v9 }
0x1618   :  { %4228 = vst.msk [vmem:[%s4382_s28] sm:$0xff] %vm165_vm0, %v4224_v18  ;;  %5242 = vmatprep.mubr.msk.f32.mxu0 %vm165_vm0, %v4224_v18  ;;  %v4216_v22 = vmul.f32 %v4551_v0, %v4206_v4 }
0x1619   :  { %5243 = vmatmul.mubr.msk.f32.vlgmr.msra.gmra.mrb[52].mxu0 %vm165_vm0, %v4225_v19  ;;  %v4227_v23 = vadd.f32 %v4552_v10, %v4217_v20 }
0x161a   :  { %v4226_v28 = vadd.f32 %v4552_v10, %v4216_v22 }
0x161b   :  { %4231 = vst.msk [vmem:[%s4382_s28 + $0x18] sm:$0xff] %vm165_vm0, %v4227_v23 }
0x161c   :  { %4230 = vst.msk [vmem:[%s4382_s28 + $0x10] sm:$0xff] %vm165_vm0, %v4226_v28  ;;  %5245 = vmatprep.mubr.msk.f32.mxu0 %vm165_vm0, %v4226_v28 }
0x161d   :  { %5246 = vmatmul.mubr.msk.f32.gmra.mrb[54].mxu0 %vm165_vm0, %v4227_v23 }
0x16ec   :  { %v5244_v14 = vpop.f32.mrb[52].mxu0 }
0x16ed   :  { %v4327_v25 = vadd.f32 %v5244_v14, %v4553_v27  ;;  %v4321_v40 = vpop.f32.mrb[53].mxu0 }
0x16ee   :  { %v4322_v41 = vadd.f32 %v4553_v27, %v4321_v40 }
0x16ef   :  { %4341 = vst [vmem:[%s4383_s8 + $0x8] sm:$0xff] %v4327_v25 }
0x16f0   :  { %4340 = vst [vmem:[%s4383_s8] sm:$0xff] %v4322_v41  ;;  %v5247_v38 = vpop.f32.mrb[54].mxu0 }
0x16f1   :  { %v4337_v63 = vadd.f32 %v5247_v38, %v4553_v27  ;;  %v4331_v62 = vpop.f32.mrb[55].mxu0 }
0x16f2   :  { %v4332_v29 = vadd.f32 %v4553_v27, %v4331_v62 }
0x16f3   :  { %4343 = vst [vmem:[%s4383_s8 + $0x18] sm:$0xff] %v4337_v63 }
0x16f4   :  { %4342 = vst [vmem:[%s4383_s8 + $0x10] sm:$0xff] %v4332_v29 }

</bundles_post_ra>
